<compile_context>
chip_gen: v7x
topology: tpu7x:2x2x1
jax: 0.10.0
libtpu: 0.0.40
codegen_flags: <defaults>
</compile_context>

<pallas_src>
import functools

import jax
import jax.numpy as jnp
from jax.experimental import pallas as pl
from jax.experimental.pallas import tpu as pltpu

LANE = 128                       # feature dims padded to multiples of the lane width
GCOL = 128                       # gate-logit lane tile appended to each weight block
VMEM_LIMIT = 64 * 1024 * 1024    # raise vs. 32 MiB default (cap ~48 MiB on v7x)


def _round_up(x, m):
    return (x + m - 1) // m * m


# ---------------------------------------------------------------------------
# Pass 1: fused per-relation projection + sigmoid gate + self-loop projection.
# grid = (node_tiles [parallel], relation blocks r = 0..R [arbitrary])
#   r <  R : out block r = (h @ W_r) * sigmoid(h @ Wg_r)
#   r == R : out block R = h @ W_loop   (ungated self-loop projection)
# ---------------------------------------------------------------------------
def _proj_kernel(h_ref, w_ref, out_ref, *, num_rels):
    r = pl.program_id(1)
    fout = out_ref.shape[1]
    hw = jnp.dot(h_ref[...], w_ref[0],
                 preferred_element_type=jnp.float32)       # (TN, fout + GCOL)
    logit = hw[:, fout:fout + 1]                           # (TN, 1) gate logit
    gate = jnp.where(r < num_rels, jax.nn.sigmoid(logit), 1.0)
    out_ref[...] = (hw[:, :fout] * gate).astype(out_ref.dtype)


# ---------------------------------------------------------------------------
# Pass 2: dst-sorted edge aggregation.
# flat grid over edge blocks; blk_tile (scalar prefetch, SMEM) maps block -> node
# tile, so the output / self-loop tiles follow the current tile and every tile
# only sees its own (contiguous) edge blocks.
# ---------------------------------------------------------------------------
def _agg_kernel(blk_tile_ref,                              # scalar prefetch (G,) i32
                src_ref, dst_ref, rel_ref, norm_ref,       # edge blocks
                tile_nid_ref, nid_row_ref,                 # node ids (col / row)
                gproj_ref, loop_ref, bias_ref,             # projections / bias
                out_ref, acc_ref, *, num_rels):
    g = pl.program_id(0)
    n_blk = pl.num_programs(0)
    t = blk_tile_ref[g]
    prev_t = blk_tile_ref[jnp.maximum(g - 1, 0)]
    next_t = blk_tile_ref[jnp.minimum(g + 1, n_blk - 1)]
    is_first = jnp.logical_or(g == 0, t != prev_t)
    is_last = jnp.logical_or(g == n_blk - 1, t != next_t)

    feat = out_ref.shape[1]

    @pl.when(is_first)
    def _init():
        # self-loop projection (computed in pass 1) + bias seed the accumulator.
        acc_ref[...] = loop_ref[...].astype(jnp.float32) + bias_ref[...]

    src = src_ref[...]                                     # (EB, 1) int32
    dst = dst_ref[...]                                     # (1, EB) int32
    rel = rel_ref[...]                                     # (1, EB) int32
    norm = norm_ref[...]                                   # (1, EB) f32 (0 => padding)

    # Gather gproj[src_e] rows with one MXU matmul: (EB, N_pad) @ (N_pad, R*F).
    src_onehot = (nid_row_ref[...] == src).astype(jnp.bfloat16)       # (EB, N_pad)
    gathered = jnp.dot(src_onehot, gproj_ref[...],
                       preferred_element_type=jnp.float32)            # (EB, R*F)
    gathered = gathered.astype(jnp.bfloat16)

    # dst / relation masks live on the small (TN, EB) side.
    hit_dst = tile_nid_ref[...] == dst                                 # (TN, EB)
    acc = acc_ref[...]
    for r in range(num_rels):                                          # static unroll
        sel_r = jnp.where(jnp.logical_and(hit_dst, rel == r),
                          norm, 0.0).astype(jnp.bfloat16)              # (TN, EB)
        acc = acc + jnp.dot(sel_r, gathered[:, r * feat:(r + 1) * feat],
                            preferred_element_type=jnp.float32)
    acc_ref[...] = acc

    @pl.when(is_last)
    def _finish():
        out_ref[...] = jnp.maximum(acc_ref[...], 0.0)                  # ReLU


# ---------------------------------------------------------------------------
# Wrapper: padding, weight packing, dst-sorted edge layout, two pallas_calls.
# ---------------------------------------------------------------------------
@functools.partial(jax.jit, static_argnames=("node_tile", "edge_block"))
def rgcn_forward(h, weight, gate_weight, loop_weight, h_bias,
                 src, dst, rel, norm, *, node_tile=128, edge_block=512):
    assert node_tile % 8 == 0 and edge_block % LANE == 0
    n_nodes, in_feat = h.shape
    num_rels, _, out_feat = weight.shape
    assert num_rels >= 1
    n_edges = src.shape[0]

    fin_p = _round_up(in_feat, LANE)
    fout_p = _round_up(out_feat, LANE)
    n_pad = _round_up(n_nodes, node_tile)
    n_tiles = n_pad // node_tile
    e_blocks = -(-n_edges // edge_block)
    num_blocks = e_blocks + n_tiles          # static upper bound (>=1 block per tile)
    total_slots = num_blocks * edge_block

    # ---- lane-dense feature/weight padding (wrapper-side, bf16 MXU operands) ----
    h_bf = (jnp.zeros((n_pad, fin_p), jnp.float32)
            .at[:n_nodes, :in_feat].set(h).astype(jnp.bfloat16))

    w_all = jnp.zeros((num_rels + 1, fin_p, fout_p + GCOL), jnp.float32)
    w_all = w_all.at[:num_rels, :in_feat, :out_feat].set(weight)
    w_all = w_all.at[num_rels, :in_feat, :out_feat].set(loop_weight)
    w_all = w_all.at[:num_rels, :in_feat, fout_p].set(gate_weight[:, :, 0])
    w_all = w_all.astype(jnp.bfloat16)

    bias_p = jnp.zeros((1, fout_p), jnp.float32).at[0, :out_feat].set(h_bias)

    # ---- dst-sorted, per-tile-padded edge layout + block -> tile map ----
    tile_id = dst // node_tile                                            # (E,)
    counts = jnp.zeros((n_tiles,), jnp.int32).at[tile_id].add(1)
    blk_of_tile = jnp.maximum(1, (counts + edge_block - 1) // edge_block).astype(jnp.int32)
    blk_start = jnp.concatenate([jnp.zeros((1,), jnp.int32),
                                 jnp.cumsum(blk_of_tile)[:-1].astype(jnp.int32)])
    slot_start = blk_start * edge_block

    order = jnp.argsort(tile_id)
    sorted_tile = tile_id[order]
    first_idx = jnp.searchsorted(sorted_tile, jnp.arange(n_tiles, dtype=jnp.int32))
    rank = jnp.arange(n_edges, dtype=jnp.int32) - first_idx[sorted_tile].astype(jnp.int32)
    pos = slot_start[sorted_tile] + rank                                  # unique slots

    src_s = jnp.zeros((total_slots,), jnp.int32).at[pos].set(src[order])
    dst_s = jnp.zeros((total_slots,), jnp.int32).at[pos].set(dst[order])
    rel_s = jnp.zeros((total_slots,), jnp.int32).at[pos].set(rel[order])
    norm_s = jnp.zeros((total_slots,), jnp.float32).at[pos].set(norm[order])  # 0 => pad

    blk_tile = (jnp.searchsorted(blk_start,
                                 jnp.arange(num_blocks, dtype=jnp.int32),
                                 side='right') - 1).astype(jnp.int32)
    blk_tile = jnp.clip(blk_tile, 0, n_tiles - 1)

    node_ids = jnp.arange(n_pad, dtype=jnp.int32)
    nid_col = node_ids.reshape(n_pad, 1)
    nid_row = node_ids.reshape(1, n_pad)

    nbytes = lambda a: a.size * a.dtype.itemsize

    # ---- pass 1: gated per-relation + self-loop projections ----
    proj_cols = (num_rels + 1) * fout_p
    proj = pl.pallas_call(
        functools.partial(_proj_kernel, num_rels=num_rels),
        out_shape=jax.ShapeDtypeStruct((n_pad, proj_cols), jnp.bfloat16),
        grid=(n_tiles, num_rels + 1),
        in_specs=[pl.BlockSpec((node_tile, fin_p), lambda i, r: (i, 0)),
                  pl.BlockSpec((1, fin_p, fout_p + GCOL), lambda i, r: (r, 0, 0))],
        out_specs=pl.BlockSpec((node_tile, fout_p), lambda i, r: (i, r)),
        compiler_params=pltpu.CompilerParams(
            dimension_semantics=("parallel", "arbitrary"),
            vmem_limit_bytes=VMEM_LIMIT),
        cost_estimate=pl.CostEstimate(
            flops=2 * n_pad * fin_p * (num_rels + 1) * (fout_p + GCOL),
            transcendentals=n_pad * (num_rels + 1),
            bytes_accessed=nbytes(h_bf) + nbytes(w_all) + n_pad * proj_cols * 2),
    )(h_bf, w_all)

    gproj_rel = proj[:, :num_rels * fout_p]        # (N_pad, R*F)  gated projections
    gproj_loop = proj[:, num_rels * fout_p:]       # (N_pad, F)    self-loop projection

    # ---- pass 2: dst-sorted edge aggregation + bias + ReLU ----
    edge_row_spec = lambda: pl.BlockSpec((1, edge_block), lambda g, bt: (0, g))
    grid_spec = pltpu.PrefetchScalarGridSpec(
        num_scalar_prefetch=1,
        grid=(num_blocks,),
        in_specs=[
            pl.BlockSpec((edge_block, 1), lambda g, bt: (g, 0)),          # src (col)
            edge_row_spec(),                                              # dst
            edge_row_spec(),                                              # rel
            edge_row_spec(),                                              # norm
            pl.BlockSpec((node_tile, 1), lambda g, bt: (bt[g], 0)),       # tile node ids
            pl.BlockSpec((1, n_pad), lambda g, bt: (0, 0)),               # all node ids
            pl.BlockSpec((n_pad, num_rels * fout_p), lambda g, bt: (0, 0)),   # gproj_rel
            pl.BlockSpec((node_tile, fout_p), lambda g, bt: (bt[g], 0)),  # self-loop tile
            pl.BlockSpec((1, fout_p), lambda g, bt: (0, 0)),              # bias
        ],
        out_specs=pl.BlockSpec((node_tile, fout_p), lambda g, bt: (bt[g], 0)),
        scratch_shapes=[pltpu.VMEM((node_tile, fout_p), jnp.float32)],
    )
    out_p = pl.pallas_call(
        functools.partial(_agg_kernel, num_rels=num_rels),
        grid_spec=grid_spec,
        out_shape=jax.ShapeDtypeStruct((n_pad, fout_p), jnp.float32),
        compiler_params=pltpu.CompilerParams(
            dimension_semantics=("arbitrary",),
            vmem_limit_bytes=VMEM_LIMIT),
        cost_estimate=pl.CostEstimate(
            flops=num_blocks * (2 * edge_block * n_pad * num_rels * fout_p
                                + 2 * num_rels * node_tile * edge_block * fout_p),
            transcendentals=0,
            bytes_accessed=16 * total_slots + nbytes(gproj_rel) + nbytes(gproj_loop)
            + nbytes(bias_p) + n_pad * fout_p * 4 + 8 * n_pad),
    )(blk_tile, src_s.reshape(total_slots, 1), dst_s.reshape(1, total_slots),
      rel_s.reshape(1, total_slots), norm_s.reshape(1, total_slots),
      nid_col, nid_row, gproj_rel, gproj_loop, bias_p)

    return out_p[:n_nodes, :out_feat]


def rgcn_reference(h, weight, gate_weight, loop_weight, h_bias, src, dst, rel, norm):
    hw = jnp.einsum('ni,rio->rno', h, weight)                 # (R, N, F_out)
    gl = jnp.einsum('ni,rio->rno', h, gate_weight)            # (R, N, 1)
    hwg = hw * jax.nn.sigmoid(gl)
    msg = hwg[rel, src] * norm[:, None]                       # (E, F_out)
    agg = jnp.zeros((h.shape[0], weight.shape[2]), jnp.float32).at[dst].add(msg)
    node = agg + h_bias[None, :] + h @ loop_weight
    return jnp.maximum(node, 0.0)


if __name__ == "__main__":
    # Small but non-trivial: 2 node tiles, multiple edge blocks (exercises the
    # dst-sorted block->tile map and multi-block accumulation runs).
    N, E = 200, 1200
    in_feat, out_feat = 48, 96
    num_rels = 3

    key = jax.random.PRNGKey(0)
    k_h, k_w, k_gw, k_lw, k_b, k_src, k_dst, k_rel, k_norm = jax.random.split(key, 9)

    w_scale = (2.0 / (in_feat + out_feat)) ** 0.5
    h = jax.random.normal(k_h, (N, in_feat), jnp.float32)
    weight = jax.random.uniform(k_w, (num_rels, in_feat, out_feat), jnp.float32,
                                -w_scale, w_scale)
    gate_weight = jax.random.uniform(k_gw, (num_rels, in_feat, 1), jnp.float32,
                                     -w_scale, w_scale)
    loop_weight = jax.random.uniform(k_lw, (in_feat, out_feat), jnp.float32,
                                     -w_scale, w_scale)
    h_bias = 0.1 * jax.random.normal(k_b, (out_feat,), jnp.float32)

    src = jax.random.randint(k_src, (E,), 0, N, jnp.int32)
    dst = jax.random.randint(k_dst, (E,), 0, N, jnp.int32)
    rel = jax.random.randint(k_rel, (E,), 0, num_rels, jnp.int32)
    norm = jax.random.uniform(k_norm, (E,), jnp.float32, 0.1, 1.0)

    out = rgcn_forward(h, weight, gate_weight, loop_weight, h_bias,
                       src, dst, rel, norm)
    out = jax.block_until_ready(out)

    ref = rgcn_reference(h, weight, gate_weight, loop_weight, h_bias,
                         src, dst, rel, norm)
    assert out.shape == (N, out_feat)
    # bf16 matmul operands with f32 accumulation -> a few 1e-3..1e-2 of slack.
    assert jnp.allclose(out, ref, atol=5e-2, rtol=5e-2), "mismatch vs reference"

    print("KERNEL_OK")
</pallas_src>

<mosaic_0001>
module attributes {stable_mosaic.version = 11 : i64} {
  func.func private @main(%arg0: i32) attributes {dimension_semantics = [#tpu.dimension_semantics<core_parallel>], iteration_bounds = array<i64: 2>, tpu.core_type = #tpu.core_type<sc_scalar_subcore>, window_params = []} {
    return
  }
}

module attributes {stable_mosaic.version = 11 : i64} {
  func.func private @main(%arg0: i32) attributes {dimension_semantics = [#tpu.dimension_semantics<core_parallel>], iteration_bounds = array<i64: 2>, tpu.core_type = #tpu.core_type<sc_scalar_subcore>, window_params = []} {
    return
  }
}

module attributes {stable_mosaic.version = 11 : i64} {
  func.func @_proj_kernel(%arg0: i32, %arg1: i32, %arg2: memref<128x128xbf16, #tpu.memory_space<vmem>>, %arg3: memref<1x128x256xbf16, #tpu.memory_space<vmem>>, %arg4: memref<128x128xbf16, #tpu.memory_space<vmem>>) attributes {dimension_semantics = [#tpu.dimension_semantics<parallel>, #tpu.dimension_semantics<arbitrary>], iteration_bounds = array<i64: 2, 4>, scalar_prefetch = 0 : i64, scratch_operands = 0 : i64, tpu.core_type = #tpu.core_type<tc>, window_params = [{transform_indices = @transform_0, window_bounds = array<i64: 128, 128>}, {transform_indices = @transform_1, window_bounds = array<i64: 1, 128, 256>}, {transform_indices = @transform_2, window_bounds = array<i64: 128, 128>}]} {
    %c0 = arith.constant 0 : index
    %c0_0 = arith.constant 0 : index
    %0 = vector.load %arg2[%c0, %c0_0] : memref<128x128xbf16, #tpu.memory_space<vmem>>, vector<128x128xbf16>
    %c0_1 = arith.constant 0 : index
    %c0_2 = arith.constant 0 : index
    %c0_3 = arith.constant 0 : index
    %1 = vector.load %arg3[%c0_1, %c0_2, %c0_3] : memref<1x128x256xbf16, #tpu.memory_space<vmem>>, vector<1x128x256xbf16>
    %2 = vector.shape_cast %1 : vector<1x128x256xbf16> to vector<128x256xbf16>
    %cst = arith.constant dense<0.000000e+00> : vector<128x256xf32>
    %3 = tpu.matmul %0, %2, %cst {dimension_numbers = #tpu.dot_dimension_numbers<[1], [0], [0], [1], [0, 0, 1, 1], [], []>} : vector<128x128xbf16>, vector<128x256xbf16>, vector<128x256xf32> -> vector<128x256xf32>
    %4 = vector.extract_strided_slice %3 {offsets = [0, 128], sizes = [128, 1], strides = [1, 1]} : vector<128x256xf32> to vector<128x1xf32>
    %c3_i32 = arith.constant 3 : i32
    %5 = arith.cmpi slt, %arg1, %c3_i32 : i32
    %6 = arith.negf %4 : vector<128x1xf32>
    %7 = math.exp %6 : vector<128x1xf32>
    %cst_4 = arith.constant 1.000000e+00 : f32
    %8 = vector.broadcast %cst_4 : f32 to vector<128x1xf32>
    %9 = arith.addf %8, %7 : vector<128x1xf32>
    %10 = arith.divf %8, %9 : vector<128x1xf32>
    %cst_5 = arith.constant 1.000000e+00 : f32
    %11 = vector.broadcast %cst_5 : f32 to vector<128x1xf32>
    %12 = arith.select %5, %10, %11 : vector<128x1xf32>
    %13 = vector.extract_strided_slice %3 {offsets = [0, 0], sizes = [128, 128], strides = [1, 1]} : vector<128x256xf32> to vector<128x128xf32>
    %14 = vector.broadcast %12 : vector<128x1xf32> to vector<128x128xf32>
    %15 = arith.mulf %13, %14 : vector<128x128xf32>
    %16 = arith.truncf %15 : vector<128x128xf32> to vector<128x128xbf16>
    %c0_6 = arith.constant 0 : index
    %c0_7 = arith.constant 0 : index
    %17 = vector.load %arg4[%c0_6, %c0_7] : memref<128x128xbf16, #tpu.memory_space<vmem>>, vector<128x128xbf16>
    tpu.vector_store %arg4[%c0_6, %c0_7], %16 {strides = array<i32>} : memref<128x128xbf16, #tpu.memory_space<vmem>>, vector<128x128xbf16>,
    return
  }
  func.func @transform_0(%arg0: i32, %arg1: i32) -> (i32, i32) {
    %c0_i32 = arith.constant 0 : i32
    %c0_i32_0 = arith.constant 0 : i32
    return %arg0, %c0_i32 : i32, i32
  }
  func.func @transform_1(%arg0: i32, %arg1: i32) -> (i32, i32, i32) {
    %c0_i32 = arith.constant 0 : i32
    %c0_i32_0 = arith.constant 0 : i32
    %c0_i32_1 = arith.constant 0 : i32
    return %arg1, %c0_i32, %c0_i32_0 : i32, i32, i32
  }
  func.func @transform_2(%arg0: i32, %arg1: i32) -> (i32, i32) {
    %c0_i32 = arith.constant 0 : i32
    return %arg0, %arg1 : i32, i32
  }
}

module attributes {stable_mosaic.version = 11 : i64} {
  func.func @_agg_kernel(%arg0: i32, %arg1: memref<5xi32, #tpu.memory_space<smem>>, %arg2: memref<512x1xi32, #tpu.memory_space<vmem>>, %arg3: memref<1x512xi32, #tpu.memory_space<vmem>>, %arg4: memref<1x512xi32, #tpu.memory_space<vmem>>, %arg5: memref<1x512xf32, #tpu.memory_space<vmem>>, %arg6: memref<128x1xi32, #tpu.memory_space<vmem>>, %arg7: memref<1x256xi32, #tpu.memory_space<vmem>>, %arg8: memref<256x384xbf16, #tpu.memory_space<vmem>>, %arg9: memref<128x128xbf16, #tpu.memory_space<vmem>>, %arg10: memref<1x128xf32, #tpu.memory_space<vmem>>, %arg11: memref<128x128xf32, #tpu.memory_space<vmem>>, %arg12: memref<128x128xf32, #tpu.memory_space<vmem>>) attributes {dimension_semantics = [#tpu.dimension_semantics<arbitrary>], iteration_bounds = array<i64: 5>, scalar_prefetch = 1 : i64, scratch_operands = 1 : i64, tpu.core_type = #tpu.core_type<tc>, window_params = [{transform_indices = @transform_0, window_bounds = array<i64: 512, 1>}, {transform_indices = @transform_1, window_bounds = array<i64: 1, 512>}, {transform_indices = @transform_2, window_bounds = array<i64: 1, 512>}, {transform_indices = @transform_3, window_bounds = array<i64: 1, 512>}, {transform_indices = @transform_4, window_bounds = array<i64: 128, 1>}, {pipeline_mode = #tpu.pipeline_mode<synchronous>, transform_indices = @transform_5, window_bounds = array<i64: 1, 256>}, {pipeline_mode = #tpu.pipeline_mode<synchronous>, transform_indices = @transform_6, window_bounds = array<i64: 256, 384>}, {transform_indices = @transform_7, window_bounds = array<i64: 128, 128>}, {pipeline_mode = #tpu.pipeline_mode<synchronous>, transform_indices = @transform_8, window_bounds = array<i64: 1, 128>}, {transform_indices = @transform_9, window_bounds = array<i64: 128, 128>}]} {
    %0 = arith.index_cast %arg0 : i32 to index
    %1 = memref.load %arg1[%0] : memref<5xi32, #tpu.memory_space<smem>>
    %c1_i32 = arith.constant 1 : i32
    %2 = arith.subi %arg0, %c1_i32 : i32
    %c0_i32 = arith.constant 0 : i32
    %3 = arith.maxsi %2, %c0_i32 : i32
    %4 = arith.index_cast %3 : i32 to index
    %5 = memref.load %arg1[%4] : memref<5xi32, #tpu.memory_space<smem>>
    %c1_i32_0 = arith.constant 1 : i32
    %6 = arith.addi %arg0, %c1_i32_0 : i32
    %c4_i32 = arith.constant 4 : i32
    %7 = arith.minsi %6, %c4_i32 : i32
    %8 = arith.index_cast %7 : i32 to index
    %9 = memref.load %arg1[%8] : memref<5xi32, #tpu.memory_space<smem>>
    %c0_i32_1 = arith.constant 0 : i32
    %10 = arith.cmpi eq, %arg0, %c0_i32_1 : i32
    %11 = arith.cmpi ne, %1, %5 : i32
    %12 = arith.ori %10, %11 : i1
    %c4_i32_2 = arith.constant 4 : i32
    %13 = arith.cmpi eq, %arg0, %c4_i32_2 : i32
    %14 = arith.cmpi ne, %1, %9 : i32
    %15 = arith.ori %13, %14 : i1
    %16 = arith.extui %12 : i1 to i32
    %c0_i32_3 = arith.constant 0 : i32
    %17 = arith.cmpi ne, %16, %c0_i32_3 : i32
    scf.if %17 {
      %c0_30 = arith.constant 0 : index
      %c0_31 = arith.constant 0 : index
      %76 = vector.load %arg9[%c0_30, %c0_31] : memref<128x128xbf16, #tpu.memory_space<vmem>>, vector<128x128xbf16>
      %77 = arith.extf %76 : vector<128x128xbf16> to vector<128x128xf32>
      %c0_32 = arith.constant 0 : index
      %c0_33 = arith.constant 0 : index
      %78 = vector.load %arg10[%c0_32, %c0_33] : memref<1x128xf32, #tpu.memory_space<vmem>>, vector<1x128xf32>
      %79 = vector.broadcast %78 : vector<1x128xf32> to vector<128x128xf32>
      %80 = arith.addf %77, %79 : vector<128x128xf32>
      %c0_34 = arith.constant 0 : index
      %c0_35 = arith.constant 0 : index
      %81 = vector.load %arg12[%c0_34, %c0_35] : memref<128x128xf32, #tpu.memory_space<vmem>>, vector<128x128xf32>
      tpu.vector_store %arg12[%c0_34, %c0_35], %80 {strides = array<i32>} : memref<128x128xf32, #tpu.memory_space<vmem>>, vector<128x128xf32>,
    } else {
    }
    %c0 = arith.constant 0 : index
    %c0_4 = arith.constant 0 : index
    %18 = vector.load %arg2[%c0, %c0_4] : memref<512x1xi32, #tpu.memory_space<vmem>>, vector<512x1xi32>
    %c0_5 = arith.constant 0 : index
    %c0_6 = arith.constant 0 : index
    %19 = vector.load %arg3[%c0_5, %c0_6] : memref<1x512xi32, #tpu.memory_space<vmem>>, vector<1x512xi32>
    %c0_7 = arith.constant 0 : index
    %c0_8 = arith.constant 0 : index
    %20 = vector.load %arg4[%c0_7, %c0_8] : memref<1x512xi32, #tpu.memory_space<vmem>>, vector<1x512xi32>
    %c0_9 = arith.constant 0 : index
    %c0_10 = arith.constant 0 : index
    %21 = vector.load %arg5[%c0_9, %c0_10] : memref<1x512xf32, #tpu.memory_space<vmem>>, vector<1x512xf32>
    %c0_11 = arith.constant 0 : index
    %c0_12 = arith.constant 0 : index
    %22 = vector.load %arg7[%c0_11, %c0_12] : memref<1x256xi32, #tpu.memory_space<vmem>>, vector<1x256xi32>
    %23 = vector.broadcast %22 : vector<1x256xi32> to vector<512x256xi32>
    %24 = vector.broadcast %18 : vector<512x1xi32> to vector<512x256xi32>
    %25 = arith.cmpi eq, %23, %24 : vector<512x256xi32>
    %26 = arith.extui %25 : vector<512x256xi1> to vector<512x256xi32>
    %27 = arith.sitofp %26 : vector<512x256xi32> to vector<512x256xf32>
    %28 = arith.truncf %27 : vector<512x256xf32> to vector<512x256xbf16>
    %c0_13 = arith.constant 0 : index
    %c0_14 = arith.constant 0 : index
    %29 = vector.load %arg8[%c0_13, %c0_14] : memref<256x384xbf16, #tpu.memory_space<vmem>>, vector<256x384xbf16>
    %cst = arith.constant dense<0.000000e+00> : vector<512x384xf32>
    %30 = tpu.matmul %28, %29, %cst {dimension_numbers = #tpu.dot_dimension_numbers<[1], [0], [0], [1], [0, 0, 1, 1], [], []>} : vector<512x256xbf16>, vector<256x384xbf16>, vector<512x384xf32> -> vector<512x384xf32>
    %31 = arith.truncf %30 : vector<512x384xf32> to vector<512x384xbf16>
    %c0_15 = arith.constant 0 : index
    %c0_16 = arith.constant 0 : index
    %32 = vector.load %arg6[%c0_15, %c0_16] : memref<128x1xi32, #tpu.memory_space<vmem>>, vector<128x1xi32>
    %33 = vector.broadcast %32 : vector<128x1xi32> to vector<128x512xi32>
    %34 = vector.broadcast %19 : vector<1x512xi32> to vector<128x512xi32>
    %35 = arith.cmpi eq, %33, %34 : vector<128x512xi32>
    %c0_17 = arith.constant 0 : index
    %c0_18 = arith.constant 0 : index
    %36 = vector.load %arg12[%c0_17, %c0_18] : memref<128x128xf32, #tpu.memory_space<vmem>>, vector<128x128xf32>
    %c0_i32_19 = arith.constant 0 : i32
    %37 = vector.broadcast %c0_i32_19 : i32 to vector<1x512xi32>
    %38 = arith.cmpi eq, %20, %37 : vector<1x512xi32>
    %39 = vector.broadcast %38 : vector<1x512xi1> to vector<128x512xi1>
    %40 = arith.andi %35, %39 : vector<128x512xi1>
    %cst_20 = arith.constant 0.000000e+00 : f32
    %41 = vector.shape_cast %21 : vector<1x512xf32> to vector<1x512xf32>
    %42 = vector.broadcast %41 : vector<1x512xf32> to vector<128x512xf32>
    %43 = vector.broadcast %cst_20 : f32 to vector<128x512xf32>
    %44 = arith.select %40, %42, %43 : vector<128x512xi1>, vector<128x512xf32>
    %45 = arith.truncf %44 : vector<128x512xf32> to vector<128x512xbf16>
    %46 = vector.extract_strided_slice %31 {offsets = [0, 0], sizes = [512, 128], strides = [1, 1]} : vector<512x384xbf16> to vector<512x128xbf16>
    %cst_21 = arith.constant dense<0.000000e+00> : vector<128x128xf32>
    %47 = tpu.matmul %45, %46, %cst_21 {dimension_numbers = #tpu.dot_dimension_numbers<[1], [0], [0], [1], [0, 0, 1, 1], [], []>} : vector<128x512xbf16>, vector<512x128xbf16>, vector<128x128xf32> -> vector<128x128xf32>
    %48 = arith.addf %36, %47 : vector<128x128xf32>
    %c1_i32_22 = arith.constant 1 : i32
    %49 = vector.broadcast %c1_i32_22 : i32 to vector<1x512xi32>
    %50 = arith.cmpi eq, %20, %49 : vector<1x512xi32>
    %51 = vector.broadcast %50 : vector<1x512xi1> to vector<128x512xi1>
    %52 = arith.andi %35, %51 : vector<128x512xi1>
    %cst_23 = arith.constant 0.000000e+00 : f32
    %53 = vector.shape_cast %21 : vector<1x512xf32> to vector<1x512xf32>
    %54 = vector.broadcast %53 : vector<1x512xf32> to vector<128x512xf32>
    %55 = vector.broadcast %cst_23 : f32 to vector<128x512xf32>
    %56 = arith.select %52, %54, %55 : vector<128x512xi1>, vector<128x512xf32>
    %57 = arith.truncf %56 : vector<128x512xf32> to vector<128x512xbf16>
    %58 = vector.extract_strided_slice %31 {offsets = [0, 128], sizes = [512, 128], strides = [1, 1]} : vector<512x384xbf16> to vector<512x128xbf16>
    %cst_24 = arith.constant dense<0.000000e+00> : vector<128x128xf32>
    %59 = tpu.matmul %57, %58, %cst_24 {dimension_numbers = #tpu.dot_dimension_numbers<[1], [0], [0], [1], [0, 0, 1, 1], [], []>} : vector<128x512xbf16>, vector<512x128xbf16>, vector<128x128xf32> -> vector<128x128xf32>
    %60 = arith.addf %48, %59 : vector<128x128xf32>
    %c2_i32 = arith.constant 2 : i32
    %61 = vector.broadcast %c2_i32 : i32 to vector<1x512xi32>
    %62 = arith.cmpi eq, %20, %61 : vector<1x512xi32>
    %63 = vector.broadcast %62 : vector<1x512xi1> to vector<128x512xi1>
    %64 = arith.andi %35, %63 : vector<128x512xi1>
    %cst_25 = arith.constant 0.000000e+00 : f32
    %65 = vector.shape_cast %21 : vector<1x512xf32> to vector<1x512xf32>
    %66 = vector.broadcast %65 : vector<1x512xf32> to vector<128x512xf32>
    %67 = vector.broadcast %cst_25 : f32 to vector<128x512xf32>
    %68 = arith.select %64, %66, %67 : vector<128x512xi1>, vector<128x512xf32>
    %69 = arith.truncf %68 : vector<128x512xf32> to vector<128x512xbf16>
    %70 = vector.extract_strided_slice %31 {offsets = [0, 256], sizes = [512, 128], strides = [1, 1]} : vector<512x384xbf16> to vector<512x128xbf16>
    %cst_26 = arith.constant dense<0.000000e+00> : vector<128x128xf32>
    %71 = tpu.matmul %69, %70, %cst_26 {dimension_numbers = #tpu.dot_dimension_numbers<[1], [0], [0], [1], [0, 0, 1, 1], [], []>} : vector<128x512xbf16>, vector<512x128xbf16>, vector<128x128xf32> -> vector<128x128xf32>
    %72 = arith.addf %60, %71 : vector<128x128xf32>
    %c0_27 = arith.constant 0 : index
    %c0_28 = arith.constant 0 : index
    %73 = vector.load %arg12[%c0_27, %c0_28] : memref<128x128xf32, #tpu.memory_space<vmem>>, vector<128x128xf32>
    tpu.vector_store %arg12[%c0_27, %c0_28], %72 {strides = array<i32>} : memref<128x128xf32, #tpu.memory_space<vmem>>, vector<128x128xf32>,
    %74 = arith.extui %15 : i1 to i32
    %c0_i32_29 = arith.constant 0 : i32
    %75 = arith.cmpi ne, %74, %c0_i32_29 : i32
    scf.if %75 {
      %c0_30 = arith.constant 0 : index
      %c0_31 = arith.constant 0 : index
      %76 = vector.load %arg12[%c0_30, %c0_31] : memref<128x128xf32, #tpu.memory_space<vmem>>, vector<128x128xf32>
      %cst_32 = arith.constant 0.000000e+00 : f32
      %77 = vector.broadcast %cst_32 : f32 to vector<128x128xf32>
      %78 = arith.maximumf %76, %77 : vector<128x128xf32>
      %c0_33 = arith.constant 0 : index
      %c0_34 = arith.constant 0 : index
      %79 = vector.load %arg11[%c0_33, %c0_34] : memref<128x128xf32, #tpu.memory_space<vmem>>, vector<128x128xf32>
      tpu.vector_store %arg11[%c0_33, %c0_34], %78 {strides = array<i32>} : memref<128x128xf32, #tpu.memory_space<vmem>>, vector<128x128xf32>,
    } else {
    }
    return
  }
  func.func @transform_0(%arg0: i32, %arg1: memref<5xi32, #tpu.memory_space<smem>>) -> (i32, i32) {
    %c0_i32 = arith.constant 0 : i32
    %c0_i32_0 = arith.constant 0 : i32
    return %arg0, %c0_i32 : i32, i32
  }
  func.func @transform_1(%arg0: i32, %arg1: memref<5xi32, #tpu.memory_space<smem>>) -> (i32, i32) {
    %c0_i32 = arith.constant 0 : i32
    %c0_i32_0 = arith.constant 0 : i32
    return %c0_i32, %arg0 : i32, i32
  }
  func.func @transform_2(%arg0: i32, %arg1: memref<5xi32, #tpu.memory_space<smem>>) -> (i32, i32) {
    %c0_i32 = arith.constant 0 : i32
    %c0_i32_0 = arith.constant 0 : i32
    return %c0_i32, %arg0 : i32, i32
  }
  func.func @transform_3(%arg0: i32, %arg1: memref<5xi32, #tpu.memory_space<smem>>) -> (i32, i32) {
    %c0_i32 = arith.constant 0 : i32
    %c0_i32_0 = arith.constant 0 : i32
    return %c0_i32, %arg0 : i32, i32
  }
  func.func @transform_4(%arg0: i32, %arg1: memref<5xi32, #tpu.memory_space<smem>>) -> (i32, i32) {
    %0 = arith.index_cast %arg0 : i32 to index
    %1 = memref.load %arg1[%0] : memref<5xi32, #tpu.memory_space<smem>>
    %c0_i32 = arith.constant 0 : i32
    %c0_i32_0 = arith.constant 0 : i32
    return %1, %c0_i32 : i32, i32
  }
  func.func @transform_5(%arg0: i32, %arg1: memref<5xi32, #tpu.memory_space<smem>>) -> (i32, i32) {
    %c0_i32 = arith.constant 0 : i32
    %c0_i32_0 = arith.constant 0 : i32
    %c0_i32_1 = arith.constant 0 : i32
    return %c0_i32, %c0_i32_0 : i32, i32
  }
  func.func @transform_6(%arg0: i32, %arg1: memref<5xi32, #tpu.memory_space<smem>>) -> (i32, i32) {
    %c0_i32 = arith.constant 0 : i32
    %c0_i32_0 = arith.constant 0 : i32
    %c0_i32_1 = arith.constant 0 : i32
    return %c0_i32, %c0_i32_0 : i32, i32
  }
  func.func @transform_7(%arg0: i32, %arg1: memref<5xi32, #tpu.memory_space<smem>>) -> (i32, i32) {
    %0 = arith.index_cast %arg0 : i32 to index
    %1 = memref.load %arg1[%0] : memref<5xi32, #tpu.memory_space<smem>>
    %c0_i32 = arith.constant 0 : i32
    %c0_i32_0 = arith.constant 0 : i32
    return %1, %c0_i32 : i32, i32
  }
  func.func @transform_8(%arg0: i32, %arg1: memref<5xi32, #tpu.memory_space<smem>>) -> (i32, i32) {
    %c0_i32 = arith.constant 0 : i32
    %c0_i32_0 = arith.constant 0 : i32
    %c0_i32_1 = arith.constant 0 : i32
    return %c0_i32, %c0_i32_0 : i32, i32
  }
  func.func @transform_9(%arg0: i32, %arg1: memref<5xi32, #tpu.memory_space<smem>>) -> (i32, i32) {
    %0 = arith.index_cast %arg0 : i32 to index
    %1 = memref.load %arg1[%0] : memref<5xi32, #tpu.memory_space<smem>>
    %c0_i32 = arith.constant 0 : i32
    %c0_i32_0 = arith.constant 0 : i32
    return %1, %c0_i32 : i32, i32
  }
}

</mosaic_0001>

<bundles_post_ra>
// kernel: ne.0
= control target key start
LH: loop header
LB: loop body
LE: loop exit
PB: predicated region body
PF: predicated region fallthrough
CT: control target
= control target key end

     0   :  { %s68_s0 = inlined_call_operand.<no memory space> [shape: s32[], index: 0, kind: input, shape index: {}]   ;;  %s69_s1 = inlined_call_operand.hbm [shape: s32[1200], index: 1, kind: output, shape index: {}]  }
   0x1   :  { %v2_v0 = vstv %s68_s0 }
   0x2   :  { %3 = vsyncpa [#allocation1], 0  ;;  %4 = vst [vmem:[#allocation0] sm:$0xff] %v2_v0  ;;  %s42_s0 = smov [#allocation0]  }
   0x3   :  { %6 = vst [vmem:[#allocation0 + $0x8] sm:$0xff] %v2_v0  ;;  %s11_s8 = sshll.u32 %s42_s0, 4  ;;  %s12_s8 = int_to_ptr.vmem [resolvable:$true] %s11_s8 }
   0x4   :  { %s18_s9 = scalar_lea.vmem %s12_s8, 256  ;;  %p23_p1 = scmp.lt.s32.totalorder %s12_s8, %s12_s8 }
   0x5   :  { %p19_p0 = scmp.ne.s32.totalorder %s12_s8, %s18_s9  ;;  %p24_p2 = scmp.lt.s32.totalorder %s18_s9, %s18_s9 }
   0x7   :  { %p25_p3 = por %p24_p2, %p23_p1 }
   0x9   :  { %p26_p4 = pnand %p25_p3, %p19_p0 }
   0xb   :  { %29 = shalt.err (!%p26_p4)
}
   0xc   :  { %s30_s12 = scalar_lea.hbm %s69_s1, 256 }
   0xd   :  { %p31_p5 = scmp.ne.s32.totalorder %s69_s1, %s30_s12  ;;  %p34_p6 = scmp.lt.u32.totalorder %s30_s12, %s69_s1 }
   0xf   :  { %p36_p7 = pnand %p34_p6, %p31_p5 }
  0x11   :  { %39 = shalt.err (!%p36_p7)
}
  0x12   :  { %14 = dma.vmem_to_hbm [thread:$0]  %s12_s8, 256, %s69_s1, [#allocation1]  }
  0x13   :  { %40 = dma.done.wait [#allocation1], 256  }
  0x14   :  { %41 = vsyncadd [#allocation1], 4294967040 }
  0x15   :  { %16 = vsyncpa [#allocation1], 1 }

// kernel: custom-call.3
= control target key start
LH: loop header
LB: loop body
LE: loop exit
PB: predicated region body
PF: predicated region fallthrough
CT: control target
= control target key end

     0   :  { %s6_s0 = inlined_call_operand.hbm [shape: u32[2], index: 0, kind: output, shape index: {}]  }

// kernel: custom-call.1
= control target key start
LH: loop header
LB: loop body
LE: loop exit
PB: predicated region body
PF: predicated region fallthrough
CT: control target
= control target key end

     0   :  { %s6_s0 = inlined_call_operand.hbm [shape: u32[5], index: 0, kind: output, shape index: {}]  }

// kernel: rgcn_forward.2
= control target key start
LH: loop header
LB: loop body
LE: loop exit
PB: predicated region body
PF: predicated region fallthrough
CT: control target
= control target key end

     0   :  { %s2022_s0 = inlined_call_operand.hbm [shape: bf16[256,128], index: 0, kind: input, shape index: {}]   ;;  %s2023_s1 = inlined_call_operand.hbm [shape: bf16[4,128,256], index: 1, kind: input, shape index: {}]   ;;  %s2024_s2 = inlined_call_operand.hbm [shape: bf16[256,512], index: 2, kind: output, shape index: {}]  }
   0x1   :  { %2036 = sst [smem:[#allocation17_spill]] %s2022_s0 }
   0x2   :  { %2037 = sst [smem:[#allocation18_spill]] %s2024_s2 }
   0x3   :  { %7 = vsyncpa [#allocation3], 0 }
   0x4   :  { %9 = vsyncpa [#allocation3 + $0x1], 0 }
   0x5   :  { %10 = vsyncpa [#allocation6], 0 }
   0x6   :  { %12 = vsyncpa [#allocation6 + $0x1], 0 }
   0x7   :  { %13 = vsyncpa [#allocation4], 0 }
   0x8   :  { %15 = vsyncpa [#allocation4 + $0x1], 0  ;;  %s1542_s9 = smov 0   ;;  %s1544_s10 = smov 0  }
   0x9   :  { %s1546_s11 = smov 0   ;;  %s1548_s12 = smov 0  }
   0xa   :  { %s1550_s13 = smov 0   ;;  %s1552_s14 = smov 0  }
   0xb   :  { %s1554_s15 = smov 0   ;;  %s1556_s16 = smov 0  }
   0xc   :  { %s1558_s17 = smov 0   ;;  %s1560_s18 = smov 0  }
   0xd   :  { %s1562_s19 = smov 0   ;;  %s1564_s20 = smov 0  }
   0xe   :  { %s1566_s21 = smov 0   ;;  %s1568_s22 = smov 0  }
   0xf LB: > { %2038 = sst [smem:[#allocation11_spill]] %s1502_s19  ;;  %s909_s23 = sadd.s32 4294967295, %s1514_s22   ;;  %s1514_s22 = sphi %s1568_s22, %s21_s22   ;;  %s1510_s21 = sphi %s1566_s21, %s2072_s21   ;;  %s1506_s20 = sphi %s1564_s20, %s2083_s20   ;;  %s1502_s19 = sphi %s1562_s19, %s2070_s19   ;;  %s1498_s18 = sphi %s1560_s18, %s2082_s18   ;;  %s1494_s17 = sphi %s1558_s17, %s2081_s17   ;;  %s1490_s16 = sphi %s1556_s16, %s2080_s16   ;;  %s1486_s15 = sphi %s1554_s15, %s2079_s15   ;;  %s1482_s14 = sphi %s1552_s14, %s2078_s14   ;;  %s1478_s13 = sphi %s1550_s13, %s2077_s13   ;;  %s1474_s12 = sphi %s1548_s12, %s2076_s12   ;;  %s1470_s11 = sphi %s1546_s11, %s2075_s11   ;;  %s1466_s10 = sphi %s1544_s10, %s2074_s10   ;;  %s1462_s9 = sphi %s1542_s9, %s2073_s9  }
  0x10   : > { %2039 = sst [smem:[#allocation12_spill]] %s1510_s21  ;;  %s33_s24 = sadd.s32 1, %s1510_s21 }
  0x11   : > { %p47_p0 = scmp.ne.s32.totalorder %s1494_s17, %s1490_s16  ;;  %p2026_p1 = scmp.eq.s32.totalorder %s1514_s22, 0 }
  0x12   : > { %p53_p2 = scmp.ne.s32.totalorder %s1490_s16, %s1486_s15  ;;  %p1617_p3 = scmp.eq.s32.totalorder %s909_s23, 0 }
  0x13   : > { %p1621_p4 = scmp.eq.s32.totalorder %s909_s23, 7  ;;  %p49_p5 = por %p2026_p1, %p47_p0 }
  0x14   : > { %p1629_p6 = por %p1617_p3, %p53_p2  ;;  %p2025_p7 = scmp.lt.s32.totalorder %s1514_s22, 8 }
  0x15   : > { %s2041_s27 = scalar_select %p1621_p4, 1, 0 }
  0x16   : > { %s2042_s28 = scalar_select %p1629_p6, 1, 0 }
  0x17   : > { %s131_s29 = sand.u32 1, %s1494_s17   ;;  %s985_s30 = sshll.u32 %s1510_s21, 10 }
  0x18   : > { %s913_s3 = sshll.u32 %s131_s29, 6  ;;  %s2043_s0 = sld [smem:[#allocation17_spill]] }
  0x19   : > { %s135_s7 = scalar_lea.vmem [#allocation2], %s913_s3  ;;  %p1643_p8 = pnand %p2025_p7, %p49_p5 }
  0x1a   : > { %s142_s8 = sshll.u32 %s135_s7, 4  ;;  %s1649_s23 = scalar_lea.sflag [#allocation3], %s131_s29  ;;  %s1647_s8 = int_to_ptr.vmem [resolvable:$true] %s142_s8 }
  0x1b   : > { %p1306_p10 = pneg %p1643_p8 }
  0x1e   : > { %s1639_s6 = scalar_lea.hbm %s2043_s0, %s985_s30  ;;  %s1309_s5 = scalar_lea.hbm %s2043_s0, 2048 }
  0x1f   : > { %s1304_s4 = scalar_lea.hbm %s1639_s6, 1024  ;;  %p1310_p13 = scmp.lt.u32.totalorder %s1639_s6, %s2043_s0 }
  0x20   : > { %p1305_p9 = scmp.ne.s32.totalorder %s1639_s6, %s1304_s4  ;;  %p1311_p0 = scmp.lt.u32.totalorder %s1309_s5, %s1304_s4 }
  0x21   : > { %p1313_p5 = scmp.lt.u32.totalorder %s1304_s4, %s1639_s6 }
  0x22   : > { %p1307_p11 = pnand %p1306_p10, %p1305_p9  ;;  %p1312_p2 = por %p1311_p0, %p1310_p13 }
  0x24   : > { %p1308_p12 = pneg %p1307_p11  ;;  %p1314_p7 = por %p1313_p5, %p1312_p2 }
  0x26   : > { %p1315_p1 = pnand %p1314_p7, %p1308_p12 }
  0x28   : > { %1318 = shalt.err (!%p1315_p1)
}
  0x29   : > { %s1319_s29 = scalar_lea.vmem %s1647_s8, 1024  ;;  %s1516_s30 = smov [#allocation2]  }
  0x2a   : > { %p1320_p9 = scmp.ne.s32.totalorder %s1647_s8, %s1319_s29  ;;  %s1324_s3 = sshll.u32 %s1516_s30, 4  ;;  %s1325_s3 = int_to_ptr.vmem [resolvable:$false] %s1324_s3 }
  0x2b   : > { %s1326_s25 = scalar_lea.vmem %s1325_s3, 2048  ;;  %p1327_p4 = scmp.lt.s32.totalorder %s1647_s8, %s1325_s3 }
  0x2c   : > { %p1322_p11 = pnand %p1320_p9, %p1306_p10  ;;  %p1328_p13 = scmp.lt.s32.totalorder %s1326_s25, %s1319_s29 }
  0x2e   : > { %p1323_p6 = pneg %p1322_p11  ;;  %p1329_p0 = por %p1328_p13, %p1327_p4 }
  0x30   : > { %p1330_p2 = pnand %p1329_p0, %p1323_p6 }
  0x32   : > { %1333 = shalt.err (!%p1330_p2)
}
  0x33   : > { %s1517_s4 = smov 64   ;;  %s1518_s5 = smov 4  }
  0x34   : > { %1076 = dma.hbm_to_vmem [thread:$0]  (!%p1643_p8), %s1639_s6, 1024, %s1647_s8, %s1649_s23, %s1517_s4, %s1517_s4, %s1518_s5  }
  0x35   : > { %p919_p1 = scmp.ge.s32.totalorder %s1514_s22, 1  ;;  %p171_p4 = scmp.lt.s32.totalorder %s1514_s22, 9 }
  0x36   : > { %s910_s29 = sadd.s32 4294967294, %s1514_s22   ;;  %s30_s30 = sadd.s32 1, %s1506_s20 }
  0x37   : > { %p1679_p6 = pnand %p919_p1, %p171_p4  ;;  %s66_s3 = sadd.s32 1, %s1482_s14 }
  0x38   : > { %p31_p7 = scmp.ge.s32.totalorder %s30_s30, 4  ;;  %p73_p10 = scmp.ne.s32.totalorder %s1482_s14, %s1478_s13 }
  0x39   : > { %p79_p12 = scmp.ne.s32.totalorder %s1478_s13, %s1474_s12  ;;  %s94_s15 = sadd.s32 1, %s1470_s11 }
  0x3a   : > { %s2085_s30 = smov (%p31_p7, %s30_s30), 0  ;;  %s2087_s24 = smov (!%p31_p7, %s33_s24), %s1510_s21 }
  0x3b   : > { %2046 = sst [smem:[#allocation13_spill]] %s2085_s30  ;;  %s63_s6 = ssub.s32 %s1506_s20, %s2085_s30 }
  0x3c   : > { %p2047_p8 = scmp.eq.s32.totalorder %s1514_s22, 0  ;;  %p35_p9 = scmp.ge.s32.totalorder %s2087_s24, 2 }
  0x3d   : > { %p64_p11 = scmp.eq.s32.totalorder %s63_s6, 0  ;;  %p1706_p13 = por %p79_p12, %p1617_p3 }
  0x3e   : > { %p1700_p5 = por %p73_p10, %p2047_p8  ;;  %p104_p0 = scmp.ne.s32.totalorder %s1470_s11, %s1466_s10 }
  0x3f   : > { %s2049_s12 = scalar_select %p1706_p13, 1, 0 }
  0x40   : > { %s2089_s24 = smov (%p35_p9, %s2087_s24), 0  ;;  %p2052_p2 = scmp.ne.s32.totalorder %s2041_s27, 0 }
  0x41   : > { %2050 = sst [smem:[#allocation14_spill]] %s2089_s24  ;;  %s37_s25 = ssub.s32 %s1510_s21, %s2089_s24 }
  0x42   : > { %s1715_s23 = scalar_select %p64_p11, %s1482_s14, %s66_s3  }
  0x43   : > { %p1721_p1 = por %p2052_p2, %p104_p0  ;;  %p38_p4 = scmp.eq.s32.totalorder %s37_s25, 0 }
  0x44   : > { %2051 = sst [smem:[#allocation15_spill]] %s1715_s23  ;;  %s91_s26 = sor.u32 %s63_s6, %s37_s25 }
  0x45   : > { %s2053_s4 = scalar_select %p1721_p1, 1, 0 }
  0x46   : > { %p92_p3 = scmp.eq.s32.totalorder %s91_s26, 0  ;;  %p110_p7 = scmp.ne.s32.totalorder %s1466_s10, %s1462_s9 }
  0x47   : > { %2054 = sst [smem:[#allocation16_spill]] %s2053_s4  ;;  %s2055_s5 = sadd.s32 1, %s1494_s17 }
  0x48   : > { %s1730_s0 = scalar_select %p38_p4, %s1494_s17, %s2055_s5  }
  0x49   : > { %s1733_s30 = scalar_select %p92_p3, %s1470_s11, %s94_s15  }
  0x4a   : > { %p111_p10 = scmp.eq.s32.totalorder %s910_s29, 7  ;;  %s152_s3 = sand.u32 1, %s1482_s14  }
  0x4b   : > { %s916_s23 = sshll.u32 %s152_s3, 7  ;;  %s986_s24 = sshll.u32 %s1506_s20, 11 }
  0x4c   : > { %p1736_p12 = por %p111_p10, %p110_p7  ;;  %s156_s21 = scalar_lea.vmem [#allocation5], %s916_s23 }
  0x4d   : > { %s163_s2 = sshll.u32 %s156_s21, 4  ;;  %s1744_s6 = scalar_lea.hbm %s2023_s1, %s986_s24  ;;  %s1746_s2 = int_to_ptr.vmem [resolvable:$true] %s163_s2 }
  0x4e   : > { %s2056_s27 = scalar_select %p1736_p12, 1, 0 }
  0x4f   : > { %p2057_p8 = scmp.lt.s32.totalorder %s1514_s22, 8  ;;  %s1756_s21 = scalar_lea.sflag [#allocation6], %s152_s3 }
  0x50   : > { %s1334_s15 = scalar_lea.hbm %s1744_s6, 2048  ;;  %s1339_s8 = scalar_lea.hbm %s2023_s1, 8192 }
  0x51   : > { %p1752_p9 = pnand %p2057_p8, %p1700_p5  ;;  %p1335_p11 = scmp.ne.s32.totalorder %s1744_s6, %s1334_s15 }
  0x52   : > { %p1340_p5 = scmp.lt.u32.totalorder %s1744_s6, %s2023_s1  ;;  %p1341_p3 = scmp.lt.u32.totalorder %s1339_s8, %s1334_s15 }
  0x53   : > { %p1336_p0 = pneg %p1752_p9  ;;  %p1343_p10 = scmp.lt.u32.totalorder %s1334_s15, %s1744_s6 }
  0x54   : > { %p1342_p7 = por %p1341_p3, %p1340_p5 }
  0x55   : > { %p1337_p2 = pnand %p1336_p0, %p1335_p11 }
  0x56   : > { %p1344_p8 = por %p1343_p10, %p1342_p7 }
  0x57   : > { %p1338_p4 = pneg %p1337_p2 }
  0x59   : > { %p1345_p12 = pnand %p1344_p8, %p1338_p4 }
  0x5b   : > { %1348 = shalt.err (!%p1345_p12)
}
  0x5c   : > { %s1349_s4 = scalar_lea.vmem %s1746_s2, 2048  ;;  %s1519_s26 = smov [#allocation5]  }
  0x5d   : > { %p1350_p11 = scmp.ne.s32.totalorder %s1746_s2, %s1349_s4  ;;  %s1354_s5 = sshll.u32 %s1519_s26, 4  ;;  %s1355_s5 = int_to_ptr.vmem [resolvable:$false] %s1354_s5 }
  0x5e   : > { %s1356_s3 = scalar_lea.vmem %s1355_s5, 4096  ;;  %p1357_p13 = scmp.lt.s32.totalorder %s1746_s2, %s1355_s5 }
  0x5f   : > { %p1352_p2 = pnand %p1350_p11, %p1336_p0  ;;  %p1358_p5 = scmp.lt.s32.totalorder %s1356_s3, %s1349_s4 }
  0x61   : > { %p1353_p1 = pneg %p1352_p2  ;;  %p1359_p3 = por %p1358_p5, %p1357_p13 }
  0x63   : > { %p1360_p7 = pnand %p1359_p3, %p1353_p1 }
  0x65   : > { %1363 = shalt.err (!%p1360_p7)
}
  0x66   : > { %s1520_s15 = smov 128   ;;  %s1521_s19 = smov 8  }
  0x67   : > { %1079 = dma.hbm_to_vmem [thread:$0]  (!%p1752_p9), %s1744_s6, 2048, %s1746_s2, %s1756_s21, %s1520_s15, %s1520_s15, %s1521_s19  }
  0x68   : > { %175 = sbr.rel (%p1679_p6) target bundleno = 572 (0x23c), region = 28  ;;  %s177_s24 = sand.u32 (!%p1679_p6), 1, %s1490_s16  }
  0x69   : > { %s920_s8 = sshll.u32 (!%p1679_p6), %s177_s24, 6  ;;  %s178_s23 = scalar_lea.sflag (!%p1679_p6), [#allocation3], %s177_s24 }
  0x6a   : > { %s1787_s25 = scalar_lea.vmem (!%p1679_p6), [#allocation2], %s920_s8  ;;  %p2059_p13 = scmp.ne.s32.totalorder (!%p1679_p6), %s2042_s28, 0 }
  0x6f   : > { %1449 = dma.done.wait (%p2059_p13), %s178_s23, 1024  }
  0x70   : > { %1451 = vsyncadd (%p2059_p13), %s178_s23, 4294966272  ;;  %s186_s4 = sand.u32 1, %s1478_s13   ;;  %p2060_p6 = scmp.ne.s32.totalorder %s2049_s12, 0 }
  0x71   : > { %s921_s29 = sshll.u32 %s186_s4, 7  ;;  %s187_s2 = scalar_lea.sflag [#allocation6], %s186_s4 }
  0x72   : > { %s1794_s6 = scalar_lea.vmem [#allocation5], %s921_s29 }
  0x73   : > { %1453 = dma.done.wait (%p2060_p6), %s187_s2, 2048  }
  0x74   : > { %1455 = vsyncadd (%p2060_p6), %s187_s2, 4294965248  ;;  %v1522_v0 = vmov 0   ;;  %v1208_v1 = vld [vmem:[%s1794_s6 + $0x4] ss:$8 sps:$4 sm:$0xff]   ;;  %v1210_v2 = vld [vmem:[%s1794_s6] ss:$8 sps:$4 sm:$0xff]  }
  0x75   : > { %411 = vmatprep.mubr.bf16.mxu0 %v1522_v0  ;;  %451 = vmatprep.mubr.bf16.mxu1 %v1522_v0  ;;  %v1211_v3 = vld [vmem:[%s1794_s6 + $0x14] ss:$8 sps:$4 sm:$0xff]   ;;  %v1213_v4 = vld [vmem:[%s1794_s6 + $0x10] ss:$8 sps:$4 sm:$0xff]   ;;  %v1214_v5 = vld [vmem:[%s1794_s6 + $0x24] ss:$8 sps:$4 sm:$0xff]  }
  0x76   : > { %1206 = vset.pattern.permute.xlu0 %v1522_v0  ;;  %1207 = vset.pattern.permute.xlu1 %v1522_v0  ;;  %v1216_v6 = vld [vmem:[%s1794_s6 + $0x20] ss:$8 sps:$4 sm:$0xff]   ;;  %v1217_v7 = vld [vmem:[%s1794_s6 + $0x34] ss:$8 sps:$4 sm:$0xff]   ;;  %v1219_v8 = vld [vmem:[%s1794_s6 + $0x30] ss:$8 sps:$4 sm:$0xff]  }
  0x77   : > { %379 = vmatprep.subr.bf16.mxu0 %v1208_v1  ;;  %1051 = vmatprep.subr.bf16.mxu1 %v1208_v1  ;;  %v1220_v9 = vld [vmem:[%s1794_s6 + $0x44] ss:$8 sps:$4 sm:$0xff]   ;;  %v1222_v10 = vld [vmem:[%s1794_s6 + $0x40] ss:$8 sps:$4 sm:$0xff]   ;;  %v1223_v11 = vld [vmem:[%s1794_s6 + $0x54] ss:$8 sps:$4 sm:$0xff]  }
  0x78   : > { %380 = vmatpush1.bf16.msra.mxu0 %v1210_v2  ;;  %1059 = vmatpush1.bf16.msra.mxu1 %v1210_v2  ;;  %v1225_v12 = vld [vmem:[%s1794_s6 + $0x50] ss:$8 sps:$4 sm:$0xff]   ;;  %v1226_v13 = vld [vmem:[%s1794_s6 + $0x64] ss:$8 sps:$4 sm:$0xff]   ;;  %v1228_v14 = vld [vmem:[%s1794_s6 + $0x60] ss:$8 sps:$4 sm:$0xff]  }
  0x79   : > { %381 = vmatprep.subr.bf16.mxu0 %v1211_v3  ;;  %1052 = vmatprep.subr.bf16.mxu1 %v1211_v3  ;;  %v1229_v15 = vld [vmem:[%s1794_s6 + $0x74] ss:$8 sps:$4 sm:$0xff]   ;;  %v1231_v16 = vld [vmem:[%s1794_s6 + $0x70] ss:$8 sps:$4 sm:$0xff]   ;;  %v1232_v17 = vld [vmem:[%s1787_s25] sm:$0xff]   ;;  %p492_p1 = scmp.lt.s32.totalorder %s1498_s18, 3 }
  0x7a   : > { %v1233_v18 = vld [vmem:[%s1787_s25 + $0x20] sm:$0xff]   ;;  %v1234_v19 = vld [vmem:[%s1787_s25 + $0x8] sm:$0xff]   ;;  %v1236_v21 = vld [vmem:[%s1787_s25 + $0x10] sm:$0xff]   ;;  %s213_s7 = sand.u32 1, %s1466_s10   ;;  %s2063_s26 = sld [smem:[#allocation11_spill]] }
  0x7b   : > { %v1235_v20 = vld [vmem:[%s1787_s25 + $0x28] sm:$0xff]   ;;  %v1237_v22 = vld [vmem:[%s1787_s25 + $0x30] sm:$0xff]   ;;  %v1238_v23 = vld [vmem:[%s1787_s25 + $0x18] sm:$0xff]   ;;  %s589_s28 = scalar_select %p492_p1, 1, 0 }
  0x7c   : > { %382 = vmatpush1.bf16.msra.mxu0 %v1213_v4  ;;  %1060 = vmatpush1.bf16.msra.mxu1 %v1213_v4  ;;  %v1239_v24 = vld [vmem:[%s1787_s25 + $0x38] sm:$0xff]   ;;  %s922_s12 = sshll.u32 %s213_s7, 6  ;;  %s2064_s15 = sld [smem:[#allocation16_spill]] }
  0x7d   : > { %383 = vmatprep.subr.bf16.mxu0 %v1214_v5  ;;  %1053 = vmatprep.subr.bf16.mxu1 %v1214_v5  ;;  %s1911_s21 = scalar_lea.vmem [#allocation7], %s922_s12  ;;  %s2065_s23 = sld [smem:[#allocation18_spill]] }
  0x7e   : > { %s800_s19 = sshll.u32 %s1911_s21, 4  ;;  %s1946_s4 = scalar_lea.sflag [#allocation4], %s213_s7  ;;  %s1933_s19 = int_to_ptr.vmem [resolvable:$true] %s800_s19 }
  0x7f   : > { %s1364_s29 = scalar_lea.vmem %s1933_s19, 1024  ;;  %s1523_s2 = smov [#allocation7]  }
  0x80   : > { %384 = vmatpush1.bf16.msra.mxu0 %v1216_v6  ;;  %1061 = vmatpush1.bf16.msra.mxu1 %v1216_v6  ;;  %v590_v6 = vstv %s589_s28  ;;  %s1003_s5 = sshll.u32 %s2063_s26, 6  ;;  %p1365_p12 = scmp.ne.s32.totalorder %s1933_s19, %s1364_s29 }
  0x81   : > { %385 = vmatprep.subr.bf16.mxu0 %v1217_v7  ;;  %1054 = vmatprep.subr.bf16.mxu1 %v1217_v7  ;;  %vm1865_vm0 = vcmp.eq.s32.totalorder %v590_v6, 1  ;;  %s797_s3 = sadd.s32 %s1498_s18, %s1003_s5  ;;  %s1368_s6 = sshll.u32 %s1523_s2, 4  ;;  %s1369_s6 = int_to_ptr.vmem [resolvable:$false] %s1368_s6 }
  0x82   : > { %s982_s24 = sshll.u32 %s797_s3, 6  ;;  %p2066_p9 = scmp.ne.s32.totalorder %s2064_s15, 0 }
  0x83   : > { %s1941_s25 = scalar_lea.hbm %s2065_s23, %s982_s24  ;;  %s1370_s28 = scalar_lea.vmem %s1369_s6, 2048 }
  0x84   : > { %386 = vmatpush1.bf16.msra.mxu0 %v1219_v8  ;;  %1062 = vmatpush1.bf16.msra.mxu1 %v1219_v8  ;;  %p1366_p0 = pnand %p1365_p12, %p2066_p9  ;;  %p1371_p10 = scmp.lt.s32.totalorder %s1933_s19, %s1369_s6 }
  0x85   : > { %387 = vmatprep.subr.bf16.mxu0 %v1220_v9  ;;  %1055 = vmatprep.subr.bf16.mxu1 %v1220_v9  ;;  %p1372_p8 = scmp.lt.s32.totalorder %s1370_s28, %s1364_s29 }
  0x86   : > { %p1367_p4 = pneg %p1366_p0 }
  0x87   : > { %p1373_p11 = por %p1372_p8, %p1371_p10 }
  0x88   : > { %388 = vmatpush1.bf16.msra.mxu0 %v1222_v10  ;;  %1063 = vmatpush1.bf16.msra.mxu1 %v1222_v10 }
  0x89   : > { %389 = vmatprep.subr.bf16.mxu0 %v1223_v11  ;;  %1056 = vmatprep.subr.bf16.mxu1 %v1223_v11  ;;  %p1374_p2 = pnand %p1373_p11, %p1367_p4 }
  0x8c   : > { %390 = vmatpush1.bf16.msra.mxu0 %v1225_v12  ;;  %1064 = vmatpush1.bf16.msra.mxu1 %v1225_v12 }
  0x8d   : > { %391 = vmatprep.subr.bf16.mxu0 %v1226_v13  ;;  %1057 = vmatprep.subr.bf16.mxu1 %v1226_v13 }
  0x90   : > { %392 = vmatpush1.bf16.msra.mxu0 %v1228_v14  ;;  %1065 = vmatpush1.bf16.msra.mxu1 %v1228_v14 }
  0x91   : > { %393 = vmatprep.subr.bf16.mxu0 %v1229_v15  ;;  %1058 = vmatprep.subr.bf16.mxu1 %v1229_v15 }
  0x94   : > { %394 = vmatpush1.bf16.msra.mxu0 %v1231_v16  ;;  %1066 = vmatpush1.bf16.msra.mxu1 %v1231_v16 }
  0x97   : > { %412 = vmatmul.mubr.bf16.vlgmr.msra.gmra.mrb[0].mxu0 %v1232_v17  ;;  %452 = vmatmul.mubr.bf16.vlgmr.msra.gmra.mrb[0].mxu1 %v1233_v18 }
  0x98   : > { %421 = vmatprep.mubr.bf16.mxu0 %v1522_v0  ;;  %461 = vmatprep.mubr.bf16.mxu1 %v1522_v0 }
  0x9f   : > { %422 = vmatmul.mubr.bf16.gmra.mrb[4].mxu0 %v1234_v19  ;;  %462 = vmatmul.mubr.bf16.gmra.mrb[4].mxu1 %v1235_v20 }
  0xa0   : > { %431 = vmatprep.mubr.bf16.mxu0 %v1522_v0  ;;  %471 = vmatprep.mubr.bf16.mxu1 %v1522_v0 }
  0xa7   : > { %432 = vmatmul.mubr.bf16.gmra.mrb[8].mxu0 %v1236_v21  ;;  %472 = vmatmul.mubr.bf16.gmra.mrb[8].mxu1 %v1237_v22 }
  0xa8   : > { %441 = vmatprep.mubr.bf16.mxu0 %v1522_v0  ;;  %481 = vmatprep.mubr.bf16.mxu1 %v1522_v0 }
  0xaf   : > { %442 = vmatmul.mubr.bf16.gmra.mrb[12].mxu0 %v1238_v23  ;;  %482 = vmatmul.mubr.bf16.gmra.mrb[12].mxu1 %v1239_v24 }
 0x16a   : > { %v1834_v25 = vpop.f32.mrb[0].mxu0  ;;  %v1836_v26 = vpop.f32.mrb[0].mxu1 }
 0x16b   : > { %v415_v27 = vpop.f32.mrb[1].mxu0  ;;  %v455_v28 = vpop.f32.mrb[1].mxu1 }
 0x16c   : > { %v947_v29 = vmul.f32 -1.442695, %v415_v27  ;;  %v955_v30 = vmul.f32 -1.442695, %v455_v28  ;;  %v1838_v31 = vpop.f32.mrb[2].mxu0  ;;  %v1840_v32 = vpop.f32.mrb[2].mxu1 }
 0x16d   : > { %v419_v33 = vpop.f32.mrb[3].mxu0  ;;  %v459_v34 = vpop.f32.mrb[3].mxu1 }
 0x16e   : > { %1240 = vpow2.f32 %v947_v29  ;;  %v948_v35 = vmul.f32 -1.442695, %v419_v33  ;;  %v956_v36 = vmul.f32 -1.442695, %v459_v34 }
 0x16f   : > { %1242 = vpow2.f32 %v955_v30 }
 0x170   : > { %1244 = vpow2.f32 %v948_v35 }
 0x171   : > { %1246 = vpow2.f32 %v956_v36 }
 0x172   : > { %v1842_v37 = vpop.f32.mrb[4].mxu0  ;;  %v1844_v38 = vpop.f32.mrb[4].mxu1 }
 0x173   : > { %v425_v39 = vpop.f32.mrb[5].mxu0  ;;  %v465_v40 = vpop.f32.mrb[5].mxu1 }
 0x174   : > { %v949_v41 = vmul.f32 -1.442695, %v425_v39  ;;  %v1846_v42 = vpop.f32.mrb[6].mxu0  ;;  %v957_v43 = vmul.f32 -1.442695, %v465_v40  ;;  %v1848_v44 = vpop.f32.mrb[6].mxu1 }
 0x175   : > { %v429_v45 = vpop.f32.mrb[7].mxu0  ;;  %v469_v46 = vpop.f32.mrb[7].mxu1 }
 0x176   : > { %1248 = vpow2.f32 %v949_v41  ;;  %v950_v47 = vmul.f32 -1.442695, %v429_v45  ;;  %v958_v48 = vmul.f32 -1.442695, %v469_v46 }
 0x177   : > { %1250 = vpow2.f32 %v957_v43 }
 0x178   : > { %v1241_v49 = vpop.eup %1240  ;;  %1252 = vpow2.f32 %v950_v47 }
 0x179   : > { %v1243_v50 = vpop.eup %1242  ;;  %v541_v51 = vadd.f32 1.0, %v1241_v49  ;;  %1254 = vpow2.f32 %v958_v48 }
 0x17a   : > { %v1245_v52 = vpop.eup %1244  ;;  %v549_v53 = vadd.f32 1.0, %v1243_v50  ;;  %v1851_v54 = vpop.f32.mrb[8].mxu0 }
 0x17b   : > { %v1853_v55 = vpop.f32.mrb[8].mxu1  ;;  %v1247_v56 = vpop.eup %1246  ;;  %1256 = vrcp.f32 %v541_v51  ;;  %v542_v57 = vadd.f32 1.0, %v1245_v52 }
 0x17c   : > { %v435_v58 = vpop.f32.mrb[9].mxu0  ;;  %v475_v59 = vpop.f32.mrb[9].mxu1  ;;  %1258 = vrcp.f32 %v549_v53  ;;  %v550_v60 = vadd.f32 1.0, %v1247_v56 }
 0x17d   : > { %v951_v61 = vmul.f32 -1.442695, %v435_v58  ;;  %v1855_v62 = vpop.f32.mrb[10].mxu0  ;;  %1260 = vrcp.f32 %v542_v57  ;;  %v959_v0 = vmul.f32 -1.442695, %v475_v59  ;;  %v1859_v1 = vpop.f32.mrb[10].mxu1 }
 0x17e   : > { %v439_v63 = vpop.f32.mrb[11].mxu0  ;;  %1262 = vrcp.f32 %v550_v60  ;;  %v479_v3 = vpop.f32.mrb[11].mxu1 }
 0x17f   : > { %v952_v2 = vmul.f32 -1.442695, %v439_v63  ;;  %1264 = vpow2.f32 %v951_v61  ;;  %v960_v4 = vmul.f32 -1.442695, %v479_v3 }
 0x180   : > { %v1249_v5 = vpop.eup %1248 }
 0x181   : > { %1266 = vpow2.f32 %v952_v2  ;;  %v1251_v7 = vpop.eup %1250  ;;  %v543_v8 = vadd.f32 1.0, %v1249_v5 }
 0x182   : > { %1268 = vpow2.f32 %v959_v0  ;;  %v1253_v9 = vpop.eup %1252  ;;  %v551_v10 = vadd.f32 1.0, %v1251_v7  ;;  %v1861_v11 = vpop.f32.mrb[12].mxu0 }
 0x183   : > { %1270 = vpow2.f32 %v960_v4  ;;  %v1863_v12 = vpop.f32.mrb[12].mxu1  ;;  %v1255_v13 = vpop.eup %1254  ;;  %v544_v14 = vadd.f32 1.0, %v1253_v9 }
 0x184   : > { %1272 = vrcp.f32 %v543_v8  ;;  %v445_v15 = vpop.f32.mrb[13].mxu0  ;;  %v485_v16 = vpop.f32.mrb[13].mxu1  ;;  %v552_v18 = vadd.f32 1.0, %v1255_v13 }
 0x185   : > { %1274 = vrcp.f32 %v551_v10  ;;  %v953_v19 = vmul.f32 -1.442695, %v445_v15  ;;  %v1869_v20 = vpop.f32.mrb[14].mxu0  ;;  %v1257_v21 = vpop.eup %1256  ;;  %v961_v23 = vmul.f32 -1.442695, %v485_v16 }
 0x186   : > { %1276 = vrcp.f32 %v544_v14  ;;  %v449_v22 = vpop.f32.mrb[15].mxu0  ;;  %v1871_v24 = vpop.f32.mrb[14].mxu1  ;;  %v592_v29 = vsel %vm1865_vm0, %v1257_v21, 1.0 }
 0x187   : > { %v1259_v27 = vpop.eup %1258  ;;  %1278 = vrcp.f32 %v552_v18  ;;  %v954_v28 = vmul.f32 -1.442695, %v449_v22  ;;  %v489_v30 = vpop.f32.mrb[15].mxu1  ;;  %610 = vperm.xlu0 %1206, %v592_v29  }
 0x188   : > { %v1261_v33 = vpop.eup %1260  ;;  %1280 = vpow2.f32 %v953_v19  ;;  %v962_v34 = vmul.f32 -1.442695, %v489_v30  ;;  %v600_v43 = vsel %vm1865_vm0, %v1259_v27, 1.0 }
 0x189   : > { %v1263_v35 = vpop.eup %1262  ;;  %1282 = vpow2.f32 %v954_v28  ;;  %v593_v52 = vsel %vm1865_vm0, %v1261_v33, 1.0 }
 0x18a   : > { %v1265_v36 = vpop.eup %1264  ;;  %1284 = vpow2.f32 %v961_v23  ;;  %v601_v39 = vsel %vm1865_vm0, %v1263_v35, 1.0 }
 0x18b   : > { %v1267_v40 = vpop.eup %1266  ;;  %v545_v41 = vadd.f32 1.0, %v1265_v36  ;;  %1286 = vpow2.f32 %v962_v34  ;;  %655 = vperm.xlu1 %1207, %v601_v39   ;;  %650 = vperm.xlu0 %1206, %v600_v43  }
 0x18c   : > { %v1269_v45 = vpop.eup %1268  ;;  %v546_v46 = vadd.f32 1.0, %v1267_v40 }
 0x18d   : > { %v1271_v47 = vpop.eup %1270  ;;  %1288 = vrcp.f32 %v545_v41  ;;  %v553_v48 = vadd.f32 1.0, %v1269_v45 }
 0x18e   : > { %v1273_v49 = vpop.eup %1272  ;;  %1290 = vrcp.f32 %v546_v46  ;;  %v554_v50 = vadd.f32 1.0, %v1271_v47 }
 0x18f   : > { %v1275_v51 = vpop.eup %1274  ;;  %1292 = vrcp.f32 %v553_v48  ;;  %v594_v53 = vsel %vm1865_vm0, %v1273_v49, 1.0  ;;  %615 = vperm.xlu0 %1206, %v593_v52  }
 0x190   : > { %v1277_v56 = vpop.eup %1276  ;;  %620 = vperm.xlu1 %1207, %v594_v53   ;;  %v602_v58 = vsel %vm1865_vm0, %v1275_v51, 1.0  ;;  %1294 = vrcp.f32 %v554_v50 }
 0x191   : > { %v1279_v57 = vpop.eup %1278  ;;  %v595_v63 = vsel %vm1865_vm0, %v1277_v56, 1.0 }
 0x192   : > { %v1281_v59 = vpop.eup %1280  ;;  %v603_v7 = vsel %vm1865_vm0, %v1279_v57, 1.0 }
 0x193   : > { %v1283_v60 = vpop.eup %1282  ;;  %v547_v61 = vadd.f32 1.0, %v1281_v59  ;;  %660 = vperm.xlu0 %1206, %v602_v58  }
 0x194   : > { %v1285_v0 = vpop.eup %1284  ;;  %v548_v2 = vadd.f32 1.0, %v1283_v60  ;;  %625 = vperm.xlu1 %1207, %v595_v63  }
 0x195   : > { %v1287_v3 = vpop.eup %1286  ;;  %1296 = vrcp.f32 %v547_v61  ;;  %v555_v4 = vadd.f32 1.0, %v1285_v0 }
 0x196   : > { %1298 = vrcp.f32 %v548_v2  ;;  %v556_v5 = vadd.f32 1.0, %v1287_v3 }
 0x197   : > { %v1289_v6 = vpop.eup %1288  ;;  %1300 = vrcp.f32 %v555_v4 }
 0x198   : > { %v1291_v8 = vpop.eup %1290  ;;  %665 = vperm.xlu1 %1207, %v603_v7   ;;  %v596_v9 = vsel %vm1865_vm0, %v1289_v6, 1.0  ;;  %1302 = vrcp.f32 %v556_v5 }
 0x199   : > { %v1293_v10 = vpop.eup %1292  ;;  %630 = vperm.xlu0 %1206, %v596_v9   ;;  %v597_v14 = vsel %vm1865_vm0, %v1291_v8, 1.0 }
 0x19a   : > { %v604_v13 = vsel %vm1865_vm0, %v1293_v10, 1.0  ;;  %v1295_v15 = vpop.eup %1294 }
 0x19b   : > { %v605_v18 = vsel %vm1865_vm0, %v1295_v15, 1.0 }
 0x19c   : > { %635 = vperm.xlu1 %1207, %v597_v14  }
 0x19d   : > { %670 = vperm.xlu0 %1206, %v604_v13  }
 0x19f   : > { %v1297_v16 = vpop.eup %1296 }
 0x1a0   : > { %v1299_v19 = vpop.eup %1298  ;;  %675 = vperm.xlu1 %1207, %v605_v18   ;;  %v598_v21 = vsel %vm1865_vm0, %v1297_v16, 1.0 }
 0x1a1   : > { %v1301_v22 = vpop.eup %1300  ;;  %640 = vperm.xlu0 %1206, %v598_v21   ;;  %v599_v27 = vsel %vm1865_vm0, %v1299_v19, 1.0 }
 0x1a2   : > { %v606_v23 = vsel %vm1865_vm0, %v1301_v22, 1.0  ;;  %v1303_v28 = vpop.eup %1302 }
 0x1a3   : > { %v607_v29 = vsel %vm1865_vm0, %v1303_v28, 1.0 }
 0x1a4   : > { %645 = vperm.xlu1 %1207, %v599_v27  }
 0x1a5   : > { %680 = vperm.xlu0 %1206, %v606_v23  }
 0x1a8   : > { %685 = vperm.xlu1 %1207, %v607_v29  }
 0x206   : > { %v611_v30 = vpop.permute.xlu0 %610 }
 0x207   : > { %v688_v43 = vmul.f32 %v611_v30, %v1834_v25 }
 0x20a   : > { %v656_v33 = vpop.permute.xlu1 %655  ;;  %v651_v34 = vpop.permute.xlu0 %650 }
 0x20b   : > { %v697_v35 = vmul.f32 %v656_v33, %v1840_v32  ;;  %v696_v36 = vmul.f32 %v651_v34, %v1836_v26 }
 0x20d   : > { %v1027_v39 = vpack.c.bf16 %v697_v35, %v696_v36 }
 0x20e   : > { %v616_v40 = vpop.permute.xlu0 %615 }
 0x20f   : > { %v621_v41 = vpop.permute.xlu1 %620  ;;  %1047 = vst [vmem:[%s1911_s21 + $0x20] sm:$0xff] %v1027_v39   ;;  %v689_v17 = vmul.f32 %v616_v40, %v1838_v31 }
 0x210   : > { %v690_v26 = vmul.f32 %v621_v41, %v1842_v37 }
 0x211   : > { %v1007_v45 = vpack.c.bf16 %v689_v17, %v688_v43 }
 0x212   : > { %v661_v46 = vpop.permute.xlu0 %660 }
 0x213   : > { %v626_v47 = vpop.permute.xlu1 %625  ;;  %1008 = vst [vmem:[%s1911_s21] sm:$0xff] %v1007_v45   ;;  %v698_v49 = vmul.f32 %v661_v46, %v1844_v38 }
 0x214   : > { %v691_v32 = vmul.f32 %v626_v47, %v1846_v42 }
 0x216   : > { %v1012_v48 = vpack.c.bf16 %v691_v32, %v690_v26 }
 0x217   : > { %v666_v25 = vpop.permute.xlu1 %665 }
 0x218   : > { %1044 = vst [vmem:[%s1911_s21 + $0x8] sm:$0xff] %v1012_v48   ;;  %v699_v50 = vmul.f32 %v666_v25, %v1848_v44  ;;  %v631_v51 = vpop.permute.xlu0 %630 }
 0x219   : > { %v692_v53 = vmul.f32 %v631_v51, %v1851_v54 }
 0x21a   : > { %v1032_v31 = vpack.c.bf16 %v699_v50, %v698_v49 }
 0x21b   : > { %v636_v52 = vpop.permute.xlu1 %635 }
 0x21c   : > { %1048 = vst [vmem:[%s1911_s21 + $0x28] sm:$0xff] %v1032_v31   ;;  %v671_v37 = vpop.permute.xlu0 %670  ;;  %v693_v42 = vmul.f32 %v636_v52, %v1855_v62 }
 0x21d   : > { %v700_v38 = vmul.f32 %v671_v37, %v1853_v55 }
 0x21e   : > { %v1017_v56 = vpack.c.bf16 %v693_v42, %v692_v53 }
 0x21f   : > { %v676_v57 = vpop.permute.xlu1 %675 }
 0x220   : > { %1045 = vst [vmem:[%s1911_s21 + $0x10] sm:$0xff] %v1017_v56   ;;  %v701_v58 = vmul.f32 %v676_v57, %v1859_v1  ;;  %v641_v44 = vpop.permute.xlu0 %640 }
 0x221   : > { %v694_v54 = vmul.f32 %v641_v44, %v1861_v11 }
 0x222   : > { %v1037_v59 = vpack.c.bf16 %v701_v58, %v700_v38 }
 0x223   : > { %v646_v60 = vpop.permute.xlu1 %645 }
 0x224   : > { %1049 = vst [vmem:[%s1911_s21 + $0x30] sm:$0xff] %v1037_v59   ;;  %v695_v62 = vmul.f32 %v646_v60, %v1869_v20  ;;  %v681_v61 = vpop.permute.xlu0 %680 }
 0x225   : > { %v702_v1 = vmul.f32 %v681_v61, %v1863_v12 }
 0x226   : > { %v1022_v55 = vpack.c.bf16 %v695_v62, %v694_v54 }
 0x227   : > { %v686_v63 = vpop.permute.xlu1 %685 }
 0x228   : > { %1046 = vst [vmem:[%s1911_s21 + $0x18] sm:$0xff] %v1022_v55   ;;  %v703_v0 = vmul.f32 %v686_v63, %v1871_v24 }
 0x22a   : > { %v1042_v11 = vpack.c.bf16 %v703_v0, %v702_v1 }
 0x22c   : > { %1050 = vst [vmem:[%s1911_s21 + $0x38] sm:$0xff] %v1042_v11  }
 0x22d   : > { %1377 = shalt.err (!%p1374_p2)
}
 0x22e   : > { %s1378_s7 = scalar_lea.hbm %s1941_s25, 1024  ;;  %s1382_s26 = scalar_lea.hbm %s2065_s23, 8192 }
 0x22f   : > { %p1379_p5 = scmp.ne.s32.totalorder %s1941_s25, %s1378_s7  ;;  %p1383_p13 = scmp.lt.u32.totalorder %s1941_s25, %s2065_s23 }
 0x230   : > { %p1384_p6 = scmp.lt.u32.totalorder %s1382_s26, %s1378_s7  ;;  %p1386_p12 = scmp.lt.u32.totalorder %s1378_s7, %s1941_s25 }
 0x231   : > { %p1380_p3 = pnand %p1379_p5, %p2066_p9 }
 0x232   : > { %p1385_p1 = por %p1384_p6, %p1383_p13 }
 0x233   : > { %p1381_p7 = pneg %p1380_p3 }
 0x234   : > { %p1387_p0 = por %p1386_p12, %p1385_p1 }
 0x236   : > { %p1388_p4 = pnand %p1387_p0, %p1381_p7 }
 0x238   : > { %1391 = shalt.err (!%p1388_p4)
}
 0x239   : > { %s1524_s24 = smov 64   ;;  %s1525_s18 = smov 256  }
 0x23a   : > { %s1526_s8 = smov 4  }
 0x23b   : > { %1071 = dma.vmem_to_hbm [thread:$0]  (%p2066_p9), %s1933_s19, 1024, %s1941_s25, %s1946_s4, %s1524_s24, %s1525_s18, %s1526_s8  }
 0x23c PF: > { %p1085_p10 = scmp.ge.s32.totalorder %s1514_s22, 2  ;;  %s815_s29 = sand.u32 1, %s1462_s9  }
 0x23d   : > { %p2067_p8 = scmp.ne.s32.totalorder %s2056_s27, 0  ;;  %s816_s2 = scalar_lea.sflag [#allocation4], %s815_s29 }
 0x23f   : > { %p1081_p11 = pnand %p1085_p10, %p2067_p8 }
 0x241   : > { %1457 = dma.done.wait (!%p1081_p11), %s816_s2, 1024  }
 0x242   : > { %1459 = vsyncadd (!%p1081_p11), %s816_s2, 4294966272  ;;  %s21_s22 = sadd.s32 1, %s1514_s22   ;;  %s2069_s15 = sld [smem:[#allocation15_spill]] }
 0x243   : > { %p1975_p2 = scmp.ge.s32.totalorder %s21_s22, 10   ;;  %s2070_s19 = sld [smem:[#allocation12_spill]] }
 0x244   : > { %s2071_s27 = sld [smem:[#allocation13_spill]]  ;;  %s2072_s21 = sld [smem:[#allocation14_spill]] }
 0x245   : > { %s2073_s9 = smov %s1466_s10  ;;  %s2074_s10 = smov %s1470_s11 }
 0x246   : > { %s2075_s11 = smov %s1733_s30  ;;  %s2076_s12 = smov %s1478_s13 }
 0x247   : > { %s2077_s13 = smov %s1482_s14  ;;  %s2082_s18 = smov %s1506_s20 }
 0x248   : > { %s2078_s14 = smov %s2069_s15  ;;  %s2079_s15 = smov %s1490_s16 }
 0x249   : > { %s2080_s16 = smov %s1494_s17  ;;  %s2081_s17 = smov %s1730_s0 }
 0x24a   : > { %s2083_s20 = smov %s2071_s27  ;;  %20 = sbr.rel (!%p1975_p2) target bundleno = 15 (0xf), region = 86 }
 0x251   :  { %821 = vsyncpa [#allocation3], 1 }
 0x252   :  { %823 = vsyncpa [#allocation3 + $0x1], 1 }
 0x253   :  { %824 = vsyncpa [#allocation6], 1 }
 0x254   :  { %826 = vsyncpa [#allocation6 + $0x1], 1 }
 0x255   :  { %827 = vsyncpa [#allocation4], 1 }
 0x256   :  { %829 = vsyncpa [#allocation4 + $0x1], 1 }

// kernel: rgcn_forward.3
= control target key start
LH: loop header
LB: loop body
LE: loop exit
PB: predicated region body
PF: predicated region fallthrough
CT: control target
= control target key end

     0   :  { %s10307_s0 = inlined_call_operand.hbm [shape: s32[5], index: 0, kind: input, shape index: {}]   ;;  %s10308_s1 = inlined_call_operand.hbm [shape: s32[2560,1], index: 1, kind: input, shape index: {}]   ;;  %s10309_s2 = inlined_call_operand.hbm [shape: s32[1,2560], index: 2, kind: input, shape index: {}]   ;;  %s10310_s3 = inlined_call_operand.hbm [shape: s32[1,2560], index: 3, kind: input, shape index: {}]   ;;  %s10311_s4 = inlined_call_operand.hbm [shape: f32[1,2560], index: 4, kind: input, shape index: {}]   ;;  %s10312_s5 = inlined_call_operand.hbm [shape: s32[256,1], index: 5, kind: input, shape index: {}]   ;;  %s10313_s6 = inlined_call_operand.hbm [shape: s32[1,256], index: 6, kind: input, shape index: {}]   ;;  %s10314_s7 = inlined_call_operand.hbm [shape: bf16[256,384], index: 7, kind: input, shape index: {}]   ;;  %s10315_s8 = inlined_call_operand.hbm [shape: bf16[256,128], index: 8, kind: input, shape index: {}]   ;;  %s10316_s9 = inlined_call_operand.hbm [shape: f32[1,128], index: 9, kind: input, shape index: {}]   ;;  %s10317_s10 = inlined_call_operand.hbm [shape: f32[256,128], index: 10, kind: output, shape index: {}]  }
   0x1   :  { %10573 = sst [smem:[#allocation126_spill]] %s10309_s2  ;;  %s5568_s15 = scalar_lea.hbm %s10307_s0, 16 }
   0x2   :  { %10574 = sst [smem:[#allocation127_spill]] %s10312_s5  ;;  %p5569_p0 = scmp.ne.s32.totalorder %s10307_s0, %s5568_s15 }
   0x3   :  { %10575 = sst [smem:[#allocation128_spill]] %s10313_s6  ;;  %p5572_p1 = scmp.lt.u32.totalorder %s5568_s15, %s10307_s0 }
   0x4   :  { %10576 = sst [smem:[#allocation129_spill]] %s10315_s8 }
   0x5   :  { %10577 = sst [smem:[#allocation130_spill]] %s10316_s9  ;;  %p5574_p2 = pnand %p5572_p1, %p5569_p0 }
   0x6   :  { %10578 = sst [smem:[#allocation131_spill]] %s10317_s10 }
   0x7   :  { %5577 = shalt.err (!%p5574_p2)  }
   0x8   :  { %s6008_s20 = smov [#allocation4]  }
   0x9   :  { %16 = dma.hbm_to_smem %s10307_s0, 16, %s6008_s20, [#allocation3] }
   0xa   :  { %5922 = dma.done.wait [#allocation3], 16 }
   0xb   :  { %5923 = vsyncadd [#allocation3], 4294967280 }
   0xc   :  { %18 = sfence }
   0xd   :  { %19 = vsyncpa [#allocation6], 0 }
   0xe   :  { %21 = vsyncpa [#allocation6 + $0x1], 0 }
   0xf   :  { %22 = vsyncpa [#allocation9], 0 }
  0x10   :  { %24 = vsyncpa [#allocation9 + $0x1], 0 }
  0x11   :  { %25 = vsyncpa [#allocation12], 0 }
  0x12   :  { %27 = vsyncpa [#allocation12 + $0x1], 0 }
  0x13   :  { %28 = vsyncpa [#allocation15], 0 }
  0x14   :  { %29 = vsyncpa [#allocation18], 0 }
  0x15   :  { %31 = vsyncpa [#allocation18 + $0x1], 0 }
  0x16   :  { %32 = vsyncpa [#allocation7], 0 }
  0x17   :  { %34 = vsyncpa [#allocation7 + $0x1], 0  ;;  %s6096_s23 = smov 0   ;;  %s6098_s24 = smov 0  }
  0x18   :  { %s6100_s25 = smov 0   ;;  %s6102_s0 = smov 0  }
  0x19   :  { %s6104_s26 = smov 0   ;;  %s6106_s27 = smov 0  }
  0x1a   :  { %s6108_s28 = smov 0   ;;  %s6110_s29 = smov 0  }
  0x1b   :  { %s6112_s30 = smov 0   ;;  %s6114_s11 = smov 0  }
  0x1c   :  { %s6116_s12 = smov 0   ;;  %s6118_s13 = smov 0  }
  0x1d   :  { %s6120_s14 = smov 0  }
  0x1e LB: > { %10579 = sst [smem:[#allocation35_spill]] %s5958_s23  ;;  %s6162_s15 = sadd.s32 4294967295, %s6006_s14   ;;  %s6006_s14 = sphi %s6120_s14, %s11399_s14   ;;  %s6002_s13 = sphi %s6118_s13, %s11405_s13   ;;  %s5998_s12 = sphi %s6116_s12, %s11404_s12   ;;  %s5994_s11 = sphi %s6114_s11, %s11403_s11   ;;  %s5990_s30 = sphi %s6112_s30, %s11412_s30   ;;  %s5986_s29 = sphi %s6110_s29, %s11411_s29   ;;  %s5982_s28 = sphi %s6108_s28, %s11410_s28   ;;  %s5978_s27 = sphi %s6106_s27, %s11409_s27   ;;  %s5974_s26 = sphi %s6104_s26, %s11402_s26   ;;  %s5970_s0 = sphi %s6102_s0, %s11401_s0   ;;  %s5966_s25 = sphi %s6100_s25, %s11408_s25   ;;  %s5962_s24 = sphi %s6098_s24, %s11407_s24   ;;  %s5958_s23 = sphi %s6096_s23, %s11400_s23  }
  0x1f   : > { %10580 = sst [smem:[#allocation36_spill]] %s5962_s24  ;;  %s4114_s16 = sadd.s32 4294967294, %s6006_s14  }
  0x20   : > { %10581 = sst [smem:[#allocation37_spill]] %s5970_s0  ;;  %p10328_p3 = scmp.eq.s32.totalorder %s6162_s15, 0 }
  0x21   : > { %10582 = sst [smem:[#allocation38_spill]] %s5974_s26  ;;  %p282_p4 = scmp.ne.s32.totalorder %s5966_s25, %s5962_s24 }
  0x22   : > { %10583 = sst [smem:[#allocation39_spill]] %s5978_s27  ;;  %p10327_p5 = scmp.eq.s32.totalorder %s6162_s15, 4 }
  0x23   : > { %10584 = sst [smem:[#allocation40_spill]] %s5998_s12  ;;  %p288_p6 = scmp.ne.s32.totalorder %s5962_s24, %s5958_s23 }
  0x24   : > { %10585 = sst [smem:[#allocation41_spill]] %s6002_s13  ;;  %p289_p7 = scmp.eq.s32.totalorder %s4114_s16, 4 }
  0x25   : > { %p6173_p8 = por %p10327_p5, %p282_p4  ;;  %p4115_p9 = scmp.ge.s32.totalorder %s6006_s14, 1 }
  0x26   : > { %p6178_p10 = por %p289_p7, %p288_p6  ;;  %p296_p11 = scmp.lt.s32.totalorder %s6006_s14, 6 }
  0x27   : > { %s10586_s17 = scalar_select %p6173_p8, 1, 0 }
  0x28   : > { %s10588_s18 = scalar_select %p6178_p10, 1, 0 }
  0x29   : > { %10587 = sst [smem:[#allocation42_spill]] %s10586_s17  ;;  %p6183_p12 = pnand %p4115_p9, %p296_p11 }
  0x2a   : > { %10589 = sst [smem:[#allocation43_spill]] %s10588_s18  ;;  %s6009_s20 = smov [#allocation14]  }
  0x2b   : > { %s10590_s19 = scalar_select %p6183_p12, 1, 0 }
  0x2c   : > { %s309_s21 = sshll.u32 %s6009_s20, 4  ;;  %p5338_p13 = pneg %p6183_p12  ;;  %s310_s21 = int_to_ptr.vmem [resolvable:$true] %s309_s21 }
  0x2d   : > { %10591 = sst [smem:[#allocation44_spill]] %s10590_s19  ;;  %s6010_s22 = smov [#allocation19]  }
  0x2e   : > { %s333_s16 = sshll.u32 %s6010_s22, 4  ;;  %p6191_p0 = pnand %p5338_p13, %p10328_p3  ;;  %s6195_s16 = int_to_ptr.vmem [resolvable:$true] %s333_s16 }
  0x2f   : > { %s10593_s6 = sld [smem:[#allocation128_spill]] }
  0x30   : > { %s10592_s23 = scalar_select %p6191_p0, 1, 0 }
  0x31   : > { %p6205_p2 = pneg %p6191_p0 }
  0x33   : > { %s10594_s20 = scalar_select %p6205_p2, 1, 0 }
  0x35   : > { %s5578_s17 = scalar_lea.hbm %s10593_s6, 32 }
  0x36   : > { %p5579_p1 = scmp.ne.s32.totalorder %s10593_s6, %s5578_s17  ;;  %p5585_p7 = scmp.lt.u32.totalorder %s5578_s17, %s10593_s6 }
  0x38   : > { %p5581_p4 = pnand %p6205_p2, %p5579_p1 }
  0x3a   : > { %p5582_p6 = pneg %p5581_p4 }
  0x3c   : > { %p5587_p9 = pnand %p5585_p7, %p5582_p6 }
  0x3e   : > { %5590 = shalt.err (!%p5587_p9)
}
  0x3f   : > { %s5591_s10 = scalar_lea.vmem %s310_s21, 32  ;;  %p5599_p3 = scmp.lt.s32.totalorder %s310_s21, %s310_s21 }
  0x40   : > { %p5592_p11 = scmp.ne.s32.totalorder %s310_s21, %s5591_s10  ;;  %p5600_p10 = scmp.lt.s32.totalorder %s5591_s10, %s5591_s10 }
  0x42   : > { %p5594_p13 = pnand %p5592_p11, %p6205_p2  ;;  %p5601_p8 = por %p5600_p10, %p5599_p3 }
  0x44   : > { %p5595_p5 = pneg %p5594_p13 }
  0x46   : > { %p5602_p12 = pnand %p5601_p8, %p5595_p5 }
  0x48   : > { %5605 = shalt.err (!%p5602_p12)
}
  0x49   : > { %5341 = dma.hbm_to_vmem [thread:$0]  (!%p6191_p0), %s10593_s6, 32, %s310_s21, [#allocation15]  }
  0x4a   : > { %s10595_s9 = sld [smem:[#allocation130_spill]] }
  0x50   : > { %s5606_s19 = scalar_lea.hbm %s10595_s9, 16 }
  0x51   : > { %p5607_p1 = scmp.ne.s32.totalorder %s10595_s9, %s5606_s19  ;;  %p5613_p5 = scmp.lt.u32.totalorder %s5606_s19, %s10595_s9 }
  0x53   : > { %p5609_p4 = pnand %p5607_p1, %p6205_p2 }
  0x55   : > { %p5610_p3 = pneg %p5609_p4 }
  0x57   : > { %p5615_p8 = pnand %p5613_p5, %p5610_p3 }
  0x59   : > { %5618 = shalt.err (!%p5615_p8)
}
  0x5a   : > { %s5619_s21 = scalar_lea.vmem %s6195_s16, 16  ;;  %s5626_s5 = scalar_lea.vmem %s6195_s16, 32 }
  0x5b   : > { %p5620_p10 = scmp.ne.s32.totalorder %s6195_s16, %s5619_s21  ;;  %p5627_p7 = scmp.lt.s32.totalorder %s6195_s16, %s6195_s16 }
  0x5c   : > { %p5628_p9 = scmp.lt.s32.totalorder %s5626_s5, %s5619_s21 }
  0x5d   : > { %p5622_p12 = pnand %p5620_p10, %p6205_p2 }
  0x5e   : > { %p5629_p11 = por %p5628_p9, %p5627_p7 }
  0x5f   : > { %p5623_p6 = pneg %p5622_p12 }
  0x61   : > { %p5630_p13 = pnand %p5629_p11, %p5623_p6 }
  0x63   : > { %5633 = shalt.err (!%p5630_p13)
}
  0x64   : > { %5347 = dma.hbm_to_vmem [thread:$0]  (!%p6191_p0), %s10595_s9, 16, %s6195_s16, [#allocation18]  }
  0x65   : > { %s6246_s24 = sadd.s32 1, %s6006_s14   ;;  %s47_s17 = sadd.s32 1, %s6002_s13 }
  0x66   : > { %10596 = sst [smem:[#allocation45_spill]] %s6246_s24  ;;  %s44_s18 = ssub.s32 %s6006_s14, %s6246_s24 }
  0x67   : > { %p54_p1 = scmp.ne.s32.totalorder %s6002_s13, %s5998_s12  ;;  %p45_p4 = scmp.eq.s32.totalorder %s44_s18, 0 }
  0x68   : > { %p10339_p3 = scmp.eq.s32.totalorder %s6006_s14, 0  ;;  %p60_p5 = scmp.ne.s32.totalorder %s5998_s12, %s5994_s11 }
  0x69   : > { %s6258_s22 = scalar_select %p45_p4, %s6002_s13, %s47_s17  }
  0x6a   : > { %p56_p8 = por %p10339_p3, %p54_p1  ;;  %p10598_p10 = scmp.eq.s32.totalorder %s6162_s15, 0 }
  0x6b   : > { %10597 = sst [smem:[#allocation46_spill]] %s6258_s22  ;;  %p10338_p6 = scmp.lt.s32.totalorder %s6006_s14, 5 }
  0x6c   : > { %p6264_p12 = por %p10598_p10, %p60_p5  ;;  %s6269_s10 = sld [smem:[#allocation4 + %s6246_s24]] }
  0x6d   : > { %s267_s21 = sld [smem:[#allocation4 + %s6006_s14]]  ;;  %s6275_s0 = sand.u32 1, %s6002_s13  }
  0x6e   : > { %s10599_s16 = scalar_select %p6264_p12, 1, 0 }
  0x6f   : > { %s268_s5 = sld [smem:[#allocation4 + %s6246_s24]]  ;;  %s6278_s8 = sand.u32 1, %s6006_s14  }
  0x70   : > { %10600 = sst [smem:[#allocation47_spill]] %s10599_s16  ;;  %p6282_p7 = pnand %p10338_p6, %p56_p8 }
  0x71   : > { %s6287_s17 = sshll.u32 %s6275_s0, 2  ;;  %s6290_s18 = sshll.u32 %s6006_s14, 6 }
  0x72   : > { %10601 = sst [smem:[#allocation48_spill]] %s6269_s10  ;;  %s10603_s2 = sld [smem:[#allocation126_spill]] }
  0x73   : > { %s10602_s11 = scalar_select %p6282_p7, 1, 0 }
  0x74   : > { %s369_s22 = scalar_lea.vmem [#allocation8], %s6287_s17  ;;  %s6302_s12 = sld [smem:[#allocation4 + %s6246_s24]] }
  0x75   : > { %s377_s13 = sshll.u32 %s369_s22, 4  ;;  %s269_s16 = ssub.s32 %s267_s21, %s268_s5  ;;  %s6299_s13 = int_to_ptr.vmem [resolvable:$true] %s377_s13 }
  0x76   : > { %p6304_p9 = scmp.eq.s32.totalorder %s269_s16, 0  ;;  %p6313_p13 = pneg %p6282_p7 }
  0x78   : > { %s6296_s9 = scalar_lea.hbm %s10603_s2, %s6290_s18  ;;  %s5639_s21 = scalar_lea.hbm %s10603_s2, 320 }
  0x79   : > { %s10605_s26 = scalar_select %p6304_p9, 1, 0 }
  0x7a   : > { %10604 = sst [smem:[#allocation49_spill]] %s6302_s12  ;;  %s5634_s10 = scalar_lea.hbm %s6296_s9, 64 }
  0x7b   : > { %p5635_p11 = scmp.ne.s32.totalorder %s6296_s9, %s5634_s10  ;;  %p5640_p5 = scmp.lt.u32.totalorder %s6296_s9, %s10603_s2 }
  0x7c   : > { %p5641_p8 = scmp.lt.u32.totalorder %s5639_s21, %s5634_s10  ;;  %p5643_p6 = scmp.lt.u32.totalorder %s5634_s10, %s6296_s9 }
  0x7d   : > { %p5637_p1 = pnand %p6313_p13, %p5635_p11 }
  0x7e   : > { %p5642_p10 = por %p5641_p8, %p5640_p5 }
  0x7f   : > { %p5638_p4 = pneg %p5637_p1 }
  0x80   : > { %p5644_p3 = por %p5643_p6, %p5642_p10 }
  0x82   : > { %p5645_p12 = pnand %p5644_p3, %p5638_p4 }
  0x84   : > { %5648 = shalt.err (!%p5645_p12)
}
  0x85   : > { %s5649_s27 = scalar_lea.vmem %s6299_s13, 64  ;;  %s6011_s19 = smov [#allocation8]  }
  0x86   : > { %p5650_p11 = scmp.ne.s32.totalorder %s6299_s13, %s5649_s27  ;;  %s5654_s22 = sshll.u32 %s6011_s19, 4  ;;  %s5655_s22 = int_to_ptr.vmem [resolvable:$false] %s5654_s22 }
  0x87   : > { %s5656_s16 = scalar_lea.vmem %s5655_s22, 128  ;;  %p5657_p2 = scmp.lt.s32.totalorder %s6299_s13, %s5655_s22 }
  0x88   : > { %p5652_p1 = pnand %p5650_p11, %p6313_p13  ;;  %p5658_p9 = scmp.lt.s32.totalorder %s5656_s16, %s5649_s27 }
  0x8a   : > { %p5653_p0 = pneg %p5652_p1  ;;  %p5659_p5 = por %p5658_p9, %p5657_p2 }
  0x8c   : > { %p5660_p8 = pnand %p5659_p5, %p5653_p0 }
  0x8e   : > { %5663 = shalt.err (!%p5660_p8)
}
  0x8f   : > { %s10607_s10 = scalar_lea.sflag [#allocation9], %s6278_s8  ;;  %s10608_s21 = sadd.s32 1, %s5966_s25 }
  0x90   : > { %5354 = dma.hbm_to_vmem [thread:$0]  (!%p6282_p7), %s6296_s9, 64, %s6299_s13, %s10607_s10  }
  0x91   : > { %p10609_p3 = scmp.ne.s32.totalorder %s10605_s26, 0  ;;  %s6349_s22 = scalar_lea.hbm %s10311_s4, %s6290_s18 }
  0x92   : > { %s407_s16 = scalar_lea.vmem [#allocation11], %s6287_s17  ;;  %s10348_s24 = scalar_lea.sflag [#allocation12], %s6278_s8 }
  0x93   : > { %s6343_s27 = scalar_select %p10609_p3, %s5966_s25, %s10608_s21  }
  0x94   : > { %s415_s2 = sshll.u32 %s407_s16, 4  ;;  %s5664_s12 = scalar_lea.hbm %s6349_s22, 64  ;;  %s416_s2 = int_to_ptr.vmem [resolvable:$true] %s415_s2 }
  0x95   : > { %p5665_p0 = scmp.ne.s32.totalorder %s6349_s22, %s5664_s12  ;;  %s5669_s13 = scalar_lea.hbm %s10311_s4, 320 }
  0x96   : > { %p5670_p6 = scmp.lt.u32.totalorder %s6349_s22, %s10311_s4  ;;  %p5671_p9 = scmp.lt.u32.totalorder %s5669_s13, %s5664_s12 }
  0x97   : > { %p5667_p2 = pnand %p5665_p0, %p6313_p13  ;;  %p5673_p10 = scmp.lt.u32.totalorder %s5664_s12, %s6349_s22 }
  0x98   : > { %p5672_p4 = por %p5671_p9, %p5670_p6 }
  0x99   : > { %p5668_p12 = pneg %p5667_p2 }
  0x9a   : > { %p5674_p11 = por %p5673_p10, %p5672_p4 }
  0x9c   : > { %p5675_p1 = pnand %p5674_p11, %p5668_p12 }
  0x9e   : > { %5678 = shalt.err (!%p5675_p1)
}
  0x9f   : > { %s5679_s5 = scalar_lea.vmem %s416_s2, 64  ;;  %s6012_s19 = smov [#allocation11]  }
  0xa0   : > { %p5680_p5 = scmp.ne.s32.totalorder %s416_s2, %s5679_s5  ;;  %s5684_s16 = sshll.u32 %s6012_s19, 4  ;;  %s5685_s16 = int_to_ptr.vmem [resolvable:$false] %s5684_s16 }
  0xa1   : > { %s5686_s9 = scalar_lea.vmem %s5685_s16, 128  ;;  %p5687_p0 = scmp.lt.s32.totalorder %s416_s2, %s5685_s16 }
  0xa2   : > { %p5682_p8 = pnand %p5680_p5, %p6313_p13  ;;  %p5688_p2 = scmp.lt.s32.totalorder %s5686_s9, %s5679_s5 }
  0xa4   : > { %p5683_p3 = pneg %p5682_p8  ;;  %p5689_p7 = por %p5688_p2, %p5687_p0 }
  0xa6   : > { %p5690_p6 = pnand %p5689_p7, %p5683_p3 }
  0xa8   : > { %5693 = shalt.err (!%p5690_p6)
}
  0xa9   : > { %p10610_p9 = scmp.ne.s32.totalorder %s10602_s11, 0  ;;  %s6013_s12 = smov [#allocation16]  }
  0xaa   : > { %s319_s26 = sshll.u32 %s6013_s12, 4  ;;  %s5694_s21 = scalar_lea.hbm %s10314_s7, 6144  ;;  %s320_s26 = int_to_ptr.vmem [resolvable:$true] %s319_s26 }
  0xab   : > { %5360 = dma.hbm_to_vmem [thread:$0]  (!%p10610_p9), %s6349_s22, 64, %s416_s2, %s10348_s24  }
  0xac   : > { %p5695_p12 = scmp.ne.s32.totalorder %s10314_s7, %s5694_s21  ;;  %p10611_p7 = scmp.ne.s32.totalorder %s10594_s20, 0 }
  0xad   : > { %p5701_p11 = scmp.lt.u32.totalorder %s5694_s21, %s10314_s7 }
  0xae   : > { %p5697_p4 = pnand %p5695_p12, %p10611_p7 }
  0xb0   : > { %p5698_p10 = pneg %p5697_p4 }
  0xb2   : > { %p5703_p1 = pnand %p5701_p11, %p5698_p10 }
  0xb4   : > { %5706 = shalt.err (!%p5703_p1)
}
  0xb5   : > { %s5707_s2 = scalar_lea.vmem %s320_s26, 6144  ;;  %p5715_p0 = scmp.lt.s32.totalorder %s320_s26, %s320_s26 }
  0xb6   : > { %p5708_p5 = scmp.ne.s32.totalorder %s320_s26, %s5707_s2  ;;  %p5716_p2 = scmp.lt.s32.totalorder %s5707_s2, %s5707_s2 }
  0xb8   : > { %p5710_p8 = pnand %p5708_p5, %p10611_p7  ;;  %p5717_p6 = por %p5716_p2, %p5715_p0 }
  0xba   : > { %p5711_p3 = pneg %p5710_p8 }
  0xbc   : > { %p5718_p9 = pnand %p5717_p6, %p5711_p3 }
  0xbe   : > { %5721 = shalt.err (!%p5718_p9)
}
  0xbf   : > { %s6014_s22 = smov 192   ;;  %s6015_s12 = smov 12  }
  0xc0   : > { %p10612_p12 = scmp.ne.s32.totalorder %s10592_s23, 0  ;;  %s4120_s20 = sshll.u32 %s6275_s0, 9 }
  0xc1   : > { %s4876_s21 = sshll.u32 %s6006_s14, 13  ;;  %s348_s9 = scalar_lea.vmem [#allocation5], %s4120_s20 }
  0xc2   : > { %5344 = dma.hbm_to_vmem [thread:$0]  (!%p10612_p12), %s10314_s7, 6144, %s320_s26, [#allocation15], %s6014_s22, %s6014_s22, %s6015_s12  }
  0xc3   : > { %s6395_s5 = scalar_lea.hbm %s10308_s1, %s4876_s21  ;;  %s355_s2 = sshll.u32 %s348_s9, 4  ;;  %s6397_s2 = int_to_ptr.vmem [resolvable:$true] %s355_s2 }
  0xc4   : > { %s345_s23 = scalar_lea.sflag [#allocation6], %s6275_s0  ;;  %s5722_s24 = scalar_lea.hbm %s6395_s5, 8192 }
  0xc5   : > { %p5723_p9 = scmp.ne.s32.totalorder %s6395_s5, %s5722_s24  ;;  %s5727_s12 = scalar_lea.hbm %s10308_s1, 40960 }
  0xc6   : > { %p5728_p10 = scmp.lt.u32.totalorder %s6395_s5, %s10308_s1  ;;  %p5729_p11 = scmp.lt.u32.totalorder %s5727_s12, %s5722_s24 }
  0xc7   : > { %p5725_p7 = pnand %p5723_p9, %p6313_p13  ;;  %p5731_p5 = scmp.lt.u32.totalorder %s5722_s24, %s6395_s5 }
  0xc8   : > { %p5730_p1 = por %p5729_p11, %p5728_p10 }
  0xc9   : > { %p5726_p4 = pneg %p5725_p7 }
  0xca   : > { %p5732_p8 = por %p5731_p5, %p5730_p1 }
  0xcc   : > { %p5733_p3 = pnand %p5732_p8, %p5726_p4 }
  0xce   : > { %5736 = shalt.err (!%p5733_p3)
}
  0xcf   : > { %s5737_s20 = scalar_lea.vmem %s6397_s2, 8192  ;;  %s6016_s21 = smov [#allocation5]  }
  0xd0   : > { %p5738_p0 = scmp.ne.s32.totalorder %s6397_s2, %s5737_s20  ;;  %s5742_s19 = sshll.u32 %s6016_s21, 4  ;;  %s5743_s19 = int_to_ptr.vmem [resolvable:$false] %s5742_s19 }
  0xd1   : > { %s5744_s16 = scalar_lea.vmem %s5743_s19, 16384  ;;  %p5745_p12 = scmp.lt.s32.totalorder %s6397_s2, %s5743_s19 }
  0xd2   : > { %p5740_p2 = pnand %p5738_p0, %p6313_p13  ;;  %p5746_p9 = scmp.lt.s32.totalorder %s5744_s16, %s5737_s20 }
  0xd4   : > { %p5741_p6 = pneg %p5740_p2  ;;  %p5747_p7 = por %p5746_p9, %p5745_p12 }
  0xd6   : > { %p5748_p10 = pnand %p5747_p7, %p5741_p6 }
  0xd8   : > { %5751 = shalt.err (!%p5748_p10)
}
  0xd9   : > { %s10350_s24 = smov 128   ;;  %s10349_s9 = smov 8  }
  0xda   : > { %p10613_p4 = scmp.ne.s32.totalorder %s10602_s11, 0  ;;  %s6430_s12 = scalar_lea.hbm %s10310_s3, %s6290_s18 }
  0xdb   : > { %s388_s13 = scalar_lea.vmem [#allocation10], %s6287_s17  ;;  %s5752_s20 = scalar_lea.hbm %s6430_s12, 64 }
  0xdc   : > { %5351 = dma.hbm_to_vmem [thread:$0]  (!%p10613_p4), %s6395_s5, 8192, %s6397_s2, %s345_s23, %s10350_s24, %s10350_s24, %s10349_s9  }
  0xdd   : > { %s396_s10 = sshll.u32 %s388_s13, 4  ;;  %p5753_p11 = scmp.ne.s32.totalorder %s6430_s12, %s5752_s20  ;;  %s397_s10 = int_to_ptr.vmem [resolvable:$true] %s396_s10 }
  0xde   : > { %s5757_s5 = scalar_lea.hbm %s10310_s3, 320  ;;  %p5758_p8 = scmp.lt.u32.totalorder %s6430_s12, %s10310_s3 }
  0xdf   : > { %p5755_p1 = pnand %p5753_p11, %p6313_p13  ;;  %p5759_p3 = scmp.lt.u32.totalorder %s5757_s5, %s5752_s20 }
  0xe0   : > { %p5761_p2 = scmp.lt.u32.totalorder %s5752_s20, %s6430_s12 }
  0xe1   : > { %p5756_p5 = pneg %p5755_p1  ;;  %p5760_p0 = por %p5759_p3, %p5758_p8 }
  0xe3   : > { %p5762_p6 = por %p5761_p2, %p5760_p0 }
  0xe5   : > { %p5763_p12 = pnand %p5762_p6, %p5756_p5 }
  0xe7   : > { %5766 = shalt.err (!%p5763_p12)
}
  0xe8   : > { %s5767_s17 = scalar_lea.vmem %s397_s10, 64  ;;  %s6019_s18 = smov [#allocation10]  }
  0xe9   : > { %p5768_p9 = scmp.ne.s32.totalorder %s397_s10, %s5767_s17  ;;  %s5772_s19 = sshll.u32 %s6019_s18, 4  ;;  %s5773_s19 = int_to_ptr.vmem [resolvable:$false] %s5772_s19 }
  0xea   : > { %s5774_s16 = scalar_lea.vmem %s5773_s19, 128  ;;  %p5775_p11 = scmp.lt.s32.totalorder %s397_s10, %s5773_s19 }
  0xeb   : > { %p5770_p7 = pnand %p5768_p9, %p6313_p13  ;;  %p5776_p1 = scmp.lt.s32.totalorder %s5774_s16, %s5767_s17 }
  0xed   : > { %p5771_p10 = pneg %p5770_p7  ;;  %p5777_p4 = por %p5776_p1, %p5775_p11 }
  0xef   : > { %p5778_p3 = pnand %p5777_p4, %p5771_p10 }
  0xf1   : > { %5781 = shalt.err (!%p5778_p3)
}
  0xf2   : > { %p10614_p8 = scmp.ne.s32.totalorder %s10602_s11, 0  ;;  %s10615_s26 = scalar_lea.sflag [#allocation9], %s6278_s8 }
  0xf3   : > { %s10616_s6 = sld [smem:[#allocation48_spill]]  ;;  %s153_s13 = sadd.s32 1, %s5990_s30 }
  0xf4   : > { %5357 = dma.hbm_to_vmem [thread:$0]  (!%p10614_p8), %s6430_s12, 64, %s397_s10, %s10615_s26  }
  0xf5   : > { %s148_s22 = sld [smem:[#allocation4 + %s6006_s14]]  ;;  %p160_p13 = scmp.ne.s32.totalorder %s5990_s30, %s5986_s29 }
  0xf6   : > { %p166_p4 = scmp.ne.s32.totalorder %s5986_s29, %s5982_s28  ;;  %s424_s11 = sand.u32 1, %s5990_s30  }
  0xf7   : > { %p10617_p5 = scmp.eq.s32.totalorder %s6006_s14, 0  ;;  %s10619_s21 = sld [smem:[#allocation39_spill]] }
  0xf8   : > { %s4132_s12 = sshll.u32 %s424_s11, 7  ;;  %p10620_p2 = scmp.eq.s32.totalorder %s6162_s15, 0 }
  0xf9   : > { %p6461_p0 = por %p160_p13, %p10617_p5  ;;  %s10621_s10 = sld [smem:[#allocation38_spill]] }
  0xfa   : > { %p6467_p6 = por %p166_p4, %p10620_p2  ;;  %s10623_s28 = sld [smem:[#allocation37_spill]] }
  0xfb   : > { %s5316_s5 = scalar_select %p6461_p0, [#allocation4], [#allocation21] }
  0xfc   : > { %s10622_s0 = scalar_select %p6467_p6, 1, 0 }
  0xfd   : > { %s150_s2 = ssub.s32 %s148_s22, %s10616_s6  ;;  %s426_s23 = scalar_lea.vmem [#allocation13], %s4132_s12 }
  0xfe   : > { %s434_s17 = sshll.u32 %s426_s23, 4  ;;  %p151_p12 = scmp.eq.s32.totalorder %s150_s2, 0  ;;  %s6474_s17 = int_to_ptr.vmem [resolvable:$true] %s434_s17 }
  0xff   : > { %s5317_s18 = scalar_select %p6461_p0, %s6006_s14, 0 }
 0x100   : > { %s6480_s19 = scalar_select %p151_p12, %s5990_s30, %s153_s13  }
 0x101   : > { %p10624_p9 = scmp.lt.s32.totalorder %s6006_s14, 5  ;;  %s6495_s6 = sld [smem:[#allocation4 + %s6006_s14]] }
 0x102   : > { %s223_s22 = sadd.s32 1, %s10619_s21  ;;  %p230_p1 = scmp.ne.s32.totalorder %s10619_s21, %s10621_s10 }
 0x103   : > { %s11414_s5 = smov (!%p10624_p9, %s5316_s5), [#allocation24]  ;;  %p10625_p7 = pmov %p10624_p9 }
 0x104   : > { %p236_p3 = scmp.ne.s32.totalorder %s10621_s10, %s10623_s28  ;;  %s446_s13 = sand.u32 1, %s10619_s21  }
 0x105   : > { %s11416_s18 = smov (!%p10625_p7, %s5317_s18), 0  ;;  %p10626_p10 = pmov %p10625_p7 }
 0x106   : > { %s427_s26 = sld [smem:[%s11414_s5 + %s11416_s18]]  ;;  %p10628_p8 = pmov %p10617_p5 }
 0x107   : > { %p6490_p11 = pnand %p10626_p10, %p6461_p0  ;;  %s10630_s23 = sld [smem:[#allocation127_spill]] }
 0x108   : > { %p6505_p13 = por %p230_p1, %p10628_p8  ;;  %p10632_p4 = pmov %p10620_p2 }
 0x109   : > { %p5784_p2 = pneg %p6490_p11 }
 0x10a   : > { %p6516_p5 = por %p236_p3, %p10632_p4 }
 0x10c   : > { %s4880_s11 = sshll.u32 %s427_s26, 11 }
 0x10d   : > { %s10631_s9 = smov %s10630_s23  ;;  %s6512_s24 = scalar_lea.hbm %s10630_s23, %s4880_s11 }
 0x10e   : > { %s10633_s5 = scalar_select %p6516_p5, 1, 0 }
 0x10f   : > { %s5782_s10 = scalar_lea.hbm %s6512_s24, 2048  ;;  %s5787_s26 = scalar_lea.hbm %s10631_s9, 4096 }
 0x110   : > { %p5783_p0 = scmp.ne.s32.totalorder %s6512_s24, %s5782_s10  ;;  %p5788_p7 = scmp.lt.u32.totalorder %s6512_s24, %s10631_s9 }
 0x111   : > { %p5789_p10 = scmp.lt.u32.totalorder %s5787_s26, %s5782_s10  ;;  %p5791_p3 = scmp.lt.u32.totalorder %s5782_s10, %s6512_s24 }
 0x112   : > { %p5785_p12 = pnand %p5784_p2, %p5783_p0 }
 0x113   : > { %p5790_p1 = por %p5789_p10, %p5788_p7 }
 0x114   : > { %p5786_p9 = pneg %p5785_p12 }
 0x115   : > { %p5792_p8 = por %p5791_p3, %p5790_p1 }
 0x117   : > { %p5793_p4 = pnand %p5792_p8, %p5786_p9 }
 0x119   : > { %5796 = shalt.err (!%p5793_p4)
}
 0x11a   : > { %s5797_s2 = scalar_lea.vmem %s6474_s17, 2048  ;;  %s6020_s23 = smov [#allocation13]  }
 0x11b   : > { %p5798_p0 = scmp.ne.s32.totalorder %s6474_s17, %s5797_s2  ;;  %s5802_s28 = sshll.u32 %s6020_s23, 4  ;;  %s5803_s28 = int_to_ptr.vmem [resolvable:$false] %s5802_s28 }
 0x11c   : > { %s5804_s18 = scalar_lea.vmem %s5803_s28, 4096  ;;  %p5805_p6 = scmp.lt.s32.totalorder %s6474_s17, %s5803_s28 }
 0x11d   : > { %p5800_p12 = pnand %p5798_p0, %p5784_p2  ;;  %p5806_p7 = scmp.lt.s32.totalorder %s5804_s18, %s5797_s2 }
 0x11f   : > { %p5801_p5 = pneg %p5800_p12  ;;  %p5807_p10 = por %p5806_p7, %p5805_p6 }
 0x121   : > { %p5808_p1 = pnand %p5807_p10, %p5801_p5 }
 0x123   : > { %5811 = shalt.err (!%p5808_p1)
}
 0x124   : > { %s10634_s10 = smov 8   ;;  %s10635_s26 = smov 128  }
 0x125   : > { %s10636_s11 = scalar_lea.sflag [#allocation12], %s6278_s8  ;;  %s10637_s20 = sld [smem:[#allocation49_spill]] }
 0x126   : > { %5365 = dma.hbm_to_vmem [thread:$0]  (!%p6490_p11), %s6512_s24, 2048, %s6474_s17, %s10636_s11, %s10635_s26, %s10635_s26, %s10634_s10  }
 0x127   : > { %s4135_s2 = sshll.u32 %s446_s13, 6  ;;  %p10638_p5 = scmp.lt.s32.totalorder %s6006_s14, 5 }
 0x128   : > { %s5319_s23 = scalar_select %p6505_p13, [#allocation4], [#allocation22] }
 0x129   : > { %s5320_s28 = scalar_select %p6505_p13, %s6006_s14, 0 }
 0x12a   : > { %s11420_s23 = smov (!%p10638_p5, %s5319_s23), [#allocation25]  ;;  %p10639_p2 = pmov %p10638_p5 }
 0x12b   : > { %s220_s16 = ssub.s32 %s6495_s6, %s10637_s20  ;;  %s448_s6 = scalar_lea.vmem [#allocation17], %s4135_s2 }
 0x12c   : > { %p221_p6 = scmp.eq.s32.totalorder %s220_s16, 0  ;;  %s11422_s28 = smov (!%p10639_p2, %s5320_s28), 0 }
 0x12d   : > { %p10640_p9 = pmov %p10639_p2  ;;  %s449_s17 = sld [smem:[%s11420_s23 + %s11422_s28]] }
 0x12e   : > { %s11418_s21 = smov (!%p221_p6, %s10619_s21), %s223_s22  ;;  %s456_s13 = sshll.u32 %s448_s6, 4  ;;  %s6576_s13 = int_to_ptr.vmem [resolvable:$true] %s456_s13 }
 0x12f   : > { %p6572_p3 = pnand %p10640_p9, %p6505_p13  ;;  %s10642_s26 = sld [smem:[#allocation129_spill]] }
 0x130   : > { %s445_s12 = scalar_lea.sflag [#allocation18], %s6278_s8 }
 0x131   : > { %p5814_p13 = pneg %p6572_p3 }
 0x133   : > { %s4881_s22 = sshll.u32 %s449_s17, 10 }
 0x135   : > { %s10643_s20 = smov %s10642_s26  ;;  %s6581_s11 = scalar_lea.hbm %s10642_s26, %s4881_s22 }
 0x136   : > { %s5812_s16 = scalar_lea.hbm %s6581_s11, 1024  ;;  %s5817_s28 = scalar_lea.hbm %s10643_s20, 2048 }
 0x137   : > { %p5813_p11 = scmp.ne.s32.totalorder %s6581_s11, %s5812_s16  ;;  %p5818_p0 = scmp.lt.u32.totalorder %s6581_s11, %s10643_s20 }
 0x138   : > { %p5819_p12 = scmp.lt.u32.totalorder %s5817_s28, %s5812_s16  ;;  %p5821_p10 = scmp.lt.u32.totalorder %s5812_s16, %s6581_s11 }
 0x139   : > { %p5815_p8 = pnand %p5814_p13, %p5813_p11 }
 0x13a   : > { %p5820_p7 = por %p5819_p12, %p5818_p0 }
 0x13b   : > { %p5816_p4 = pneg %p5815_p8 }
 0x13c   : > { %p5822_p1 = por %p5821_p10, %p5820_p7 }
 0x13e   : > { %p5823_p6 = pnand %p5822_p1, %p5816_p4 }
 0x140   : > { %5826 = shalt.err (!%p5823_p6)
}
 0x141   : > { %s5827_s22 = scalar_lea.vmem %s6576_s13, 1024  ;;  %s6021_s18 = smov [#allocation17]  }
 0x142   : > { %p5828_p5 = scmp.ne.s32.totalorder %s6576_s13, %s5827_s22  ;;  %s5832_s10 = sshll.u32 %s6021_s18, 4  ;;  %s5833_s10 = int_to_ptr.vmem [resolvable:$false] %s5832_s10 }
 0x143   : > { %s5834_s26 = scalar_lea.vmem %s5833_s10, 2048  ;;  %p5835_p11 = scmp.lt.s32.totalorder %s6576_s13, %s5833_s10 }
 0x144   : > { %p5830_p2 = pnand %p5828_p5, %p5814_p13  ;;  %p5836_p8 = scmp.lt.s32.totalorder %s5834_s26, %s5827_s22 }
 0x146   : > { %p5831_p9 = pneg %p5830_p2  ;;  %p5837_p0 = por %p5836_p8, %p5835_p11 }
 0x148   : > { %p5838_p12 = pnand %p5837_p0, %p5831_p9 }
 0x14a   : > { %5841 = shalt.err (!%p5838_p12)
}
 0x14b   : > { %s6022_s16 = smov 64   ;;  %s6023_s2 = smov 4  }
 0x14c   : > { %5370 = dma.hbm_to_vmem [thread:$0]  (!%p6572_p3), %s6581_s11, 1024, %s6576_s13, %s445_s12, %s6022_s16, %s6022_s16, %s6023_s2  }
 0x14d   : > { %s10644_s23 = sld [smem:[#allocation44_spill]] }
 0x153   : > { %p10645_p13 = scmp.ne.s32.totalorder %s10644_s23, 0 }
 0x155   : > { %468 = sbr.rel (%p10645_p13) target bundleno = 1487 (0x5cf), region = 56 }
 0x15c   : > { %s10646_s28 = sld [smem:[#allocation40_spill]]  ;;  %s10647_s17 = sld [smem:[#allocation47_spill]] }
 0x162   : > { %s470_s6 = sand.u32 1, %s10646_s28   ;;  %p10648_p4 = scmp.ne.s32.totalorder %s10647_s17, 0 }
 0x163   : > { %s4139_s18 = sshll.u32 %s470_s6, 9  ;;  %s471_s22 = scalar_lea.sflag [#allocation6], %s470_s6 }
 0x164   : > { %s6614_s10 = scalar_lea.vmem [#allocation5], %s4139_s18 }
 0x165   : > { %5925 = dma.done.wait (%p10648_p4), %s471_s22, 8192  }
 0x166   : > { %5927 = vsyncadd (%p10648_p4), %s471_s22, 4294959104  ;;  %s479_s24 = sand.u32 1, %s6162_s15   ;;  %s6621_s8 = sshll.u32 %s470_s6, 2 }
 0x167   : > { %s480_s13 = scalar_lea.sflag [#allocation9], %s479_s24  ;;  %s483_s11 = scalar_lea.vmem [#allocation8], %s6621_s8 }
 0x168   : > { %5929 = dma.done.wait (%p10648_p4), %s480_s13, 128  }
 0x169   : > { %5931 = vsyncadd (%p10648_p4), %s480_s13, 4294967168  ;;  %s492_s12 = scalar_lea.vmem [#allocation10], %s6621_s8  ;;  %s498_s26 = scalar_lea.sflag [#allocation12], %s479_s24 }
 0x16a   : > { %s501_s16 = scalar_lea.vmem [#allocation11], %s6621_s8 }
 0x16b   : > { %5933 = dma.done.wait (%p10648_p4), %s498_s26, 64  }
 0x16c   : > { %5935 = vsyncadd (%p10648_p4), %s498_s26, 4294967232  ;;  %s508_s2 = sand.u32 1, %s5986_s29   ;;  %p10649_p3 = scmp.ne.s32.totalorder %s10622_s0, 0 }
 0x16d   : > { %s4143_s23 = sshll.u32 %s508_s2, 7 }
 0x16e   : > { %s6635_s28 = scalar_lea.vmem [#allocation13], %s4143_s23 }
 0x16f   : > { %5937 = dma.done.wait (%p10649_p3), %s498_s26, 2048  }
 0x170   : > { %5939 = vsyncadd (%p10649_p3), %s498_s26, 4294965248  ;;  %p10650_p7 = scmp.eq.s32.totalorder %s6162_s15, 0 }
 0x172   : > { %5941 = dma.done.wait (%p10650_p7), [#allocation15], 6176   ;;  %p10651_p10 = pmov %p10650_p7 }
 0x173   : > { %s10652_s6 = sld [smem:[#allocation38_spill]]  ;;  %s524_s22 = scalar_lea.sflag [#allocation18], %s479_s24 }
 0x174   : > { %5943 = vsyncadd (%p10651_p10), [#allocation15], 4294961120  ;;  %p10653_p1 = scmp.ne.s32.totalorder %s10633_s5, 0 }
 0x179   : > { %s525_s17 = sand.u32 1, %s10652_s6  }
 0x17a   : > { %s4146_s18 = sshll.u32 %s525_s17, 6 }
 0x17b   : > { %s6646_s13 = scalar_lea.vmem [#allocation17], %s4146_s18 }
 0x17c   : > { %5945 = dma.done.wait (%p10653_p1), %s524_s22, 1024  }
 0x17d   : > { %5947 = vsyncadd (%p10653_p1), %s524_s22, 4294966272  ;;  %p10654_p6 = pmov %p10650_p7 }
 0x17f   : > { %5949 = dma.done.wait (%p10654_p6), [#allocation18], 16   ;;  %p10655_p5 = pmov %p10654_p6 }
 0x180   : > { %s10656_s0 = sld [smem:[#allocation36_spill]]  ;;  %s4149_s24 = sadd.s32 4294967295, %s6162_s15 }
 0x181   : > { %5951 = vsyncadd (%p10655_p5), [#allocation18], 4294967280  ;;  %s607_s26 = sadd.s32 1, %s6162_s15  ;;  %s602_s2 = sld [smem:[#allocation4 + %s6162_s15]] }
 0x182   : > { %p604_p2 = scmp.gt.s32.totalorder %s4149_s24, 0  ;;  %p608_p9 = scmp.lt.s32.totalorder %s607_s26, 4 }
 0x183   : > { %p10657_p0 = pmov %p10655_p5  ;;  %p10658_p13 = scmp.eq.s32.totalorder %s6162_s15, 4 }
 0x184   : > { %s11424_s24 = smov (!%p604_p2, %s4149_s24), 0  ;;  %s11426_s26 = smov (!%p608_p9, %s607_s26), 4 }
 0x185   : > { %s606_s23 = sld [smem:[#allocation4 + %s11424_s24]] }
 0x186   : > { %s588_s5 = sand.u32 1, %s10656_s0   ;;  %s610_s17 = sld [smem:[#allocation4 + %s11426_s26]] }
 0x187   : > { %s4148_s6 = sshll.u32 %s588_s5, 7 }
 0x188   : > { %s6670_s22 = scalar_lea.vmem [#allocation20], %s4148_s6 }
 0x18b   : > { %p612_p11 = scmp.ne.s32.totalorder %s602_s2, %s606_s23 }
 0x18c   : > { %p615_p8 = scmp.ne.s32.totalorder %s602_s2, %s610_s17 }
 0x18d   : > { %p613_p12 = por %p612_p11, %p10657_p0 }
 0x18e   : > { %p6666_p4 = por %p615_p8, %p10658_p13  ;;  %v4884_v0 = vld [vmem:[%s6646_s13] sm:$0xff] (%p613_p12)   ;;  %v4915_v2 = vld [vmem:[%s6646_s13 + $0x8] sm:$0xff] (%p613_p12)   ;;  %v4916_v7 = vld [vmem:[%s6646_s13 + $0x10] sm:$0xff] (%p613_p12)  }
 0x18f   : > { %619 = sbr.rel (!%p613_p12) target bundleno = 411 (0x19b), region = 96  ;;  %v4150_v1 = vld [vmem:[#allocation19] ss:$0 sm:$0xff] (%p613_p12)  ;;  %v4885_v3 = vunpack.c.l.bf16 (%p613_p12), %v4884_v0  ;;  %v4886_v4 = vunpack.c.h.bf16 (%p613_p12), %v4884_v0  ;;  %v4889_v5 = vunpack.c.l.bf16 (%p613_p12), %v4915_v2  ;;  %v4890_v6 = vunpack.c.h.bf16 (%p613_p12), %v4915_v2  ;;  %v4917_v8 = vld [vmem:[%s6646_s13 + $0x18] sm:$0xff] (%p613_p12)   ;;  %v4919_v14 = vld [vmem:[%s6646_s13 + $0x28] sm:$0xff] (%p613_p12)  }
 0x190   : > { %v4893_v9 = vunpack.c.l.bf16 (%p613_p12), %v4916_v7  ;;  %v4894_v10 = vunpack.c.h.bf16 (%p613_p12), %v4916_v7  ;;  %v4897_v11 = vunpack.c.l.bf16 (%p613_p12), %v4917_v8  ;;  %v4898_v12 = vunpack.c.h.bf16 (%p613_p12), %v4917_v8  ;;  %v4918_v13 = vld [vmem:[%s6646_s13 + $0x20] sm:$0xff] (%p613_p12)   ;;  %v4920_v19 = vld [vmem:[%s6646_s13 + $0x30] sm:$0xff] (%p613_p12)   ;;  %v4921_v20 = vld [vmem:[%s6646_s13 + $0x38] sm:$0xff] (%p613_p12)  }
 0x191   : > { %v659_v15 = vadd.f32 (%p613_p12), %v4885_v3, %v4150_v1  ;;  %v660_v16 = vadd.f32 (%p613_p12), %v4886_v4, %v4150_v1  ;;  %v661_v17 = vadd.f32 (%p613_p12), %v4889_v5, %v4150_v1  ;;  %v662_v18 = vadd.f32 (%p613_p12), %v4890_v6, %v4150_v1 }
 0x192   : > { %v663_v21 = vadd.f32 (%p613_p12), %v4893_v9, %v4150_v1  ;;  %v664_v22 = vadd.f32 (%p613_p12), %v4894_v10, %v4150_v1  ;;  %v665_v23 = vadd.f32 (%p613_p12), %v4897_v11, %v4150_v1  ;;  %v666_v24 = vadd.f32 (%p613_p12), %v4898_v12, %v4150_v1 }
 0x193   : > { %675 = vst [vmem:[#allocation2] sm:$0xff] (%p613_p12), %v659_v15  ;;  %676 = vst [vmem:[#allocation2 + $0x8] sm:$0xff] (%p613_p12), %v660_v16  ;;  %v4901_v25 = vunpack.c.l.bf16 (%p613_p12), %v4918_v13  ;;  %v4902_v26 = vunpack.c.h.bf16 (%p613_p12), %v4918_v13  ;;  %v4905_v27 = vunpack.c.l.bf16 (%p613_p12), %v4919_v14  ;;  %v4906_v28 = vunpack.c.h.bf16 (%p613_p12), %v4919_v14 }
 0x194   : > { %677 = vst [vmem:[#allocation2 + $0x10] sm:$0xff] (%p613_p12), %v661_v17  ;;  %678 = vst [vmem:[#allocation2 + $0x18] sm:$0xff] (%p613_p12), %v662_v18  ;;  %v4909_v29 = vunpack.c.l.bf16 (%p613_p12), %v4920_v19  ;;  %v4910_v30 = vunpack.c.h.bf16 (%p613_p12), %v4920_v19  ;;  %v4913_v31 = vunpack.c.l.bf16 (%p613_p12), %v4921_v20  ;;  %v4914_v32 = vunpack.c.h.bf16 (%p613_p12), %v4921_v20 }
 0x195   : > { %679 = vst [vmem:[#allocation2 + $0x20] sm:$0xff] (%p613_p12), %v663_v21  ;;  %680 = vst [vmem:[#allocation2 + $0x28] sm:$0xff] (%p613_p12), %v664_v22  ;;  %v667_v33 = vadd.f32 (%p613_p12), %v4901_v25, %v4150_v1  ;;  %v668_v34 = vadd.f32 (%p613_p12), %v4902_v26, %v4150_v1  ;;  %v669_v35 = vadd.f32 (%p613_p12), %v4905_v27, %v4150_v1 }
 0x196   : > { %681 = vst [vmem:[#allocation2 + $0x30] sm:$0xff] %v665_v23  ;;  %682 = vst [vmem:[#allocation2 + $0x38] sm:$0xff] %v666_v24  ;;  %v670_v36 = vadd.f32 %v4906_v28, %v4150_v1  ;;  %v671_v37 = vadd.f32 %v4909_v29, %v4150_v1  ;;  %v672_v38 = vadd.f32 %v4910_v30, %v4150_v1 }
 0x197   : > { %v673_v39 = vadd.f32 %v4913_v31, %v4150_v1  ;;  %v674_v40 = vadd.f32 %v4914_v32, %v4150_v1  ;;  %683 = vst [vmem:[#allocation2 + $0x40] sm:$0xff] %v667_v33  ;;  %684 = vst [vmem:[#allocation2 + $0x48] sm:$0xff] %v668_v34 }
 0x198   : > { %685 = vst [vmem:[#allocation2 + $0x50] sm:$0xff] %v669_v35  ;;  %686 = vst [vmem:[#allocation2 + $0x58] sm:$0xff] %v670_v36 }
 0x199   : > { %687 = vst [vmem:[#allocation2 + $0x60] sm:$0xff] %v671_v37  ;;  %688 = vst [vmem:[#allocation2 + $0x68] sm:$0xff] %v672_v38 }
 0x19a   : > { %689 = vst [vmem:[#allocation2 + $0x70] sm:$0xff] %v673_v39  ;;  %690 = vst [vmem:[#allocation2 + $0x78] sm:$0xff] %v674_v40 }
 0x19b PF: > { %v693_v41 = vld [vmem:[%s6614_s10 + $0x10] sm:$0xff]  ;;  %v691_v42 = vld [vmem:[%s6614_s10] sm:$0xff]  ;;  %v6024_v43 = vmov 0   ;;  %v694_v44 = vld [vmem:[%s6614_s10 + $0x18] sm:$0xff] }
 0x19c   : > { %5502 = vset.pattern.permute.xlu1 %v6024_v43  ;;  %5501 = vset.pattern.permute.xlu0 %v6024_v43  ;;  %v692_v45 = vld [vmem:[%s6614_s10 + $0x8] sm:$0xff]  ;;  %v695_v47 = vld [vmem:[%s6614_s10 + $0x20] sm:$0xff]  ;;  %v698_v48 = vld [vmem:[%s6614_s10 + $0x38] sm:$0xff] }
 0x19d   : > { %774 = vperm.xlu1 %5502, %v693_v41   ;;  %768 = vperm.xlu0 %5501, %v691_v42   ;;  %v696_v46 = vld [vmem:[%s6614_s10 + $0x28] sm:$0xff]  ;;  %v697_v49 = vld [vmem:[%s6614_s10 + $0x30] sm:$0xff]  ;;  %v699_v53 = vld [vmem:[%s6614_s10 + $0x40] sm:$0xff] }
 0x19e   : > { %2080 = vmatprep.subr.bf16.mxu1 %v6024_v43  ;;  %v5503_v50 = vld [vmem:[#allocation16 + $0x4] ss:$12 sps:$4 sm:$0xff]   ;;  %v5505_v51 = vld [vmem:[#allocation16] ss:$12 sps:$4 sm:$0xff]   ;;  %v5506_v54 = vld [vmem:[#allocation16 + $0x8] ss:$12 sps:$4 sm:$0xff]  }
 0x19f   : > { %v700_v52 = vld [vmem:[%s6614_s10 + $0x48] sm:$0xff]  ;;  %1727 = vmatprep.subr.bf16.mxu0 %v5503_v50  ;;  %v5507_v55 = vld [vmem:[#allocation16 + $0x1c] ss:$12 sps:$4 sm:$0xff]   ;;  %2081 = vmatpush1.bf16.msra.mxu1 %v5506_v54  ;;  %v5509_v56 = vld [vmem:[#allocation16 + $0x18] ss:$12 sps:$4 sm:$0xff]  }
 0x1a0   : > { %1728 = vmatpush1.bf16.msra.mxu0 %v5505_v51  ;;  %v702_v57 = vld [vmem:[%s6614_s10 + $0x58] sm:$0xff]  ;;  %2082 = vmatprep.subr.bf16.mxu1 %v6024_v43  ;;  %v701_v60 = vld [vmem:[%s6614_s10 + $0x50] sm:$0xff]  ;;  %v704_v0 = vld [vmem:[%s6614_s10 + $0x68] sm:$0xff] }
 0x1a1   : > { %777 = vperm.xlu1 %5502, %v694_v44   ;;  %771 = vperm.xlu0 %5501, %v692_v45   ;;  %v5510_v58 = vld [vmem:[#allocation16 + $0x20] ss:$12 sps:$4 sm:$0xff]   ;;  %v5513_v61 = vld [vmem:[#allocation16 + $0x30] ss:$12 sps:$4 sm:$0xff]   ;;  %v5514_v62 = vld [vmem:[#allocation16 + $0x38] ss:$12 sps:$4 sm:$0xff]  }
 0x1a2   : > { %1729 = vmatprep.subr.bf16.mxu0 %v5507_v55  ;;  %v5511_v59 = vld [vmem:[#allocation16 + $0x34] ss:$12 sps:$4 sm:$0xff]   ;;  %v5515_v63 = vld [vmem:[#allocation16 + $0x4c] ss:$12 sps:$4 sm:$0xff]   ;;  %v5518_v3 = vld [vmem:[#allocation16 + $0x50] ss:$12 sps:$4 sm:$0xff]  }
 0x1a3   : > { %2083 = vmatpush1.bf16.msra.mxu1 %v5510_v58  ;;  %v703_v1 = vld [vmem:[%s6614_s10 + $0x60] sm:$0xff]  ;;  %v706_v5 = vld [vmem:[%s6614_s10 + $0x78] sm:$0xff]  ;;  %v705_v6 = vld [vmem:[%s6614_s10 + $0x70] sm:$0xff] }
 0x1a4   : > { %1730 = vmatpush1.bf16.msra.mxu0 %v5509_v56  ;;  %2084 = vmatprep.subr.bf16.mxu1 %v6024_v43  ;;  %v5517_v2 = vld [vmem:[#allocation16 + $0x48] ss:$12 sps:$4 sm:$0xff]   ;;  %v5519_v4 = vld [vmem:[#allocation16 + $0x64] ss:$12 sps:$4 sm:$0xff]   ;;  %v5521_v7 = vld [vmem:[#allocation16 + $0x60] ss:$12 sps:$4 sm:$0xff]  }
 0x1a5   : > { %783 = vperm.xlu1 %5502, %v696_v46   ;;  %780 = vperm.xlu0 %5501, %v695_v47   ;;  %v5522_v8 = vld [vmem:[#allocation16 + $0x68] ss:$12 sps:$4 sm:$0xff]   ;;  %v5525_v12 = vld [vmem:[#allocation16 + $0x78] ss:$12 sps:$4 sm:$0xff]   ;;  %v5526_v13 = vld [vmem:[#allocation16 + $0x80] ss:$12 sps:$4 sm:$0xff]  }
 0x1a6   : > { %1731 = vmatprep.subr.bf16.mxu0 %v5511_v59  ;;  %v5523_v9 = vld [vmem:[#allocation16 + $0x7c] ss:$12 sps:$4 sm:$0xff]   ;;  %v708_v10 = vld [vmem:[%s6614_s10 + $0x88] sm:$0xff]  ;;  %v5530_v18 = vld [vmem:[#allocation16 + $0x98] ss:$12 sps:$4 sm:$0xff]  }
 0x1a7   : > { %2085 = vmatpush1.bf16.msra.mxu1 %v5514_v62  ;;  %v707_v11 = vld [vmem:[%s6614_s10 + $0x80] sm:$0xff]  ;;  %v5527_v14 = vld [vmem:[#allocation16 + $0x94] ss:$12 sps:$4 sm:$0xff]   ;;  %v5529_v17 = vld [vmem:[#allocation16 + $0x90] ss:$12 sps:$4 sm:$0xff]  }
 0x1a8   : > { %1732 = vmatpush1.bf16.msra.mxu0 %v5513_v61  ;;  %2086 = vmatprep.subr.bf16.mxu1 %v6024_v43  ;;  %v710_v15 = vld [vmem:[%s6614_s10 + $0x98] sm:$0xff]  ;;  %v709_v16 = vld [vmem:[%s6614_s10 + $0x90] sm:$0xff]  ;;  %v712_v20 = vld [vmem:[%s6614_s10 + $0xa8] sm:$0xff] }
 0x1a9   : > { %789 = vperm.xlu1 %5502, %v698_v48   ;;  %786 = vperm.xlu0 %5501, %v697_v49   ;;  %v5531_v19 = vld [vmem:[#allocation16 + $0xac] ss:$12 sps:$4 sm:$0xff]   ;;  %v5533_v22 = vld [vmem:[#allocation16 + $0xa8] ss:$12 sps:$4 sm:$0xff]   ;;  %v5534_v23 = vld [vmem:[#allocation16 + $0xb0] ss:$12 sps:$4 sm:$0xff]  }
 0x1aa   : > { %1733 = vmatprep.subr.bf16.mxu0 %v5515_v63  ;;  %v711_v21 = vld [vmem:[%s6614_s10 + $0xa0] sm:$0xff]  ;;  %v714_v25 = vld [vmem:[%s6614_s10 + $0xb8] sm:$0xff]  ;;  %v713_v26 = vld [vmem:[%s6614_s10 + $0xb0] sm:$0xff] }
 0x1ab   : > { %2087 = vmatpush1.bf16.msra.mxu1 %v5518_v3  ;;  %v5535_v24 = vld [vmem:[#allocation16 + $0xc4] ss:$12 sps:$4 sm:$0xff]   ;;  %v5537_v27 = vld [vmem:[#allocation16 + $0xc0] ss:$12 sps:$4 sm:$0xff]   ;;  %v5538_v28 = vld [vmem:[#allocation16 + $0xc8] ss:$12 sps:$4 sm:$0xff]  }
 0x1ac   : > { %1734 = vmatpush1.bf16.msra.mxu0 %v5517_v2  ;;  %2088 = vmatprep.subr.bf16.mxu1 %v6024_v43  ;;  %v5539_v29 = vld [vmem:[#allocation16 + $0xdc] ss:$12 sps:$4 sm:$0xff]   ;;  %v716_v30 = vld [vmem:[%s6614_s10 + $0xc8] sm:$0xff]  ;;  %v5541_v32 = vld [vmem:[#allocation16 + $0xd8] ss:$12 sps:$4 sm:$0xff]  }
 0x1ad   : > { %795 = vperm.xlu1 %5502, %v700_v52   ;;  %792 = vperm.xlu0 %5501, %v699_v53   ;;  %v715_v31 = vld [vmem:[%s6614_s10 + $0xc0] sm:$0xff]  ;;  %v5543_v34 = vld [vmem:[#allocation16 + $0xf4] ss:$12 sps:$4 sm:$0xff]   ;;  %v5545_v37 = vld [vmem:[#allocation16 + $0xf0] ss:$12 sps:$4 sm:$0xff]  }
 0x1ae   : > { %1735 = vmatprep.subr.bf16.mxu0 %v5519_v4  ;;  %v5542_v33 = vld [vmem:[#allocation16 + $0xe0] ss:$12 sps:$4 sm:$0xff]   ;;  %v717_v36 = vld [vmem:[%s6614_s10 + $0xd0] sm:$0xff]  ;;  %v5551_v45 = vld [vmem:[#allocation16 + $0x124] ss:$12 sps:$4 sm:$0xff]  }
 0x1af   : > { %2089 = vmatpush1.bf16.msra.mxu1 %v5522_v8  ;;  %v718_v35 = vld [vmem:[%s6614_s10 + $0xd8] sm:$0xff]  ;;  %v5547_v39 = vld [vmem:[#allocation16 + $0x10c] ss:$12 sps:$4 sm:$0xff]   ;;  %v5549_v42 = vld [vmem:[#allocation16 + $0x108] ss:$12 sps:$4 sm:$0xff]  }
 0x1b0   : > { %1736 = vmatpush1.bf16.msra.mxu0 %v5521_v7  ;;  %2090 = vmatprep.subr.bf16.mxu1 %v6024_v43  ;;  %v5546_v38 = vld [vmem:[#allocation16 + $0xf8] ss:$12 sps:$4 sm:$0xff]   ;;  %v720_v40 = vld [vmem:[%s6614_s10 + $0xe8] sm:$0xff]  ;;  %v5555_v50 = vld [vmem:[#allocation16 + $0x13c] ss:$12 sps:$4 sm:$0xff]  }
 0x1b1   : > { %801 = vperm.xlu1 %5502, %v702_v57   ;;  %798 = vperm.xlu0 %5501, %v701_v60   ;;  %v719_v41 = vld [vmem:[%s6614_s10 + $0xe0] sm:$0xff]  ;;  %v5550_v44 = vld [vmem:[#allocation16 + $0x110] ss:$12 sps:$4 sm:$0xff]   ;;  %v5559_v55 = vld [vmem:[#allocation16 + $0x154] ss:$12 sps:$4 sm:$0xff]  }
 0x1b2   : > { %1737 = vmatprep.subr.bf16.mxu0 %v5523_v9  ;;  %v722_v46 = vld [vmem:[%s6614_s10 + $0xf8] sm:$0xff]  ;;  %v721_v47 = vld [vmem:[%s6614_s10 + $0xf0] sm:$0xff]  ;;  %v724_v51 = vld [vmem:[%s6614_s10 + $0x108] sm:$0xff] }
 0x1b3   : > { %2091 = vmatpush1.bf16.msra.mxu1 %v5526_v13  ;;  %v5553_v48 = vld [vmem:[#allocation16 + $0x120] ss:$12 sps:$4 sm:$0xff]   ;;  %v5554_v49 = vld [vmem:[#allocation16 + $0x128] ss:$12 sps:$4 sm:$0xff]   ;;  %v5557_v53 = vld [vmem:[#allocation16 + $0x138] ss:$12 sps:$4 sm:$0xff]  }
 0x1b4   : > { %1738 = vmatpush1.bf16.msra.mxu0 %v5525_v12  ;;  %2092 = vmatprep.subr.bf16.mxu1 %v6024_v43  ;;  %v723_v52 = vld [vmem:[%s6614_s10 + $0x100] sm:$0xff]  ;;  %v726_v56 = vld [vmem:[%s6614_s10 + $0x118] sm:$0xff]  ;;  %v725_v57 = vld [vmem:[%s6614_s10 + $0x110] sm:$0xff] }
 0x1b5   : > { %807 = vperm.xlu1 %5502, %v704_v0   ;;  %804 = vperm.xlu0 %5501, %v703_v1   ;;  %v5558_v54 = vld [vmem:[#allocation16 + $0x140] ss:$12 sps:$4 sm:$0xff]   ;;  %v5561_v58 = vld [vmem:[#allocation16 + $0x150] ss:$12 sps:$4 sm:$0xff]   ;;  %v5562_v59 = vld [vmem:[#allocation16 + $0x158] ss:$12 sps:$4 sm:$0xff]  }
 0x1b6   : > { %1739 = vmatprep.subr.bf16.mxu0 %v5527_v14  ;;  %v5563_v60 = vld [vmem:[#allocation16 + $0x16c] ss:$12 sps:$4 sm:$0xff]   ;;  %v5565_v63 = vld [vmem:[#allocation16 + $0x168] ss:$12 sps:$4 sm:$0xff]   ;;  %v5566_v0 = vld [vmem:[#allocation16 + $0x170] ss:$12 sps:$4 sm:$0xff]  }
 0x1b7   : > { %2093 = vmatpush1.bf16.msra.mxu1 %v5530_v18  ;;  %v728_v61 = vld [vmem:[%s6614_s10 + $0x128] sm:$0xff]  ;;  %v727_v62 = vld [vmem:[%s6614_s10 + $0x120] sm:$0xff]  ;;  %v730_v1 = vld [vmem:[%s6614_s10 + $0x138] sm:$0xff] }
 0x1b8   : > { %1740 = vmatpush1.bf16.msra.mxu0 %v5529_v17  ;;  %2094 = vmatprep.subr.bf16.mxu1 %v6024_v43  ;;  %v729_v2 = vld [vmem:[%s6614_s10 + $0x130] sm:$0xff]  ;;  %v732_v3 = vld [vmem:[%s6614_s10 + $0x148] sm:$0xff]  ;;  %v731_v4 = vld [vmem:[%s6614_s10 + $0x140] sm:$0xff] }
 0x1b9   : > { %813 = vperm.xlu1 %5502, %v706_v5   ;;  %810 = vperm.xlu0 %5501, %v705_v6   ;;  %v734_v5 = vld [vmem:[%s6614_s10 + $0x158] sm:$0xff]  ;;  %v733_v6 = vld [vmem:[%s6614_s10 + $0x150] sm:$0xff]  ;;  %v736_v7 = vld [vmem:[%s6614_s10 + $0x168] sm:$0xff] }
 0x1ba   : > { %1741 = vmatprep.subr.bf16.mxu0 %v5531_v19  ;;  %v735_v8 = vld [vmem:[%s6614_s10 + $0x160] sm:$0xff]  ;;  %v738_v9 = vld [vmem:[%s6614_s10 + $0x178] sm:$0xff]  ;;  %v741_v14 = vld [vmem:[%s6614_s10 + $0x190] sm:$0xff] }
 0x1bb   : > { %2095 = vmatpush1.bf16.msra.mxu1 %v5534_v23  ;;  %v739_v12 = vld [vmem:[%s6614_s10 + $0x180] sm:$0xff]  ;;  %v742_v13 = vld [vmem:[%s6614_s10 + $0x198] sm:$0xff]  ;;  %v745_v18 = vld [vmem:[%s6614_s10 + $0x1b0] sm:$0xff] }
 0x1bc   : > { %1742 = vmatpush1.bf16.msra.mxu0 %v5533_v22  ;;  %2096 = vmatprep.subr.bf16.mxu1 %v6024_v43  ;;  %v746_v17 = vld [vmem:[%s6614_s10 + $0x1b8] sm:$0xff]  ;;  %v748_v19 = vld [vmem:[%s6614_s10 + $0x1c8] sm:$0xff]  ;;  %v749_v22 = vld [vmem:[%s6614_s10 + $0x1d0] sm:$0xff] }
 0x1bd   : > { %819 = vperm.xlu1 %5502, %v708_v10   ;;  %816 = vperm.xlu0 %5501, %v707_v11   ;;  %v737_v10 = vld [vmem:[%s6614_s10 + $0x170] sm:$0xff]  ;;  %v740_v11 = vld [vmem:[%s6614_s10 + $0x188] sm:$0xff] }
 0x1be   : > { %1743 = vmatprep.subr.bf16.mxu0 %v5535_v24  ;;  %v752_v23 = vld [vmem:[%s6614_s10 + $0x1e8] sm:$0xff]  ;;  %v751_v24 = vld [vmem:[%s6614_s10 + $0x1e0] sm:$0xff] }
 0x1bf   : > { %2097 = vmatpush1.bf16.msra.mxu1 %v5538_v28 }
 0x1c0   : > { %1744 = vmatpush1.bf16.msra.mxu0 %v5537_v27  ;;  %2098 = vmatprep.subr.bf16.mxu1 %v6024_v43  ;;  %v753_v27 = vld [vmem:[%s6614_s10 + $0x1f0] sm:$0xff] }
 0x1c1   : > { %825 = vperm.xlu1 %5502, %v710_v15   ;;  %822 = vperm.xlu0 %5501, %v709_v16   ;;  %v744_v15 = vld [vmem:[%s6614_s10 + $0x1a8] sm:$0xff]  ;;  %v743_v16 = vld [vmem:[%s6614_s10 + $0x1a0] sm:$0xff] }
 0x1c2   : > { %1745 = vmatprep.subr.bf16.mxu0 %v5539_v29 }
 0x1c3   : > { %2099 = vmatpush1.bf16.msra.mxu1 %v5542_v33 }
 0x1c4   : > { %1746 = vmatpush1.bf16.msra.mxu0 %v5541_v32  ;;  %2100 = vmatprep.subr.bf16.mxu1 %v6024_v43  ;;  %v758_v32 = vld [vmem:[#allocation14] sm:$0x3] }
 0x1c5   : > { %831 = vperm.xlu1 %5502, %v712_v20   ;;  %828 = vperm.xlu0 %5501, %v711_v21   ;;  %v747_v20 = vld [vmem:[%s6614_s10 + $0x1c0] sm:$0xff]  ;;  %v750_v21 = vld [vmem:[%s6614_s10 + $0x1d8] sm:$0xff] }
 0x1c6   : > { %1747 = vmatprep.subr.bf16.mxu0 %v5543_v34 }
 0x1c7   : > { %2101 = vmatpush1.bf16.msra.mxu1 %v5546_v38  ;;  %v2467_v38 = vld [vmem:[%s6635_s28 + $0x10] sm:$0xff] }
 0x1c8   : > { %1748 = vmatpush1.bf16.msra.mxu0 %v5545_v37  ;;  %2102 = vmatprep.subr.bf16.mxu1 %v6024_v43  ;;  %v2468_v37 = vld [vmem:[%s6635_s28 + $0x18] sm:$0xff] }
 0x1c9   : > { %837 = vperm.xlu1 %5502, %v714_v25   ;;  %834 = vperm.xlu0 %5501, %v713_v26   ;;  %v759_v25 = vlaneseq  ;;  %v754_v26 = vld [vmem:[%s6614_s10 + $0x1f8] sm:$0xff] }
 0x1ca   : > { %1749 = vmatprep.subr.bf16.mxu0 %v5547_v39 }
 0x1cb   : > { %2103 = vmatpush1.bf16.msra.mxu1 %v5550_v44  ;;  %v6762_v28 = vshrl.u32 %v759_v25, 7 }
 0x1cc   : > { %1750 = vmatpush1.bf16.msra.mxu0 %v5549_v42  ;;  %2104 = vmatprep.subr.bf16.mxu1 %v6024_v43  ;;  %v2470_v42 = vld [vmem:[%s6635_s28 + $0x28] sm:$0xff] }
 0x1cd   : > { %843 = vperm.xlu1 %5502, %v716_v30   ;;  %840 = vperm.xlu0 %5501, %v715_v31   ;;  %v6765_v29 = vsub.s32 1, %v6762_v28  ;;  %v2466_v30 = vld [vmem:[%s6635_s28 + $0x8] sm:$0xff]  ;;  %v2465_v31 = vld [vmem:[%s6635_s28] sm:$0xff]  ;;  %v6770_v33 = vsub.s32 0, %v6762_v28 }
 0x1ce   : > { %1751 = vmatprep.subr.bf16.mxu0 %v5551_v45 }
 0x1cf   : > { %2105 = vmatpush1.bf16.msra.mxu1 %v5554_v49  ;;  %10660 = vst [vmem:[#allocation50_spill] sm:$0xff] %v6765_v29  ;;  %v6778_v39 = vrot.slane %v758_v32, %v6770_v33  ;;  %v2472_v49 = vld [vmem:[%s6635_s28 + $0x38] sm:$0xff] }
 0x1d0   : > { %1752 = vmatpush1.bf16.msra.mxu0 %v5553_v48  ;;  %2106 = vmatprep.subr.bf16.mxu1 %v6024_v43  ;;  %v10359_v48 = vmov 1.0|1.0  }
 0x1d1   : > { %849 = vperm.xlu1 %5502, %v718_v35   ;;  %846 = vperm.xlu0 %5501, %v717_v36   ;;  %v6773_v36 = vrot.slane %v758_v32, %v6765_v29 }
 0x1d2   : > { %1753 = vmatprep.subr.bf16.mxu0 %v5555_v50 }
 0x1d3   : > { %2107 = vmatpush1.bf16.msra.mxu1 %v5558_v54 }
 0x1d4   : > { %1754 = vmatpush1.bf16.msra.mxu0 %v5557_v53  ;;  %2108 = vmatprep.subr.bf16.mxu1 %v6024_v43  ;;  %v2474_v53 = vld [vmem:[%s6635_s28 + $0x48] sm:$0xff] }
 0x1d5   : > { %855 = vperm.xlu1 %5502, %v720_v40   ;;  %852 = vperm.xlu0 %5501, %v719_v41  }
 0x1d6   : > { %1755 = vmatprep.subr.bf16.mxu0 %v5559_v55 }
 0x1d7   : > { %2109 = vmatpush1.bf16.msra.mxu1 %v5562_v59 }
 0x1d8   : > { %1756 = vmatpush1.bf16.msra.mxu0 %v5561_v58  ;;  %2110 = vmatprep.subr.bf16.mxu1 %v6024_v43 }
 0x1d9   : > { %861 = vperm.xlu1 %5502, %v722_v46   ;;  %858 = vperm.xlu0 %5501, %v721_v47   ;;  %v2469_v47 = vld [vmem:[%s6635_s28 + $0x20] sm:$0xff] }
 0x1da   : > { %1757 = vmatprep.subr.bf16.mxu0 %v5563_v60  ;;  %v2475_v60 = vld [vmem:[%s6635_s28 + $0x50] sm:$0xff] }
 0x1db   : > { %2111 = vmatpush1.bf16.msra.mxu1 %v5566_v0  ;;  %v2477_v0 = vld [vmem:[%s6635_s28 + $0x60] sm:$0xff] }
 0x1dc   : > { %1758 = vmatpush1.bf16.msra.mxu0 %v5565_v63 }
 0x1dd   : > { %867 = vperm.xlu1 %5502, %v724_v51   ;;  %864 = vperm.xlu0 %5501, %v723_v52   ;;  %v2471_v52 = vld [vmem:[%s6635_s28 + $0x30] sm:$0xff] }
 0x1e1   : > { %873 = vperm.xlu1 %5502, %v726_v56   ;;  %870 = vperm.xlu0 %5501, %v725_v57   ;;  %v2473_v56 = vld [vmem:[%s6635_s28 + $0x40] sm:$0xff]  ;;  %v2476_v57 = vld [vmem:[%s6635_s28 + $0x58] sm:$0xff] }
 0x1e5   : > { %879 = vperm.xlu1 %5502, %v728_v61   ;;  %876 = vperm.xlu0 %5501, %v727_v62   ;;  %v2478_v61 = vld [vmem:[%s6635_s28 + $0x68] sm:$0xff] }
 0x1e9   : > { %885 = vperm.xlu1 %5502, %v730_v1   ;;  %882 = vperm.xlu0 %5501, %v729_v2   ;;  %v2480_v1 = vld [vmem:[%s6635_s28 + $0x78] sm:$0xff] }
 0x1ed   : > { %891 = vperm.xlu1 %5502, %v732_v3   ;;  %888 = vperm.xlu0 %5501, %v731_v4   ;;  %v2479_v4 = vld [vmem:[%s6635_s28 + $0x70] sm:$0xff] }
 0x1f1   : > { %897 = vperm.xlu1 %5502, %v734_v5   ;;  %894 = vperm.xlu0 %5501, %v733_v6  }
 0x1f5   : > { %903 = vperm.xlu1 %5502, %v736_v7   ;;  %900 = vperm.xlu0 %5501, %v735_v8  }
 0x1f9   : > { %909 = vperm.xlu1 %5502, %v738_v9   ;;  %906 = vperm.xlu0 %5501, %v737_v10  }
 0x1fd   : > { %915 = vperm.xlu1 %5502, %v740_v11   ;;  %912 = vperm.xlu0 %5501, %v739_v12  }
 0x201   : > { %921 = vperm.xlu1 %5502, %v742_v13   ;;  %918 = vperm.xlu0 %5501, %v741_v14  }
 0x205   : > { %927 = vperm.xlu1 %5502, %v744_v15   ;;  %924 = vperm.xlu0 %5501, %v743_v16  }
 0x209   : > { %933 = vperm.xlu1 %5502, %v746_v17   ;;  %930 = vperm.xlu0 %5501, %v745_v18  }
 0x20d   : > { %939 = vperm.xlu1 %5502, %v748_v19   ;;  %936 = vperm.xlu0 %5501, %v747_v20  }
 0x211   : > { %945 = vperm.xlu1 %5502, %v750_v21   ;;  %942 = vperm.xlu0 %5501, %v749_v22  }
 0x215   : > { %951 = vperm.xlu1 %5502, %v752_v23   ;;  %948 = vperm.xlu0 %5501, %v751_v24  }
 0x219   : > { %957 = vperm.xlu1 %5502, %v754_v26   ;;  %954 = vperm.xlu0 %5501, %v753_v27  }
 0x21c   : > { %v775_v34 = vpop.permute.xlu1 %774  ;;  %v769_v35 = vpop.permute.xlu0 %768 }
 0x21d   : > { %2485 = vperm.xlu1 %5502, %v2466_v30   ;;  %2482 = vperm.xlu0 %5501, %v2465_v31   ;;  %vm964_vm0 = vcmp.eq.s32.totalorder %v6773_v36, %v775_v34  ;;  %vm959_vm4 = vcmp.eq.s32.totalorder %v6778_v39, %v769_v35  ;;  %vm960_vm7 = vcmp.eq.s32.totalorder %v6773_v36, %v769_v35 }
 0x21e   : > { %vm963_vm9 = vcmp.eq.s32.totalorder %v6778_v39, %v775_v34 }
 0x220   : > { %v778_v40 = vpop.permute.xlu1 %777  ;;  %v772_v41 = vpop.permute.xlu0 %771 }
 0x221   : > { %vm966_vm1 = vcmp.eq.s32.totalorder %v6773_v36, %v778_v40  ;;  %vm961_vm2 = vcmp.eq.s32.totalorder %v6778_v39, %v772_v41  ;;  %2491 = vperm.xlu1 %5502, %v2468_v37   ;;  %2488 = vperm.xlu0 %5501, %v2467_v38   ;;  %vm962_vm3 = vcmp.eq.s32.totalorder %v6773_v36, %v772_v41 }
 0x222   : > { %vm6786_vm5 = vmpackc.low %vm966_vm1, %vm964_vm0  ;;  %vm965_vm10 = vcmp.eq.s32.totalorder %v6778_v39, %v778_v40 }
 0x223   : > { %vm4329_vm6 = vmpackc.low %vm961_vm2, %vm959_vm4 }
 0x224   : > { %v784_v45 = vpop.permute.xlu1 %783  ;;  %v781_v46 = vpop.permute.xlu0 %780  ;;  %vm4327_vm8 = vmpackc.low %vm962_vm3, %vm960_vm7 }
 0x225   : > { %2497 = vperm.xlu1 %5502, %v2470_v42   ;;  %4328 = vmatprep.mubr.msk.bf16.mxu0 %vm4327_vm8, %v10359_v48  ;;  %vm970_vm11 = vcmp.eq.s32.totalorder %v6773_v36, %v784_v45  ;;  %vm968_vm12 = vcmp.eq.s32.totalorder %v6773_v36, %v781_v46  ;;  %vm4333_vm13 = vmpackc.low %vm965_vm10, %vm963_vm9  ;;  %vm969_vm15 = vcmp.eq.s32.totalorder %v6778_v39, %v784_v45 }
 0x226   : > { %4456 = vmatprep.mubr.msk.bf16.mxu1 %vm4327_vm8, %v10359_v48  ;;  %4330 = vmatmul.mubr.msk.bf16.vlgmr.msra.gmra.mrb[0].mxu0 %vm4329_vm6, %v10359_v48  ;;  %vm4335_vm14 = vmpackc.low %vm970_vm11, %vm968_vm12  ;;  %vm967_vm0 = vcmp.eq.s32.totalorder %v6778_v39, %v781_v46 }
 0x227   : > { %4458 = vmatmul.mubr.msk.bf16.vlgmr.msra.gmra.mrb[0].mxu1 %vm4329_vm6, %v10359_v48  ;;  %2494 = vperm.xlu0 %5501, %v2469_v47   ;;  %vm4337_vm3 = vmpackc.low %vm969_vm15, %vm967_vm0 }
 0x228   : > { %4332 = vmatprep.mubr.msk.bf16.mxu0 %vm6786_vm5, %v10359_v48  ;;  %v790_v50 = vpop.permute.xlu1 %789  ;;  %v787_v51 = vpop.permute.xlu0 %786  ;;  %4460 = vmatprep.mubr.msk.bf16.mxu1 %vm6786_vm5, %v10359_v48 }
 0x229   : > { %2503 = vperm.xlu1 %5502, %v2472_v49   ;;  %vm974_vm1 = vcmp.eq.s32.totalorder %v6773_v36, %v790_v50  ;;  %vm972_vm2 = vcmp.eq.s32.totalorder %v6773_v36, %v787_v51  ;;  %vm973_vm5 = vcmp.eq.s32.totalorder %v6778_v39, %v790_v50  ;;  %vm971_vm6 = vcmp.eq.s32.totalorder %v6778_v39, %v787_v51 }
 0x22a   : > { %vm4339_vm4 = vmpackc.low %vm974_vm1, %vm972_vm2 }
 0x22b   : > { %2500 = vperm.xlu0 %5501, %v2471_v52   ;;  %vm4341_vm9 = vmpackc.low %vm973_vm5, %vm971_vm6 }
 0x22c   : > { %v796_v54 = vpop.permute.xlu1 %795  ;;  %v793_v55 = vpop.permute.xlu0 %792 }
 0x22d   : > { %2509 = vperm.xlu1 %5502, %v2474_v53   ;;  %vm978_vm7 = vcmp.eq.s32.totalorder %v6773_v36, %v796_v54  ;;  %vm976_vm8 = vcmp.eq.s32.totalorder %v6773_v36, %v793_v55  ;;  %vm977_vm11 = vcmp.eq.s32.totalorder %v6778_v39, %v796_v54  ;;  %vm975_vm12 = vcmp.eq.s32.totalorder %v6778_v39, %v793_v55  ;;  %v756_v54 = vld [vmem:[%s492_s12] sm:$0xf] }
 0x22e   : > { %4334 = vmatmul.mubr.msk.bf16.gmra.mrb[4].mxu0 %vm4333_vm13, %v10359_v48  ;;  %vm4343_vm10 = vmpackc.low %vm978_vm7, %vm976_vm8 }
 0x22f   : > { %4462 = vmatmul.mubr.msk.bf16.gmra.mrb[4].mxu1 %vm4333_vm13, %v10359_v48  ;;  %2506 = vperm.xlu0 %5501, %v2473_v56   ;;  %vm4345_vm15 = vmpackc.low %vm977_vm11, %vm975_vm12 }
 0x230   : > { %4336 = vmatprep.mubr.msk.bf16.mxu0 %vm4335_vm14, %v10359_v48  ;;  %v802_v58 = vpop.permute.xlu1 %801  ;;  %v799_v59 = vpop.permute.xlu0 %798  ;;  %4464 = vmatprep.mubr.msk.bf16.mxu1 %vm4335_vm14, %v10359_v48 }
 0x231   : > { %2515 = vperm.xlu1 %5502, %v2476_v57   ;;  %vm982_vm13 = vcmp.eq.s32.totalorder %v6773_v36, %v802_v58  ;;  %vm980_vm14 = vcmp.eq.s32.totalorder %v6773_v36, %v799_v59  ;;  %vm981_vm1 = vcmp.eq.s32.totalorder %v6778_v39, %v802_v58  ;;  %vm979_vm2 = vcmp.eq.s32.totalorder %v6778_v39, %v799_v59 }
 0x232   : > { %vm4347_vm0 = vmpackc.low %vm982_vm13, %vm980_vm14  ;;  %v7053_v57 = vsub.s32 2, %v6762_v28 }
 0x233   : > { %2512 = vperm.xlu0 %5501, %v2475_v60   ;;  %vm4349_vm5 = vmpackc.low %vm981_vm1, %vm979_vm2 }
 0x234   : > { %v6821_v62 = vpop.permute.xlu1 %807  ;;  %v6823_v63 = vpop.permute.xlu0 %804  ;;  %10663 = vst [vmem:[#allocation51_spill] sm:$0xff] %v7053_v57 }
 0x235   : > { %2521 = vperm.xlu1 %5502, %v2478_v61   ;;  %vm985_vm7 = vcmp.eq.s32.totalorder %v6778_v39, %v6821_v62  ;;  %vm983_vm8 = vcmp.eq.s32.totalorder %v6778_v39, %v6823_v63  ;;  %v7068_v61 = vld [vmem:[%s483_s11] sm:$0xf] }
 0x236   : > { %4338 = vmatmul.mubr.msk.bf16.gmra.mrb[8].mxu0 %vm4337_vm3, %v10359_v48  ;;  %vm4353_vm11 = vmpackc.low %vm985_vm7, %vm983_vm8 }
 0x237   : > { %4466 = vmatmul.mubr.msk.bf16.gmra.mrb[8].mxu1 %vm4337_vm3, %v10359_v48  ;;  %2518 = vperm.xlu0 %5501, %v2477_v0   ;;  %vm986_vm3 = vcmp.eq.s32.totalorder %v6773_v36, %v6821_v62 }
 0x238   : > { %4340 = vmatprep.mubr.msk.bf16.mxu0 %vm4339_vm4, %v10359_v48  ;;  %v6830_v2 = vpop.permute.xlu1 %813  ;;  %v6832_v3 = vpop.permute.xlu0 %810  ;;  %4468 = vmatprep.mubr.msk.bf16.mxu1 %vm4339_vm4, %v10359_v48  ;;  %vm984_vm4 = vcmp.eq.s32.totalorder %v6773_v36, %v6823_v63 }
 0x239   : > { %2527 = vperm.xlu1 %5502, %v2480_v1   ;;  %vm4351_vm6 = vmpackc.low %vm986_vm3, %vm984_vm4  ;;  %vm989_vm13 = vcmp.eq.s32.totalorder %v6778_v39, %v6830_v2  ;;  %vm987_vm14 = vcmp.eq.s32.totalorder %v6778_v39, %v6832_v3 }
 0x23a   : > { %vm4357_vm1 = vmpackc.low %vm989_vm13, %vm987_vm14 }
 0x23b   : > { %2524 = vperm.xlu0 %5501, %v2479_v4   ;;  %v7095_v4 = vrot.slane %v7068_v61, %v7053_v57 }
 0x23c   : > { %v6840_v5 = vpop.permute.xlu1 %819  ;;  %v6842_v6 = vpop.permute.xlu0 %816 }
 0x23d   : > { %vm993_vm3 = vcmp.eq.s32.totalorder %v6778_v39, %v6840_v5  ;;  %vm991_vm4 = vcmp.eq.s32.totalorder %v6778_v39, %v6842_v6  ;;  %10665 = vst [vmem:[#allocation53_spill] sm:$0xff] %v7095_v4 }
 0x23e   : > { %4342 = vmatmul.mubr.msk.bf16.gmra.mrb[12].mxu0 %vm4341_vm9, %v10359_v48  ;;  %vm4361_vm7 = vmpackc.low %vm993_vm3, %vm991_vm4 }
 0x23f   : > { %4470 = vmatmul.mubr.msk.bf16.gmra.mrb[12].mxu1 %vm4341_vm9, %v10359_v48  ;;  %4344 = vmatprep.mubr.msk.bf16.mxu0 %vm4343_vm10, %v10359_v48  ;;  %vm990_vm9 = vcmp.eq.s32.totalorder %v6773_v36, %v6830_v2  ;;  %v7085_v2 = vrot.slane %v7068_v61, %v6770_v33 }
 0x240   : > { %4472 = vmatprep.mubr.msk.bf16.mxu1 %vm4343_vm10, %v10359_v48  ;;  %v6848_v7 = vpop.permute.xlu1 %825  ;;  %v6850_v8 = vpop.permute.xlu0 %822  ;;  %vm988_vm10 = vcmp.eq.s32.totalorder %v6773_v36, %v6832_v3 }
 0x241   : > { %vm4355_vm12 = vmpackc.low %vm990_vm9, %vm988_vm10  ;;  %vm997_vm9 = vcmp.eq.s32.totalorder %v6778_v39, %v6848_v7  ;;  %vm995_vm10 = vcmp.eq.s32.totalorder %v6778_v39, %v6850_v8 }
 0x242   : > { %vm4365_vm13 = vmpackc.low %vm997_vm9, %vm995_vm10 }
 0x244   : > { %v6856_v9 = vpop.permute.xlu1 %831  ;;  %v6858_v10 = vpop.permute.xlu0 %828 }
 0x246   : > { %4346 = vmatmul.mubr.msk.bf16.gmra.mrb[16].mxu0 %vm4345_vm15, %v10359_v48 }
 0x247   : > { %4474 = vmatmul.mubr.msk.bf16.gmra.mrb[16].mxu1 %vm4345_vm15, %v10359_v48  ;;  %4348 = vmatprep.mubr.msk.bf16.mxu0 %vm4347_vm0, %v10359_v48  ;;  %vm994_vm15 = vcmp.eq.s32.totalorder %v6773_v36, %v6840_v5 }
 0x248   : > { %4476 = vmatprep.mubr.msk.bf16.mxu1 %vm4347_vm0, %v10359_v48  ;;  %v6864_v11 = vpop.permute.xlu1 %837  ;;  %v6866_v12 = vpop.permute.xlu0 %834  ;;  %vm992_vm0 = vcmp.eq.s32.totalorder %v6773_v36, %v6842_v6 }
 0x249   : > { %vm4359_vm2 = vmpackc.low %vm994_vm15, %vm992_vm0  ;;  %vm1001_vm15 = vcmp.eq.s32.totalorder %v6778_v39, %v6856_v9  ;;  %vm999_vm0 = vcmp.eq.s32.totalorder %v6778_v39, %v6858_v10 }
 0x24a   : > { %vm4369_vm3 = vmpackc.low %vm1001_vm15, %vm999_vm0 }
 0x24c   : > { %v6874_v13 = vpop.permute.xlu1 %843  ;;  %v6876_v14 = vpop.permute.xlu0 %840 }
 0x24e   : > { %4350 = vmatmul.mubr.msk.bf16.gmra.mrb[20].mxu0 %vm4349_vm5, %v10359_v48 }
 0x24f   : > { %4478 = vmatmul.mubr.msk.bf16.gmra.mrb[20].mxu1 %vm4349_vm5, %v10359_v48  ;;  %4352 = vmatprep.mubr.msk.bf16.mxu0 %vm4351_vm6, %v10359_v48  ;;  %vm998_vm5 = vcmp.eq.s32.totalorder %v6773_v36, %v6848_v7  ;;  %v7107_v7 = vsub.s32 3, %v6762_v28  ;;  %v10677_v28 = vmov 0 }
 0x250   : > { %4480 = vmatprep.mubr.msk.bf16.mxu1 %vm4351_vm6, %v10359_v48  ;;  %v6882_v15 = vpop.permute.xlu1 %849  ;;  %v6884_v16 = vpop.permute.xlu0 %846  ;;  %vm996_vm6 = vcmp.eq.s32.totalorder %v6773_v36, %v6850_v8  ;;  %v10668_v8 = vmov 0 }
 0x251   : > { %vm4363_vm8 = vmpackc.low %vm998_vm5, %vm996_vm6  ;;  %vm1005_vm5 = vcmp.eq.s32.totalorder %v6778_v39, %v6864_v11  ;;  %vm1003_vm6 = vcmp.eq.s32.totalorder %v6778_v39, %v6866_v12  ;;  %10667 = vst [vmem:[#allocation55_spill] sm:$0xff] %v7107_v7 }
 0x252   : > { %vm4373_vm9 = vmpackc.low %vm1005_vm5, %vm1003_vm6 }
 0x254   : > { %v6894_v17 = vpop.permute.xlu1 %855  ;;  %v6896_v18 = vpop.permute.xlu0 %852 }
 0x256   : > { %4354 = vmatmul.mubr.msk.bf16.gmra.mrb[24].mxu0 %vm4353_vm11, %v10359_v48 }
 0x257   : > { %4482 = vmatmul.mubr.msk.bf16.gmra.mrb[24].mxu1 %vm4353_vm11, %v10359_v48  ;;  %4356 = vmatprep.mubr.msk.bf16.mxu0 %vm4355_vm12, %v10359_v48  ;;  %vm1002_vm11 = vcmp.eq.s32.totalorder %v6773_v36, %v6856_v9 }
 0x258   : > { %4484 = vmatprep.mubr.msk.bf16.mxu1 %vm4355_vm12, %v10359_v48  ;;  %v6902_v19 = vpop.permute.xlu1 %861  ;;  %v6904_v20 = vpop.permute.xlu0 %858  ;;  %vm1000_vm12 = vcmp.eq.s32.totalorder %v6773_v36, %v6858_v10 }
 0x259   : > { %vm4367_vm14 = vmpackc.low %vm1002_vm11, %vm1000_vm12  ;;  %vm1009_vm11 = vcmp.eq.s32.totalorder %v6778_v39, %v6874_v13  ;;  %vm1007_vm12 = vcmp.eq.s32.totalorder %v6778_v39, %v6876_v14 }
 0x25a   : > { %vm4377_vm15 = vmpackc.low %vm1009_vm11, %vm1007_vm12  ;;  %vm1020_vm11 = vcmp.eq.s32.totalorder %v6773_v36, %v6904_v20  ;;  %vm3038_vm12 = vcmp.eq.s32.totalorder %v756_v54, 1 }
 0x25b   : > { %v7075_v63 = vsel %vm3038_vm12, 1, %v6024_v43 }
 0x25c   : > { %v6914_v21 = vpop.permute.xlu1 %867  ;;  %v6916_v22 = vpop.permute.xlu0 %864  ;;  %10664 = vst [vmem:[#allocation52_spill] sm:$0xff] %v7075_v63  ;;  %v3051_v6 = vrot.slane %v7075_v63, %v7053_v57 }
 0x25e   : > { %4358 = vmatmul.mubr.msk.bf16.gmra.mrb[28].mxu0 %vm4357_vm1, %v10359_v48 }
 0x25f   : > { %4486 = vmatmul.mubr.msk.bf16.gmra.mrb[28].mxu1 %vm4357_vm1, %v10359_v48  ;;  %4360 = vmatprep.mubr.msk.bf16.mxu0 %vm4359_vm2, %v10359_v48  ;;  %vm1006_vm1 = vcmp.eq.s32.totalorder %v6773_v36, %v6864_v11 }
 0x260   : > { %4488 = vmatprep.mubr.msk.bf16.mxu1 %vm4359_vm2, %v10359_v48  ;;  %v6922_v23 = vpop.permute.xlu1 %873  ;;  %v6924_v24 = vpop.permute.xlu0 %870  ;;  %vm1004_vm2 = vcmp.eq.s32.totalorder %v6773_v36, %v6866_v12 }
 0x261   : > { %vm4371_vm4 = vmpackc.low %vm1006_vm1, %vm1004_vm2  ;;  %vm1013_vm1 = vcmp.eq.s32.totalorder %v6778_v39, %v6882_v15  ;;  %vm1011_vm2 = vcmp.eq.s32.totalorder %v6778_v39, %v6884_v16  ;;  %vm1030_vm12 = vcmp.eq.s32.totalorder %v6773_v36, %v6922_v23 }
 0x262   : > { %vm4381_vm5 = vmpackc.low %vm1013_vm1, %vm1011_vm2  ;;  %vm1019_vm1 = vcmp.eq.s32.totalorder %v6778_v39, %v6904_v20  ;;  %vm1026_vm2 = vcmp.eq.s32.totalorder %v6773_v36, %v6914_v21  ;;  %v10693_v20 = vmov 0 }
 0x264   : > { %v6934_v25 = vpop.permute.xlu1 %879  ;;  %v6936_v26 = vpop.permute.xlu0 %876 }
 0x266   : > { %4362 = vmatmul.mubr.msk.bf16.gmra.mrb[32].mxu0 %vm4361_vm7, %v10359_v48 }
 0x267   : > { %4490 = vmatmul.mubr.msk.bf16.gmra.mrb[32].mxu1 %vm4361_vm7, %v10359_v48  ;;  %4364 = vmatprep.mubr.msk.bf16.mxu0 %vm4363_vm8, %v10359_v48  ;;  %vm1010_vm7 = vcmp.eq.s32.totalorder %v6773_v36, %v6874_v13 }
 0x268   : > { %4492 = vmatprep.mubr.msk.bf16.mxu1 %vm4363_vm8, %v10359_v48  ;;  %v6942_v27 = vpop.permute.xlu1 %885  ;;  %v6944_v30 = vpop.permute.xlu0 %882  ;;  %vm1008_vm8 = vcmp.eq.s32.totalorder %v6773_v36, %v6876_v14  ;;  %v7154_v14 = vrot.slane %v7068_v61, %v7107_v7 }
 0x269   : > { %vm4375_vm10 = vmpackc.low %vm1010_vm7, %vm1008_vm8  ;;  %vm2625_vm7 = vcmp.eq.s32.totalorder %v756_v54, 0  ;;  %vm1017_vm8 = vcmp.eq.s32.totalorder %v6778_v39, %v6894_v17 }
 0x26a   : > { %v7064_v60 = vsel %vm2625_vm7, 1, %v6024_v43  ;;  %10682 = vst [vmem:[#allocation60_spill] sm:$0xff] %v7154_v14 }
 0x26b   : > { %v2630_v62 = vrot.slane %v7064_v60, %v6770_v33  ;;  %v2638_v3 = vrot.slane %v7064_v60, %v7053_v57 }
 0x26c   : > { %v6954_v31 = vpop.permute.xlu1 %891  ;;  %v6956_v32 = vpop.permute.xlu0 %888 }
 0x26e   : > { %4366 = vmatmul.mubr.msk.bf16.gmra.mrb[36].mxu0 %vm4365_vm13, %v10359_v48 }
 0x26f   : > { %4494 = vmatmul.mubr.msk.bf16.gmra.mrb[36].mxu1 %vm4365_vm13, %v10359_v48  ;;  %4368 = vmatprep.mubr.msk.bf16.mxu0 %vm4367_vm14, %v10359_v48  ;;  %vm1014_vm13 = vcmp.eq.s32.totalorder %v6773_v36, %v6882_v15  ;;  %v10683_v15 = vmov 0 }
 0x270   : > { %4496 = vmatprep.mubr.msk.bf16.mxu1 %vm4367_vm14, %v10359_v48  ;;  %v6962_v34 = vpop.permute.xlu1 %897  ;;  %v6964_v35 = vpop.permute.xlu0 %894  ;;  %vm1012_vm14 = vcmp.eq.s32.totalorder %v6773_v36, %v6884_v16  ;;  %v10686_v16 = vmov 0 }
 0x271   : > { %vm4379_vm0 = vmpackc.low %vm1014_vm13, %vm1012_vm14  ;;  %vm3430_vm14 = vcmp.eq.s32.totalorder %v756_v54, 2  ;;  %v10700_v54 = vmov 0 }
 0x272   : > { %v7098_v5 = vsel %vm3430_vm14, 1, %v6024_v43  ;;  %v10672_v43 = vmov 0  ;;  %vm1025_vm14 = vcmp.eq.s32.totalorder %v6778_v39, %v6914_v21 }
 0x273   : > { %10666 = vst [vmem:[#allocation54_spill] sm:$0xff] %v7098_v5  ;;  %v3443_v10 = vrot.slane %v7098_v5, %v7053_v57 }
 0x274   : > { %v6974_v37 = vpop.permute.xlu1 %903  ;;  %v6976_v38 = vpop.permute.xlu0 %900 }
 0x276   : > { %4370 = vmatmul.mubr.msk.bf16.gmra.mrb[40].mxu0 %vm4369_vm3, %v10359_v48 }
 0x277   : > { %4498 = vmatmul.mubr.msk.bf16.gmra.mrb[40].mxu1 %vm4369_vm3, %v10359_v48  ;;  %4372 = vmatprep.mubr.msk.bf16.mxu0 %vm4371_vm4, %v10359_v48  ;;  %vm1018_vm3 = vcmp.eq.s32.totalorder %v6773_v36, %v6894_v17 }
 0x278   : > { %4500 = vmatprep.mubr.msk.bf16.mxu1 %vm4371_vm4, %v10359_v48  ;;  %v6982_v40 = vpop.permute.xlu1 %909  ;;  %v6984_v41 = vpop.permute.xlu0 %906  ;;  %vm1016_vm4 = vcmp.eq.s32.totalorder %v6773_v36, %v6896_v18 }
 0x279   : > { %vm4383_vm6 = vmpackc.low %vm1018_vm3, %vm1016_vm4  ;;  %vm1024_vm3 = vcmp.eq.s32.totalorder %v6773_v36, %v6916_v22  ;;  %vm7109_vm4 = vcmp.eq.s32.totalorder %v2630_v62, 1  ;;  %v10704_v62 = vmov 0 }
 0x27a   : > { %v10669_v8 = vsel %vm7109_vm4, 4294967295, %v10668_v8  ;;  %vm4391_vm7 = vmpackc.low %vm1026_vm2, %vm1024_vm3 }
 0x27c   : > { %v6994_v42 = vpop.permute.xlu1 %915  ;;  %v6996_v44 = vpop.permute.xlu0 %912 }
 0x27e   : > { %4374 = vmatmul.mubr.msk.bf16.gmra.mrb[44].mxu0 %vm4373_vm9, %v10359_v48 }
 0x27f   : > { %4502 = vmatmul.mubr.msk.bf16.gmra.mrb[44].mxu1 %vm4373_vm9, %v10359_v48  ;;  %4376 = vmatprep.mubr.msk.bf16.mxu0 %vm4375_vm10, %v10359_v48  ;;  %vm1015_vm9 = vcmp.eq.s32.totalorder %v6778_v39, %v6896_v18 }
 0x280   : > { %4504 = vmatprep.mubr.msk.bf16.mxu1 %vm4375_vm10, %v10359_v48  ;;  %v7002_v45 = vpop.permute.xlu1 %921  ;;  %v7004_v46 = vpop.permute.xlu0 %918  ;;  %vm1022_vm10 = vcmp.eq.s32.totalorder %v6773_v36, %v6902_v19  ;;  %vm4385_vm13 = vmpackc.low %vm1017_vm8, %vm1015_vm9 }
 0x284   : > { %v7014_v47 = vpop.permute.xlu1 %927  ;;  %v7016_v49 = vpop.permute.xlu0 %924 }
 0x286   : > { %4378 = vmatmul.mubr.msk.bf16.gmra.mrb[48].mxu0 %vm4377_vm15, %v10359_v48 }
 0x287   : > { %4506 = vmatmul.mubr.msk.bf16.gmra.mrb[48].mxu1 %vm4377_vm15, %v10359_v48  ;;  %4380 = vmatprep.mubr.msk.bf16.mxu0 %vm4379_vm0, %v10359_v48  ;;  %vm4387_vm15 = vmpackc.low %vm1022_vm10, %vm1020_vm11  ;;  %vm7131_vm10 = vcmp.eq.s32.totalorder %v3051_v6, 1  ;;  %v10708_v6 = vmov 0 }
 0x288   : > { %4508 = vmatprep.mubr.msk.bf16.mxu1 %vm4379_vm0, %v10359_v48  ;;  %v7022_v50 = vpop.permute.xlu1 %933  ;;  %v7024_v51 = vpop.permute.xlu0 %930  ;;  %vm1021_vm0 = vcmp.eq.s32.totalorder %v6778_v39, %v6902_v19  ;;  %v10678_v28 = vsel %vm7131_vm10, 4294967295, %v10677_v28  ;;  %v10689_v19 = vmov 0 }
 0x289   : > { %10679 = vst [vmem:[#allocation59_spill] sm:$0xff] %v10678_v28 }
 0x28c   : > { %v7034_v52 = vpop.permute.xlu1 %939  ;;  %v7036_v53 = vpop.permute.xlu0 %936 }
 0x28e   : > { %4382 = vmatmul.mubr.msk.bf16.gmra.mrb[52].mxu0 %vm4381_vm5, %v10359_v48 }
 0x28f   : > { %4510 = vmatmul.mubr.msk.bf16.gmra.mrb[52].mxu1 %vm4381_vm5, %v10359_v48  ;;  %4384 = vmatprep.mubr.msk.bf16.mxu0 %vm4383_vm6, %v10359_v48  ;;  %vm7113_vm5 = vmpackc.low %vm1021_vm0, %vm1019_vm1  ;;  %vm7171_vm1 = vcmp.eq.s32.totalorder %v3443_v10, 1 }
 0x290   : > { %4512 = vmatprep.mubr.msk.bf16.mxu1 %vm4383_vm6, %v10359_v48  ;;  %v7044_v55 = vpop.permute.xlu1 %945  ;;  %v7046_v56 = vpop.permute.xlu0 %942  ;;  %vm7117_vm6 = vcmp.eq.s32.totalorder %v2638_v3, 1  ;;  %v10687_v16 = vsel %vm7171_vm1, 4294967295, %v10686_v16 }
 0x291   : > { %v10673_v43 = vsel %vm7117_vm6, 4294967295, %v10672_v43  ;;  %10688 = vst [vmem:[#allocation62_spill] sm:$0xff] %v10687_v16 }
 0x292   : > { %10674 = vst [vmem:[#allocation56_spill] sm:$0xff] %v10673_v43 }
 0x294   : > { %v7059_v58 = vpop.permute.xlu1 %951  ;;  %v7061_v59 = vpop.permute.xlu0 %948 }
 0x296   : > { %4386 = vmatmul.mubr.msk.bf16.gmra.mrb[56].mxu0 %vm4385_vm13, %v10359_v48 }
 0x297   : > { %4514 = vmatmul.mubr.msk.bf16.gmra.mrb[56].mxu1 %vm4385_vm13, %v10359_v48  ;;  %4388 = vmatprep.mubr.msk.bf16.mxu0 %vm4387_vm15, %v10359_v48 }
 0x298   : > { %4516 = vmatprep.mubr.msk.bf16.mxu1 %vm4387_vm15, %v10359_v48  ;;  %v7079_v0 = vpop.permute.xlu1 %957  ;;  %v7081_v1 = vpop.permute.xlu0 %954  ;;  %vm1023_vm15 = vcmp.eq.s32.totalorder %v6778_v39, %v6916_v22 }
 0x29c   : > { %v7123_v11 = vpop.permute.xlu1 %2485  ;;  %v7125_v12 = vpop.permute.xlu0 %2482 }
 0x29d   : > { %10675 = vst [vmem:[#allocation57_spill] sm:$0xff] %v7123_v11  ;;  %10676 = vst [vmem:[#allocation58_spill] sm:$0xff] %v7125_v12  ;;  %vm10353_vm8 = vcmp.eq.s32.totalorder %v7123_v11, %v7085_v2  ;;  %vm10354_vm9 = vcmp.eq.s32.totalorder %v7123_v11, %v7095_v4  ;;  %vm10692_vm3 = vcmp.eq.s32.totalorder %v7123_v11, %v7095_v4 }
 0x29e   : > { %vm7140_vm11 = vmand %vm10353_vm8, %vm7109_vm4  ;;  %4390 = vmatmul.mubr.msk.bf16.gmra.mrb[60].mxu0 %vm7113_vm5, %v10359_v48  ;;  %vm10699_vm8 = vcmp.eq.s32.totalorder %v7125_v12, %v7095_v4 }
 0x29f   : > { %vm7161_vm0 = vmand %vm10354_vm9, %vm7117_vm6  ;;  %4518 = vmatmul.mubr.msk.bf16.gmra.mrb[60].mxu1 %vm7113_vm5, %v10359_v48  ;;  %4392 = vmatprep.mubr.msk.bf16.mxu0 %vm4391_vm7, %v10359_v48  ;;  %vm1041_vm5 = vcmp.eq.s32.totalorder %v6778_v39, %v6954_v31 }
 0x2a0   : > { %v10684_v15 = vsel %vm7161_vm0, 4294967295, %v10683_v15  ;;  %4520 = vmatprep.mubr.msk.bf16.mxu1 %vm4391_vm7, %v10359_v48  ;;  %v7177_v17 = vpop.permute.xlu1 %2491  ;;  %v7179_v18 = vpop.permute.xlu0 %2488  ;;  %vm7186_vm2 = vmand %vm10354_vm9, %vm7131_vm10  ;;  %vm1028_vm9 = vcmp.eq.s32.totalorder %v6773_v36, %v6924_v24 }
 0x2a1   : > { %10685 = vst [vmem:[#allocation61_spill] sm:$0xff] %v10684_v15  ;;  %v10690_v19 = vsel %vm7186_vm2, 4294967295, %v10689_v19  ;;  %vm4393_vm7 = vmpackc.low %vm1025_vm14, %vm1023_vm15  ;;  %vm10696_vm14 = vcmp.eq.s32.totalorder %v7125_v12, %v7085_v2 }
 0x2a2   : > { %10691 = vst [vmem:[#allocation63_spill] sm:$0xff] %v10690_v19  ;;  %vm7207_vm2 = vmand %vm10692_vm3, %vm7171_vm1 }
 0x2a3   : > { %v10694_v20 = vsel %vm7207_vm2, 4294967295, %v10693_v20  ;;  %vm7216_vm15 = vmand %vm10696_vm14, %vm7109_vm4  ;;  %vm1027_vm14 = vcmp.eq.s32.totalorder %v6778_v39, %v6924_v24 }
 0x2a4   : > { %10695 = vst [vmem:[#allocation64_spill] sm:$0xff] %v10694_v20  ;;  %v7220_v22 = vpop.permute.xlu1 %2497  ;;  %vm7227_vm3 = vmand %vm10699_vm8, %vm7117_vm6 }
 0x2a5   : > { %v10701_v54 = vsel %vm7227_vm3, 4294967295, %v10700_v54  ;;  %vm4395_vm13 = vmpackc.low %vm1030_vm12, %vm1028_vm9 }
 0x2a6   : > { %10702 = vst [vmem:[#allocation65_spill] sm:$0xff] %v10701_v54  ;;  %vm10703_vm2 = vmmov %vm10699_vm8  ;;  %4394 = vmatmul.mubr.msk.bf16.gmra.mrb[64].mxu0 %vm4393_vm7, %v10359_v48  ;;  %v7246_v3 = vpop.permute.xlu0 %2494  ;;  %vm1029_vm8 = vcmp.eq.s32.totalorder %v6778_v39, %v6922_v23  ;;  %v10711_v23 = vmov 1.0|1.0   ;;  %v2634_v54 = vrot.slane %v7064_v60, %v6765_v29 }
 0x2a7   : > { %vm7240_vm4 = vmand %vm10703_vm2, %vm7131_vm10  ;;  %4522 = vmatmul.mubr.msk.bf16.gmra.mrb[64].mxu1 %vm4393_vm7, %v10359_v48  ;;  %4396 = vmatprep.mubr.msk.bf16.mxu0 %vm4395_vm13, %v10359_v48 }
 0x2a8   : > { %v10705_v62 = vsel %vm7240_vm4, 4294967295, %v10704_v62  ;;  %vm10707_vm12 = vmmov %vm10703_vm2  ;;  %4524 = vmatprep.mubr.msk.bf16.mxu1 %vm4395_vm13, %v10359_v48  ;;  %v7263_v9 = vpop.permute.xlu1 %2503  ;;  %vm1032_vm13 = vcmp.eq.s32.totalorder %v6773_v36, %v6936_v26 }
 0x2a9   : > { %10706 = vst [vmem:[#allocation66_spill] sm:$0xff] %v10705_v62  ;;  %vm7258_vm2 = vmand %vm10707_vm12, %vm7171_vm1  ;;  %vm1034_vm12 = vcmp.eq.s32.totalorder %v6773_v36, %v6934_v25  ;;  %vm1038_vm1 = vcmp.eq.s32.totalorder %v6773_v36, %v6942_v27 }
 0x2aa   : > { %v10709_v6 = vsel %vm7258_vm2, 4294967295, %v10708_v6  ;;  %v7273_v10 = vpop.permute.xlu0 %2500  ;;  %vm4397_vm9 = vmpackc.low %vm1029_vm8, %vm1027_vm14 }
 0x2ab   : > { %10710 = vst [vmem:[#allocation67_spill] sm:$0xff] %v10709_v6  ;;  %vm4399_vm6 = vmpackc.low %vm1034_vm12, %vm1032_vm13  ;;  %vm1033_vm12 = vcmp.eq.s32.totalorder %v6778_v39, %v6934_v25  ;;  %vm1031_vm13 = vcmp.eq.s32.totalorder %v6778_v39, %v6936_v26 }
 0x2ac   : > { %v7283_v48 = vpop.permute.xlu1 %2509  ;;  %vm4401_vm7 = vmpackc.low %vm1033_vm12, %vm1031_vm13  ;;  %vm1037_vm12 = vcmp.eq.s32.totalorder %v6778_v39, %v6942_v27  ;;  %vm1035_vm13 = vcmp.eq.s32.totalorder %v6778_v39, %v6944_v30  ;;  %v3043_v27 = vrot.slane %v7075_v63, %v6770_v33 }
 0x2ad   : > { %vm4405_vm10 = vmpackc.low %vm1037_vm12, %vm1035_vm13  ;;  %vm1044_vm12 = vcmp.eq.s32.totalorder %v6773_v36, %v6964_v35 }
 0x2ae   : > { %4398 = vmatmul.mubr.msk.bf16.gmra.mrb[68].mxu0 %vm4397_vm9, %v10711_v23  ;;  %v7291_v24 = vpop.permute.xlu0 %2506 }
 0x2af   : > { %4526 = vmatmul.mubr.msk.bf16.gmra.mrb[68].mxu1 %vm4397_vm9, %v10711_v23  ;;  %4400 = vmatprep.mubr.msk.bf16.mxu0 %vm4399_vm6, %v10711_v23  ;;  %vm1039_vm9 = vcmp.eq.s32.totalorder %v6778_v39, %v6956_v32 }
 0x2b0   : > { %4528 = vmatprep.mubr.msk.bf16.mxu1 %vm4399_vm6, %v10711_v23  ;;  %v7303_v16 = vpop.permute.xlu1 %2515  ;;  %vm1036_vm6 = vcmp.eq.s32.totalorder %v6773_v36, %v6944_v30  ;;  %vm4409_vm13 = vmpackc.low %vm1041_vm5, %vm1039_vm9  ;;  %vm1048_vm5 = vcmp.eq.s32.totalorder %v6773_v36, %v6976_v38  ;;  %v10718_v30 = vmov 0 }
 0x2b1   : > { %10712 = vst [vmem:[#allocation68_spill] sm:$0xff] %v7303_v16  ;;  %vm4403_vm14 = vmpackc.low %vm1038_vm1, %vm1036_vm6  ;;  %vm1042_vm6 = vcmp.eq.s32.totalorder %v6773_v36, %v6954_v31  ;;  %vm1046_vm1 = vcmp.eq.s32.totalorder %v6773_v36, %v6962_v34  ;;  %v10722_v31 = vmov 0 }
 0x2b2   : > { %v7313_v28 = vpop.permute.xlu0 %2512 }
 0x2b3   : > { %10713 = vst [vmem:[#allocation69_spill] sm:$0xff] %v7313_v28 }
 0x2b4   : > { %v7323_v57 = vpop.permute.xlu1 %2521 }
 0x2b5   : > { %10714 = vst [vmem:[#allocation70_spill] sm:$0xff] %v7323_v57 }
 0x2b6   : > { %4402 = vmatmul.mubr.msk.bf16.gmra.mrb[72].mxu0 %vm4401_vm7, %v10711_v23  ;;  %v7331_v25 = vpop.permute.xlu0 %2518 }
 0x2b7   : > { %4530 = vmatmul.mubr.msk.bf16.gmra.mrb[72].mxu1 %vm4401_vm7, %v10711_v23  ;;  %10715 = vst [vmem:[#allocation71_spill] sm:$0xff] %v7331_v25  ;;  %4404 = vmatprep.mubr.msk.bf16.mxu0 %vm4403_vm14, %v10711_v23 }
 0x2b8   : > { %4532 = vmatprep.mubr.msk.bf16.mxu1 %vm4403_vm14, %v10711_v23  ;;  %v7339_v26 = vpop.permute.xlu1 %2527  ;;  %vm1040_vm14 = vcmp.eq.s32.totalorder %v6773_v36, %v6956_v32  ;;  %v10726_v32 = vmov 0 }
 0x2b9   : > { %10716 = vst [vmem:[#allocation72_spill] sm:$0xff] %v7339_v26  ;;  %vm4407_vm8 = vmpackc.low %vm1042_vm6, %vm1040_vm14  ;;  %vm1050_vm14 = vcmp.eq.s32.totalorder %v6773_v36, %v6974_v37 }
 0x2ba   : > { %v7349_v43 = vpop.permute.xlu0 %2524  ;;  %vm4411_vm6 = vmpackc.low %vm1046_vm1, %vm1044_vm12  ;;  %vm1049_vm12 = vcmp.eq.s32.totalorder %v6778_v39, %v6974_v37 }
 0x2bb   : > { %10717 = vst [vmem:[#allocation73_spill] sm:$0xff] %v7349_v43  ;;  %vm4415_vm1 = vmpackc.low %vm1050_vm14, %vm1048_vm5  ;;  %vm7397_vm5 = vcmp.eq.s32.totalorder %v3043_v27, 1 }
 0x2bc   : > { %v10719_v30 = vsel %vm7397_vm5, 4294967295, %v10718_v30 }
 0x2bd   : > { %10720 = vst [vmem:[#allocation74_spill] sm:$0xff] %v10719_v30 }
 0x2be   : > { %4406 = vmatmul.mubr.msk.bf16.gmra.mrb[76].mxu0 %vm4405_vm10, %v10711_v23 }
 0x2bf   : > { %4534 = vmatmul.mubr.msk.bf16.gmra.mrb[76].mxu1 %vm4405_vm10, %v10711_v23  ;;  %4408 = vmatprep.mubr.msk.bf16.mxu0 %vm4407_vm8, %v10711_v23  ;;  %vm1045_vm10 = vcmp.eq.s32.totalorder %v6778_v39, %v6962_v34 }
 0x2c0   : > { %4536 = vmatprep.mubr.msk.bf16.mxu1 %vm4407_vm8, %v10711_v23  ;;  %vm1043_vm8 = vcmp.eq.s32.totalorder %v6778_v39, %v6964_v35  ;;  %v10861_v6 = vld [vmem:[#allocation72_spill] sm:$0xff] }
 0x2c1   : > { %vm4413_vm9 = vmpackc.low %vm1045_vm10, %vm1043_vm8  ;;  %vm1052_vm10 = vcmp.eq.s32.totalorder %v6773_v36, %v6984_v41 }
 0x2c6   : > { %4410 = vmatmul.mubr.msk.bf16.gmra.mrb[80].mxu0 %vm4409_vm13, %v10711_v23 }
 0x2c7   : > { %4538 = vmatmul.mubr.msk.bf16.gmra.mrb[80].mxu1 %vm4409_vm13, %v10711_v23  ;;  %4412 = vmatprep.mubr.msk.bf16.mxu0 %vm4411_vm6, %v10711_v23  ;;  %vm1047_vm13 = vcmp.eq.s32.totalorder %v6778_v39, %v6976_v38 }
 0x2c8   : > { %4540 = vmatprep.mubr.msk.bf16.mxu1 %vm4411_vm6, %v10711_v23  ;;  %vm1054_vm6 = vcmp.eq.s32.totalorder %v6773_v36, %v6982_v40  ;;  %vm4417_vm8 = vmpackc.low %vm1049_vm12, %vm1047_vm13  ;;  %vm10721_vm12 = vcmp.eq.s32.totalorder %v7123_v11, %v7085_v2 }
 0x2c9   : > { %vm4419_vm14 = vmpackc.low %vm1054_vm6, %vm1052_vm10  ;;  %vm10725_vm6 = vcmp.eq.s32.totalorder %v7125_v12, %v7085_v2 }
 0x2ca   : > { %vm7414_vm13 = vmand %vm10721_vm12, %vm7397_vm5 }
 0x2cb   : > { %v10723_v31 = vsel %vm7414_vm13, 4294967295, %v10722_v31  ;;  %vm7423_vm10 = vmand %vm10725_vm6, %vm7397_vm5  ;;  %vm1057_vm6 = vcmp.eq.s32.totalorder %v6778_v39, %v6994_v42  ;;  %vm1066_vm5 = vcmp.eq.s32.totalorder %v6773_v36, %v7014_v47 }
 0x2cc   : > { %10724 = vst [vmem:[#allocation75_spill] sm:$0xff] %v10723_v31  ;;  %v10727_v32 = vsel %vm7423_vm10, 4294967295, %v10726_v32 }
 0x2cd   : > { %10728 = vst [vmem:[#allocation76_spill] sm:$0xff] %v10727_v32 }
 0x2ce   : > { %4414 = vmatmul.mubr.msk.bf16.gmra.mrb[84].mxu0 %vm4413_vm9, %v10711_v23 }
 0x2cf   : > { %4542 = vmatmul.mubr.msk.bf16.gmra.mrb[84].mxu1 %vm4413_vm9, %v10711_v23  ;;  %4416 = vmatprep.mubr.msk.bf16.mxu0 %vm4415_vm1, %v10711_v23  ;;  %vm1053_vm9 = vcmp.eq.s32.totalorder %v6778_v39, %v6982_v40 }
 0x2d0   : > { %4544 = vmatprep.mubr.msk.bf16.mxu1 %vm4415_vm1, %v10711_v23  ;;  %vm1051_vm1 = vcmp.eq.s32.totalorder %v6778_v39, %v6984_v41 }
 0x2d1   : > { %vm4421_vm7 = vmpackc.low %vm1053_vm9, %vm1051_vm1  ;;  %vm1055_vm9 = vcmp.eq.s32.totalorder %v6778_v39, %v6996_v44  ;;  %vm1062_vm1 = vcmp.eq.s32.totalorder %v6773_v36, %v7002_v45 }
 0x2d6   : > { %4418 = vmatmul.mubr.msk.bf16.gmra.mrb[88].mxu0 %vm4417_vm8, %v10711_v23 }
 0x2d7   : > { %4546 = vmatmul.mubr.msk.bf16.gmra.mrb[88].mxu1 %vm4417_vm8, %v10711_v23  ;;  %4420 = vmatprep.mubr.msk.bf16.mxu0 %vm4419_vm14, %v10711_v23  ;;  %vm1058_vm8 = vcmp.eq.s32.totalorder %v6773_v36, %v6994_v42 }
 0x2d8   : > { %4548 = vmatprep.mubr.msk.bf16.mxu1 %vm4419_vm14, %v10711_v23  ;;  %vm1056_vm14 = vcmp.eq.s32.totalorder %v6773_v36, %v6996_v44 }
 0x2d9   : > { %vm4423_vm2 = vmpackc.low %vm1058_vm8, %vm1056_vm14  ;;  %vm1060_vm8 = vcmp.eq.s32.totalorder %v6773_v36, %v7004_v46 }
 0x2da   : > { %vm4425_vm14 = vmpackc.low %vm1057_vm6, %vm1055_vm9  ;;  %vm1064_vm6 = vcmp.eq.s32.totalorder %v6773_v36, %v7016_v49 }
 0x2db   : > { %vm4427_vm12 = vmpackc.low %vm1062_vm1, %vm1060_vm8  ;;  %vm1063_vm8 = vcmp.eq.s32.totalorder %v6778_v39, %v7016_v49  ;;  %v3435_v49 = vrot.slane %v7098_v5, %v6770_v33 }
 0x2dc   : > { %vm4431_vm1 = vmpackc.low %vm1066_vm5, %vm1064_vm6  ;;  %vm1068_vm5 = vcmp.eq.s32.totalorder %v6773_v36, %v7024_v51  ;;  %vm1069_vm6 = vcmp.eq.s32.totalorder %v6778_v39, %v7022_v50 }
 0x2de   : > { %4422 = vmatmul.mubr.msk.bf16.gmra.mrb[92].mxu0 %vm4421_vm7, %v10711_v23 }
 0x2df   : > { %4550 = vmatmul.mubr.msk.bf16.gmra.mrb[92].mxu1 %vm4421_vm7, %v10711_v23  ;;  %4424 = vmatprep.mubr.msk.bf16.mxu0 %vm4423_vm2, %v10711_v23  ;;  %vm1059_vm7 = vcmp.eq.s32.totalorder %v6778_v39, %v7004_v46 }
 0x2e0   : > { %4552 = vmatprep.mubr.msk.bf16.mxu1 %vm4423_vm2, %v10711_v23  ;;  %vm1061_vm2 = vcmp.eq.s32.totalorder %v6778_v39, %v7002_v45 }
 0x2e1   : > { %vm4429_vm9 = vmpackc.low %vm1061_vm2, %vm1059_vm7 }
 0x2e6   : > { %4426 = vmatmul.mubr.msk.bf16.gmra.mrb[96].mxu0 %vm4425_vm14, %v10711_v23 }
 0x2e7   : > { %4554 = vmatmul.mubr.msk.bf16.gmra.mrb[96].mxu1 %vm4425_vm14, %v10711_v23  ;;  %4428 = vmatprep.mubr.msk.bf16.mxu0 %vm4427_vm12, %v10711_v23  ;;  %vm1070_vm14 = vcmp.eq.s32.totalorder %v6773_v36, %v7022_v50 }
 0x2e8   : > { %4556 = vmatprep.mubr.msk.bf16.mxu1 %vm4427_vm12, %v10711_v23  ;;  %vm1065_vm12 = vcmp.eq.s32.totalorder %v6778_v39, %v7014_v47  ;;  %vm4435_vm7 = vmpackc.low %vm1070_vm14, %vm1068_vm5  ;;  %vm1073_vm5 = vcmp.eq.s32.totalorder %v6778_v39, %v7034_v52 }
 0x2e9   : > { %vm4433_vm2 = vmpackc.low %vm1065_vm12, %vm1063_vm8  ;;  %vm1072_vm12 = vcmp.eq.s32.totalorder %v6773_v36, %v7036_v53 }
 0x2ee   : > { %4430 = vmatmul.mubr.msk.bf16.gmra.mrb[100].mxu0 %vm4429_vm9, %v10711_v23 }
 0x2ef   : > { %4558 = vmatmul.mubr.msk.bf16.gmra.mrb[100].mxu1 %vm4429_vm9, %v10711_v23  ;;  %4432 = vmatprep.mubr.msk.bf16.mxu0 %vm4431_vm1, %v10711_v23  ;;  %vm1067_vm9 = vcmp.eq.s32.totalorder %v6778_v39, %v7024_v51 }
 0x2f0   : > { %4560 = vmatprep.mubr.msk.bf16.mxu1 %vm4431_vm1, %v10711_v23  ;;  %vm1074_vm1 = vcmp.eq.s32.totalorder %v6773_v36, %v7034_v52  ;;  %vm4437_vm8 = vmpackc.low %vm1069_vm6, %vm1067_vm9  ;;  %vm1076_vm6 = vcmp.eq.s32.totalorder %v6773_v36, %v7046_v56 }
 0x2f1   : > { %vm4439_vm14 = vmpackc.low %vm1074_vm1, %vm1072_vm12  ;;  %vm7531_vm1 = vcmp.eq.s32.totalorder %v3435_v49, 1  ;;  %v10741_v49 = vmov 0 }
 0x2f6   : > { %4434 = vmatmul.mubr.msk.bf16.gmra.mrb[104].mxu0 %vm4433_vm2, %v10711_v23 }
 0x2f7   : > { %4562 = vmatmul.mubr.msk.bf16.gmra.mrb[104].mxu1 %vm4433_vm2, %v10711_v23  ;;  %4436 = vmatprep.mubr.msk.bf16.mxu0 %vm4435_vm7, %v10711_v23  ;;  %vm1071_vm2 = vcmp.eq.s32.totalorder %v6778_v39, %v7036_v53 }
 0x2f8   : > { %4564 = vmatprep.mubr.msk.bf16.mxu1 %vm4435_vm7, %v10711_v23  ;;  %vm1078_vm7 = vcmp.eq.s32.totalorder %v6773_v36, %v7044_v55  ;;  %vm4441_vm9 = vmpackc.low %vm1073_vm5, %vm1071_vm2  ;;  %vm10740_vm5 = vcmp.eq.s32.totalorder %v7125_v12, %v7085_v2 }
 0x2f9   : > { %v7475_v34 = vpop.f32.mrb[0].mxu0  ;;  %vm4443_vm12 = vmpackc.low %vm1078_vm7, %vm1076_vm6  ;;  %vm1077_vm7 = vcmp.eq.s32.totalorder %v6778_v39, %v7044_v55  ;;  %vm1075_vm6 = vcmp.eq.s32.totalorder %v6778_v39, %v7046_v56 }
 0x2fa   : > { %v7477_v35 = vpop.f32.mrb[0].mxu1  ;;  %v7483_v37 = vpop.f32.mrb[1].mxu0  ;;  %vm7555_vm2 = vmand %vm10740_vm5, %vm7531_vm1  ;;  %vm7637_vm5 = vcmp.eq.s32.totalorder %v2634_v54, 1  ;;  %v10750_v54 = vmov 0 }
 0x2fb   : > { %10729 = vst [vmem:[#allocation77_spill] sm:$0xff] %v7477_v35  ;;  %v2116_v38 = vpop.f32.mrb[1].mxu1  ;;  %v7489_v40 = vpop.f32.mrb[2].mxu0  ;;  %v10742_v49 = vsel %vm7555_vm2, 4294967295, %v10741_v49 }
 0x2fc   : > { %v7491_v41 = vpop.f32.mrb[2].mxu1  ;;  %v7497_v45 = vpop.f32.mrb[3].mxu0  ;;  %10743 = vst [vmem:[#allocation83_spill] sm:$0xff] %v10742_v49 }
 0x2fd   : > { %10730 = vst [vmem:[#allocation78_spill] sm:$0xff] %v7491_v41  ;;  %v2119_v46 = vpop.f32.mrb[3].mxu1 }
 0x2fe   : > { %4438 = vmatmul.mubr.msk.bf16.gmra.mrb[108].mxu0 %vm4437_vm8, %v10711_v23 }
 0x2ff   : > { %4566 = vmatmul.mubr.msk.bf16.gmra.mrb[108].mxu1 %vm4437_vm8, %v10711_v23  ;;  %4440 = vmatprep.mubr.msk.bf16.mxu0 %vm4439_vm14, %v10711_v23  ;;  %vm10736_vm8 = vcmp.eq.s32.totalorder %v7123_v11, %v7085_v2 }
 0x300   : > { %4568 = vmatprep.mubr.msk.bf16.mxu1 %vm4439_vm14, %v10711_v23  ;;  %vm7546_vm14 = vmand %vm10736_vm8, %vm7531_vm1 }
 0x301   : > { %v7507_v50 = vpop.f32.mrb[4].mxu0 }
 0x302   : > { %v7509_v51 = vpop.f32.mrb[4].mxu1  ;;  %v7515_v27 = vpop.f32.mrb[5].mxu0 }
 0x303   : > { %10731 = vst [vmem:[#allocation79_spill] sm:$0xff] %v7509_v51  ;;  %v2124_v38 = vpop.f32.mrb[5].mxu1  ;;  %v7521_v46 = vpop.f32.mrb[6].mxu0 }
 0x304   : > { %v7523_v44 = vpop.f32.mrb[6].mxu1  ;;  %v7529_v53 = vpop.f32.mrb[7].mxu0  ;;  %v10733_v38 = vmov 0 }
 0x305   : > { %10732 = vst [vmem:[#allocation80_spill] sm:$0xff] %v7523_v44  ;;  %v2127_v42 = vpop.f32.mrb[7].mxu1  ;;  %v10734_v38 = vsel %vm7531_vm1, 4294967295, %v10733_v38  ;;  %vm4445_vm1 = vmpackc.low %vm1077_vm7, %vm1075_vm6  ;;  %vm1081_vm7 = vcmp.eq.s32.totalorder %v6778_v39, %v7059_v58  ;;  %vm1084_vm6 = vcmp.eq.s32.totalorder %v6773_v36, %v7081_v1 }
 0x306   : > { %10735 = vst [vmem:[#allocation81_spill] sm:$0xff] %v10734_v38  ;;  %4442 = vmatmul.mubr.msk.bf16.gmra.mrb[112].mxu0 %vm4441_vm9, %v10711_v23  ;;  %v10737_v42 = vmov 0 }
 0x307   : > { %4570 = vmatmul.mubr.msk.bf16.gmra.mrb[112].mxu1 %vm4441_vm9, %v10711_v23  ;;  %4444 = vmatprep.mubr.msk.bf16.mxu0 %vm4443_vm12, %v10711_v23  ;;  %v10738_v42 = vsel %vm7546_vm14, 4294967295, %v10737_v42  ;;  %vm1082_vm9 = vcmp.eq.s32.totalorder %v6773_v36, %v7059_v58  ;;  %v7625_v58 = vld [vmem:[%s501_s16] sm:$0xf] }
 0x308   : > { %4572 = vmatprep.mubr.msk.bf16.mxu1 %vm4443_vm12, %v10711_v23  ;;  %10739 = vst [vmem:[#allocation82_spill] sm:$0xff] %v10738_v42  ;;  %vm1080_vm12 = vcmp.eq.s32.totalorder %v6773_v36, %v7061_v59 }
 0x309   : > { %v7559_v52 = vpop.f32.mrb[8].mxu0  ;;  %vm4447_vm10 = vmpackc.low %vm1082_vm9, %vm1080_vm12 }
 0x30a   : > { %v7561_v4 = vpop.f32.mrb[8].mxu1  ;;  %v7567_v47 = vpop.f32.mrb[9].mxu0 }
 0x30b   : > { %10744 = vst [vmem:[#allocation84_spill] sm:$0xff] %v7561_v4  ;;  %v2132_v38 = vpop.f32.mrb[9].mxu1  ;;  %v7573_v5 = vpop.f32.mrb[10].mxu0  ;;  %v2642_v4 = vrot.slane %v7064_v60, %v7107_v7 }
 0x30c   : > { %v7575_v51 = vpop.f32.mrb[10].mxu1  ;;  %v7585_v38 = vpop.f32.mrb[11].mxu0 }
 0x30d   : > { %10745 = vst [vmem:[#allocation85_spill] sm:$0xff] %v7575_v51  ;;  %v2135_v44 = vpop.f32.mrb[11].mxu1 }
 0x30e   : > { %4446 = vmatmul.mubr.msk.bf16.gmra.mrb[116].mxu0 %vm4445_vm1, %v10711_v23  ;;  %v7599_v44 = vrot.slane %v7068_v61, %v6765_v29 }
 0x30f   : > { %4574 = vmatmul.mubr.msk.bf16.gmra.mrb[116].mxu1 %vm4445_vm1, %v10711_v23  ;;  %4448 = vmatprep.mubr.msk.bf16.mxu0 %vm4447_vm10, %v10711_v23  ;;  %vm1079_vm1 = vcmp.eq.s32.totalorder %v6778_v39, %v7061_v59 }
 0x310   : > { %4576 = vmatprep.mubr.msk.bf16.mxu1 %vm4447_vm10, %v10711_v23  ;;  %vm1086_vm10 = vcmp.eq.s32.totalorder %v6773_v36, %v7079_v0  ;;  %vm4449_vm9 = vmpackc.low %vm1081_vm7, %vm1079_vm1  ;;  %vm10401_vm12 = vcmp.eq.s32.totalorder %v7125_v12, %v7599_v44  ;;  %vm10404_vm2 = vcmp.eq.s32.totalorder %v7123_v11, %v7599_v44  ;;  %vm10409_vm7 = vcmp.eq.s32.totalorder %v7125_v12, %v7154_v14 }
 0x311   : > { %v7601_v56 = vpop.f32.mrb[12].mxu0  ;;  %vm4451_vm8 = vmpackc.low %vm1086_vm10, %vm1084_vm6  ;;  %vm7653_vm1 = vcmp.eq.s32.totalorder %v2642_v4, 1 }
 0x312   : > { %v7603_v55 = vpop.f32.mrb[12].mxu1  ;;  %v7611_v49 = vpop.f32.mrb[13].mxu0  ;;  %v10751_v54 = vsel %vm7653_vm1, 4294967295, %v10750_v54  ;;  %vm7664_vm6 = vmand %vm10401_vm12, %vm7637_vm5 }
 0x313   : > { %10746 = vst [vmem:[#allocation86_spill] sm:$0xff] %v7603_v55  ;;  %v2140_v42 = vpop.f32.mrb[13].mxu1  ;;  %v7617_v61 = vpop.f32.mrb[14].mxu0  ;;  %10752 = vst [vmem:[#allocation88_spill] sm:$0xff] %v10751_v54 }
 0x314   : > { %v7619_v15 = vpop.f32.mrb[14].mxu1  ;;  %v7631_v51 = vpop.f32.mrb[15].mxu0  ;;  %v2727_v42 = vrot.slane %v7625_v58, %v7107_v7  ;;  %vm7681_vm10 = vmand %vm10404_vm2, %vm7637_vm5  ;;  %vm10762_vm2 = vcmp.eq.s32.totalorder %v7123_v11, %v7154_v14 }
 0x315   : > { %10747 = vst [vmem:[#allocation87_spill] sm:$0xff] %v7619_v15  ;;  %v2143_v30 = vpop.f32.mrb[15].mxu1  ;;  %vm7692_vm12 = vmand %vm10409_vm7, %vm7653_vm1 }
 0x316   : > { %4450 = vmatmul.mubr.msk.bf16.gmra.mrb[120].mxu0 %vm4449_vm9, %v10711_v23  ;;  %v2719_v30 = vrot.slane %v7625_v58, %v6765_v29  ;;  %vm2654_vm14 = vmand %vm10762_vm2, %vm7653_vm1 }
 0x317   : > { %4578 = vmatmul.mubr.msk.bf16.gmra.mrb[120].mxu1 %vm4449_vm9, %v10711_v23  ;;  %4452 = vmatprep.mubr.msk.bf16.mxu0 %vm4451_vm8, %v10711_v23  ;;  %vm1085_vm9 = vcmp.eq.s32.totalorder %v6778_v39, %v7079_v0  ;;  %vm4583_vm7 = vmpackc.low %vm7681_vm10, %vm7664_vm6 }
 0x318   : > { %4580 = vmatprep.mubr.msk.bf16.mxu1 %vm4451_vm8, %v10711_v23  ;;  %vm1083_vm8 = vcmp.eq.s32.totalorder %v6778_v39, %v7081_v1  ;;  %v7696_v0 = vpack.c.bf16 %v2719_v30, %v2719_v30  ;;  %v7698_v1 = vpack.c.bf16 %v2727_v42, %v2727_v42  ;;  %vm4631_vm2 = vmpackc.low %vm2654_vm14, %vm7692_vm12  ;;  %vm10464_vm12 = vcmp.eq.s32.totalorder %v7179_v18, %v7599_v44 }
 0x319   : > { %v7672_v4 = vpop.f32.mrb[16].mxu0  ;;  %vm4453_vm3 = vmpackc.low %vm1085_vm9, %vm1083_vm8  ;;  %vm10462_vm9 = vcmp.eq.s32.totalorder %v7179_v18, %v7085_v2  ;;  %vm10461_vm8 = vcmp.eq.s32.totalorder %v7177_v17, %v7085_v2 }
 0x31a   : > { %v7674_v59 = vpop.f32.mrb[16].mxu1  ;;  %v7685_v55 = vpop.f32.mrb[17].mxu0  ;;  %10760 = vst [vmem:[#allocation90_spill] sm:$0xff] %v7698_v1  ;;  %vm7915_vm10 = vmand %vm10464_vm12, %vm7637_vm5  ;;  %vm10465_vm12 = vcmp.eq.s32.totalorder %v7273_v10, %v7599_v44 }
 0x31b   : > { %10755 = vst [vmem:[#allocation89_spill] sm:$0xff] %v7674_v59  ;;  %v2148_v15 = vpop.f32.mrb[17].mxu1  ;;  %v7700_v35 = vpop.f32.mrb[18].mxu0 }
 0x31c   : > { %v7702_v41 = vpop.f32.mrb[18].mxu1  ;;  %v7713_v32 = vpop.f32.mrb[19].mxu0 }
 0x31d   : > { %10761 = vst [vmem:[#allocation91_spill] sm:$0xff] %v7702_v41  ;;  %v2151_v42 = vpop.f32.mrb[19].mxu1 }
 0x31e   : > { %4454 = vmatmul.mubr.msk.bf16.gmra.mrb[124].mxu0 %vm4453_vm3, %v10711_v23 }
 0x31f   : > { %4582 = vmatmul.mubr.msk.bf16.gmra.mrb[124].mxu1 %vm4453_vm3, %v10711_v23  ;;  %4585 = vmatprep.mubr.msk.bf16.mxu0 %vm4583_vm7, %v7696_v0  ;;  %vm10459_vm7 = vcmp.eq.s32.totalorder %v7177_v17, %v7599_v44 }
 0x320   : > { %4633 = vmatprep.mubr.msk.bf16.mxu1 %vm4631_vm2, %v7698_v1  ;;  %vm2660_vm6 = vmand %vm10459_vm7, %vm7637_vm5  ;;  %vm10460_vm7 = vcmp.eq.s32.totalorder %v7246_v3, %v7599_v44 }
 0x321   : > { %v7727_v42 = vpop.f32.mrb[20].mxu0  ;;  %vm10795_vm2 = vmpackc.low %vm7140_vm11, %vm7216_vm15  ;;  %vm10463_vm11 = vcmp.eq.s32.totalorder %v7220_v22, %v7599_v44  ;;  %vm10799_vm15 = vnez %v10669_v8 }
 0x322   : > { %v7729_v30 = vpop.f32.mrb[20].mxu1  ;;  %v7731_v31 = vpop.f32.mrb[21].mxu0  ;;  %vm4589_vm14 = vmpackc.low %vm2660_vm6, %vm7915_vm10 }
 0x323   : > { %10763 = vst [vmem:[#allocation92_spill] sm:$0xff] %v7729_v30  ;;  %v2156_v36 = vpop.f32.mrb[21].mxu1  ;;  %v7733_v7 = vpop.f32.mrb[22].mxu0  ;;  %vm2659_vm10 = vmand %vm10461_vm8, %vm10799_vm15 }
 0x324   : > { %v7735_v15 = vpop.f32.mrb[22].mxu1  ;;  %v7741_v14 = vpop.f32.mrb[23].mxu0  ;;  %vm7986_vm6 = vmand %vm10460_vm7, %vm7637_vm5  ;;  %vm10468_vm7 = vcmp.eq.s32.totalorder %v7246_v3, %v7085_v2 }
 0x325   : > { %10764 = vst [vmem:[#allocation93_spill] sm:$0xff] %v7735_v15  ;;  %v2159_v1 = vpop.f32.mrb[23].mxu1 }
 0x329   : > { %v7745_v59 = vpop.f32.mrb[24].mxu0 }
 0x32a   : > { %v7747_v41 = vpop.f32.mrb[24].mxu1  ;;  %v7749_v36 = vpop.f32.mrb[25].mxu0 }
 0x32b   : > { %10765 = vst [vmem:[#allocation94_spill] sm:$0xff] %v7747_v41  ;;  %10766 = vst [vmem:[#allocation95_spill] sm:$0xff] %v7749_v36  ;;  %v2164_v11 = vpop.f32.mrb[25].mxu1  ;;  %v7751_v12 = vpop.f32.mrb[26].mxu0  ;;  %v10775_v41 = vpack.c.bf16 %v7489_v40, %v7475_v34  ;;  %v10778_v40 = vpack.c.bf16 %v7521_v46, %v7507_v50  ;;  %v10781_v46 = vpack.c.bf16 %v7573_v5, %v7559_v52 }
 0x32c   : > { %v7753_v63 = vpop.f32.mrb[26].mxu1  ;;  %v7759_v23 = vpop.f32.mrb[27].mxu0  ;;  %v10784_v52 = vpack.c.bf16 %v7617_v61, %v7601_v56  ;;  %v10786_v61 = vpack.c.bf16 %v7700_v35, %v7672_v4  ;;  %v10788_v4 = vpack.c.bf16 %v7733_v7, %v7727_v42  ;;  %v10789_v7 = vpack.c.bf16 %v7751_v12, %v7745_v59 }
 0x32d   : > { %10767 = vst [vmem:[#allocation96_spill] sm:$0xff] %v7753_v63  ;;  %10768 = vst [vmem:[#allocation97_spill] sm:$0xff] %v7759_v23  ;;  %v2167_v54 = vpop.f32.mrb[27].mxu1 }
 0x331   : > { %v7763_v15 = vpop.f32.mrb[28].mxu0 }
 0x332   : > { %v7765_v29 = vpop.f32.mrb[28].mxu1  ;;  %v7767_v11 = vpop.f32.mrb[29].mxu0 }
 0x333   : > { %10769 = vst [vmem:[#allocation98_spill] sm:$0xff] %v7765_v29  ;;  %10770 = vst [vmem:[#allocation99_spill] sm:$0xff] %v7767_v11  ;;  %v2172_v26 = vpop.f32.mrb[29].mxu1  ;;  %v7769_v43 = vpop.f32.mrb[30].mxu0 }
 0x334   : > { %v7771_v57 = vpop.f32.mrb[30].mxu1  ;;  %v7777_v39 = vpop.f32.mrb[31].mxu0 }
 0x335   : > { %10771 = vst [vmem:[#allocation100_spill] sm:$0xff] %v7771_v57  ;;  %10772 = vst [vmem:[#allocation101_spill] sm:$0xff] %v7777_v39  ;;  %v2175_v30 = vpop.f32.mrb[31].mxu1 }
 0x339   : > { %v1841_v63 = vpop.f32.mrb[32].mxu0 }
 0x33a   : > { %v7781_v25 = vpop.f32.mrb[32].mxu1  ;;  %v7783_v26 = vpop.f32.mrb[33].mxu0 }
 0x33b   : > { %10773 = vst [vmem:[#allocation102_spill] sm:$0xff] %v7781_v25  ;;  %v2180_v16 = vpop.f32.mrb[33].mxu1  ;;  %v1845_v36 = vpop.f32.mrb[34].mxu0 }
 0x33c   : > { %v7785_v23 = vpop.f32.mrb[34].mxu1  ;;  %v2393_v28 = vpack.c.bf16 %v1845_v36, %v1841_v63  ;;  %v7789_v54 = vpop.f32.mrb[35].mxu0 }
 0x33d   : > { %10774 = vst [vmem:[#allocation103_spill] sm:$0xff] %v7785_v23  ;;  %v2183_v29 = vpop.f32.mrb[35].mxu1 }
 0x33e   : > { %4922 = vmatprep.subr.bf16.mxu0 %v2393_v28 }
 0x33f   : > { %4923 = vmatpush3.bf16.msra.mxu0 %v10775_v41 }
 0x341   : > { %v1851_v57 = vpop.f32.mrb[36].mxu0 }
 0x342   : > { %v7796_v16 = vpop.f32.mrb[36].mxu1  ;;  %v7798_v11 = vpop.f32.mrb[37].mxu0 }
 0x343   : > { %10776 = vst [vmem:[#allocation104_spill] sm:$0xff] %v7796_v16  ;;  %v2188_v63 = vpop.f32.mrb[37].mxu1  ;;  %v1855_v36 = vpop.f32.mrb[38].mxu0 }
 0x344   : > { %v7800_v39 = vpop.f32.mrb[38].mxu1  ;;  %v2396_v1 = vpack.c.bf16 %v1855_v36, %v1851_v57  ;;  %v7804_v25 = vpop.f32.mrb[39].mxu0 }
 0x345   : > { %10777 = vst [vmem:[#allocation105_spill] sm:$0xff] %v7800_v39  ;;  %v2191_v28 = vpop.f32.mrb[39].mxu1 }
 0x346   : > { %4924 = vmatprep.subr.bf16.mxu0 %v2396_v1 }
 0x347   : > { %4925 = vmatpush3.bf16.msra.mxu0 %v10778_v40 }
 0x349   : > { %v1861_v41 = vpop.f32.mrb[40].mxu0 }
 0x34a   : > { %v7811_v63 = vpop.f32.mrb[40].mxu1  ;;  %v7813_v30 = vpop.f32.mrb[41].mxu0 }
 0x34b   : > { %10779 = vst [vmem:[#allocation106_spill] sm:$0xff] %v7811_v63  ;;  %v2196_v57 = vpop.f32.mrb[41].mxu1  ;;  %v1865_v36 = vpop.f32.mrb[42].mxu0 }
 0x34c   : > { %v7815_v23 = vpop.f32.mrb[42].mxu1  ;;  %v2399_v29 = vpack.c.bf16 %v1865_v36, %v1861_v41  ;;  %v7819_v16 = vpop.f32.mrb[43].mxu0 }
 0x34d   : > { %10780 = vst [vmem:[#allocation107_spill] sm:$0xff] %v7815_v23  ;;  %v2199_v1 = vpop.f32.mrb[43].mxu1 }
 0x34e   : > { %4926 = vmatprep.subr.bf16.mxu0 %v2399_v29 }
 0x34f   : > { %4927 = vmatpush3.bf16.msra.mxu0 %v10781_v46 }
 0x351   : > { %v1871_v40 = vpop.f32.mrb[44].mxu0 }
 0x352   : > { %v7826_v57 = vpop.f32.mrb[44].mxu1  ;;  %v7828_v34 = vpop.f32.mrb[45].mxu0 }
 0x353   : > { %10782 = vst [vmem:[#allocation108_spill] sm:$0xff] %v7826_v57  ;;  %v2204_v41 = vpop.f32.mrb[45].mxu1  ;;  %v1875_v36 = vpop.f32.mrb[46].mxu0 }
 0x354   : > { %v7830_v39 = vpop.f32.mrb[46].mxu1  ;;  %v2402_v28 = vpack.c.bf16 %v1875_v36, %v1871_v40  ;;  %v7834_v63 = vpop.f32.mrb[47].mxu0 }
 0x355   : > { %10783 = vst [vmem:[#allocation109_spill] sm:$0xff] %v7830_v39  ;;  %v2207_v29 = vpop.f32.mrb[47].mxu1 }
 0x356   : > { %4928 = vmatprep.subr.bf16.mxu0 %v2402_v28 }
 0x357   : > { %4929 = vmatpush3.bf16.msra.mxu0 %v10784_v52 }
 0x359   : > { %v1881_v46 = vpop.f32.mrb[48].mxu0 }
 0x35a   : > { %v7841_v41 = vpop.f32.mrb[48].mxu1  ;;  %v7843_v50 = vpop.f32.mrb[49].mxu0 }
 0x35b   : > { %10785 = vst [vmem:[#allocation110_spill] sm:$0xff] %v7841_v41  ;;  %v2212_v40 = vpop.f32.mrb[49].mxu1  ;;  %v1885_v36 = vpop.f32.mrb[50].mxu0 }
 0x35c   : > { %v7845_v23 = vpop.f32.mrb[50].mxu1  ;;  %v2405_v1 = vpack.c.bf16 %v1885_v36, %v1881_v46  ;;  %v7849_v57 = vpop.f32.mrb[51].mxu0 }
 0x35d   : > { %v2215_v28 = vpop.f32.mrb[51].mxu1 }
 0x35e   : > { %4930 = vmatprep.subr.bf16.mxu0 %v2405_v1 }
 0x35f   : > { %4931 = vmatpush3.bf16.msra.mxu0 %v10786_v61 }
 0x361   : > { %v1891_v52 = vpop.f32.mrb[52].mxu0 }
 0x362   : > { %v7856_v40 = vpop.f32.mrb[52].mxu1  ;;  %v7858_v5 = vpop.f32.mrb[53].mxu0 }
 0x363   : > { %v2220_v46 = vpop.f32.mrb[53].mxu1  ;;  %v1895_v36 = vpop.f32.mrb[54].mxu0 }
 0x364   : > { %v7860_v39 = vpop.f32.mrb[54].mxu1  ;;  %v2408_v29 = vpack.c.bf16 %v1895_v36, %v1891_v52  ;;  %v7864_v41 = vpop.f32.mrb[55].mxu0 }
 0x365   : > { %v2223_v1 = vpop.f32.mrb[55].mxu1 }
 0x366   : > { %4932 = vmatprep.subr.bf16.mxu0 %v2408_v29 }
 0x367   : > { %4933 = vmatpush3.bf16.msra.mxu0 %v10788_v4 }
 0x369   : > { %v1901_v61 = vpop.f32.mrb[56].mxu0 }
 0x36a   : > { %v7875_v52 = vpop.f32.mrb[56].mxu1  ;;  %v7877_v46 = vpop.f32.mrb[57].mxu0 }
 0x36b   : > { %v2228_v36 = vpop.f32.mrb[57].mxu1  ;;  %v1905_v1 = vpop.f32.mrb[58].mxu0 }
 0x36c   : > { %v7879_v28 = vpop.f32.mrb[58].mxu1  ;;  %v2411_v56 = vpack.c.bf16 %v1905_v1, %v1901_v61  ;;  %v7883_v19 = vpop.f32.mrb[59].mxu0  ;;  %v2715_v61 = vrot.slane %v7625_v58, %v6770_v33 }
 0x36d   : > { %v2231_v29 = vpop.f32.mrb[59].mxu1  ;;  %v2412_v42 = vpack.c.bf16 %v7883_v19, %v7877_v46 }
 0x36e   : > { %4934 = vmatprep.subr.bf16.mxu0 %v2411_v56 }
 0x36f   : > { %4935 = vmatpush3.bf16.msra.mxu0 %v10789_v7 }
 0x371   : > { %v1911_v4 = vpop.f32.mrb[60].mxu0 }
 0x372   : > { %v7890_v36 = vpop.f32.mrb[60].mxu1  ;;  %v7894_v1 = vpop.f32.mrb[61].mxu0 }
 0x373   : > { %v2236_v62 = vpop.f32.mrb[61].mxu1  ;;  %v1915_v29 = vpop.f32.mrb[62].mxu0 }
 0x374   : > { %v7898_v35 = vpop.f32.mrb[62].mxu1  ;;  %v2414_v12 = vpack.c.bf16 %v1915_v29, %v1911_v4  ;;  %v7904_v56 = vpop.f32.mrb[63].mxu0  ;;  %v7908_v62 = vpack.c.bf16 %v2715_v61, %v2715_v61  ;;  %v10792_v4 = vpack.c.bf16 %v7769_v43, %v7763_v15  ;;  %v10793_v61 = vpack.c.bf16 %v7789_v54, %v7783_v26 }
 0x375   : > { %v2239_v7 = vpop.f32.mrb[63].mxu1  ;;  %v2415_v33 = vpack.c.bf16 %v7904_v56, %v7894_v1  ;;  %v10845_v56 = vld [vmem:[#allocation101_spill] sm:$0xff] }
 0x376   : > { %4936 = vmatprep.subr.bf16.mxu0 %v2414_v12  ;;  %v10797_v7 = vpack.c.bf16 %v7497_v45, %v7483_v37  ;;  %v10802_v45 = vpack.c.bf16 %v7529_v53, %v7515_v27 }
 0x377   : > { %4937 = vmatpush3.bf16.msra.mxu0 %v10792_v4 }
 0x378   : > { %5050 = vmatprep.subr.bf16.mxu0 %v10793_v61  ;;  %v10798_v61 = vpack.c.bf16 %v7804_v25, %v7798_v11  ;;  %v10803_v11 = vpack.c.bf16 %v7819_v16, %v7813_v30 }
 0x379   : > { %v7932_v29 = vpop.f32.mrb[64].mxu0 }
 0x37a   : > { %v7934_v12 = vpop.f32.mrb[64].mxu1  ;;  %v7938_v43 = vpop.f32.mrb[65].mxu0  ;;  %4588 = vmatmul.mubr.msk.bf16.vlgmr.msra.gmra.mrb[128].mxu0 %vm10795_vm2, %v7908_v62  ;;  %vm2668_vm2 = vmand %vm10463_vm11, %vm7637_vm5 }
 0x37b   : > { %10794 = vst [vmem:[#allocation111_spill] sm:$0xff] %v7934_v12  ;;  %v2244_v15 = vpop.f32.mrb[65].mxu1  ;;  %v7950_v54 = vpop.f32.mrb[66].mxu0  ;;  %4591 = vmatprep.mubr.msk.bf16.mxu0 %vm4589_vm14, %v7696_v0  ;;  %5051 = vmatpush3.bf16.msra.mxu0 %v10797_v7  ;;  %vm2655_vm14 = vmand %vm10462_vm9, %vm10799_vm15  ;;  %vm10467_vm9 = vcmp.eq.s32.totalorder %v7220_v22, %v7085_v2 }
 0x37c   : > { %v7952_v26 = vpop.f32.mrb[66].mxu1  ;;  %v7964_v58 = vpop.f32.mrb[67].mxu0  ;;  %5052 = vmatprep.subr.bf16.mxu0 %v10798_v61  ;;  %vm4592_vm8 = vmpackc.low %vm2659_vm10, %vm2655_vm14  ;;  %vm10466_vm14 = vcmp.eq.s32.totalorder %v7263_v9, %v7599_v44 }
 0x37d   : > { %10796 = vst [vmem:[#allocation112_spill] sm:$0xff] %v7952_v26  ;;  %v2247_v4 = vpop.f32.mrb[67].mxu1  ;;  %vm4595_vm11 = vmpackc.low %vm2668_vm2, %vm7986_vm6  ;;  %vm10471_vm2 = vcmp.eq.s32.totalorder %v7273_v10, %v7085_v2 }
 0x37e   : > { %v10807_v4 = vpack.c.bf16 %v7585_v38, %v7567_v47  ;;  %vm8056_vm10 = vmand %vm10465_vm12, %vm7637_vm5  ;;  %vm10469_vm12 = vcmp.eq.s32.totalorder %v7283_v48, %v7599_v44  ;;  %v10820_v47 = vpack.c.bf16 %v7713_v32, %v7685_v55  ;;  %v10824_v32 = vpack.c.bf16 %v7864_v41, %v7858_v5 }
 0x37f   : > { %5053 = vmatpush3.bf16.msra.mxu0 %v10802_v45  ;;  %vm8068_vm6 = vmand %vm10466_vm14, %vm7637_vm5  ;;  %v10830_v41 = vpack.c.bf16 %v7741_v14, %v7731_v31  ;;  %v10835_v31 = vld [vmem:[#allocation69_spill] sm:$0xff] }
 0x380   : > { %5054 = vmatprep.subr.bf16.mxu0 %v10803_v11 }
 0x381   : > { %v8003_v15 = vpop.f32.mrb[68].mxu0 }
 0x382   : > { %v8005_v7 = vpop.f32.mrb[68].mxu1  ;;  %v8009_v27 = vpop.f32.mrb[69].mxu0  ;;  %4594 = vmatmul.mubr.msk.bf16.gmra.mrb[132].mxu0 %vm4592_vm8, %v7908_v62  ;;  %vm8040_vm8 = vmand %vm10468_vm7, %vm10799_vm15 }
 0x383   : > { %10804 = vst [vmem:[#allocation113_spill] sm:$0xff] %v8005_v7  ;;  %10805 = vst [vmem:[#allocation114_spill] sm:$0xff] %v8009_v27  ;;  %v2252_v53 = vpop.f32.mrb[69].mxu1  ;;  %v8016_v30 = vpop.f32.mrb[70].mxu0  ;;  %4597 = vmatprep.mubr.msk.bf16.mxu0 %vm4595_vm11, %v7696_v0  ;;  %5055 = vmatpush3.bf16.msra.mxu0 %v10807_v4  ;;  %v10859_v4 = vld [vmem:[#allocation73_spill] sm:$0xff]  ;;  %v10893_v27 = vld [vmem:[#allocation74_spill] sm:$0xff] }
 0x384   : > { %v8018_v16 = vpop.f32.mrb[70].mxu1  ;;  %v8030_v45 = vpop.f32.mrb[71].mxu0  ;;  %v10808_v53 = vpack.c.bf16 %v7834_v63, %v7828_v34  ;;  %vm2667_vm11 = vmand %vm10467_vm9, %vm10799_vm15  ;;  %v10813_v63 = vpack.c.bf16 %v7631_v51, %v7611_v49  ;;  %vm10470_vm9 = vcmp.eq.s32.totalorder %v7291_v24, %v7599_v44  ;;  %v10837_v34 = vld [vmem:[#allocation97_spill] sm:$0xff] }
 0x385   : > { %10806 = vst [vmem:[#allocation115_spill] sm:$0xff] %v8018_v16  ;;  %v2255_v11 = vpop.f32.mrb[71].mxu1  ;;  %vm4598_vm14 = vmpackc.low %vm2667_vm11, %vm8040_vm8  ;;  %v10871_v16 = vld [vmem:[#allocation58_spill] sm:$0xff] }
 0x386   : > { %5056 = vmatprep.subr.bf16.mxu0 %v10808_v53  ;;  %v10816_v11 = vpack.c.bf16 %v7849_v57, %v7843_v50  ;;  %vm4601_vm7 = vmpackc.low %vm8068_vm6, %vm8056_vm10 }
 0x387   : > { %5057 = vmatpush3.bf16.msra.mxu0 %v10813_v63  ;;  %vm8134_vm11 = vmand %vm10470_vm9, %vm7637_vm5  ;;  %vm10473_vm9 = vcmp.eq.s32.totalorder %v7283_v48, %v7085_v2 }
 0x388   : > { %5058 = vmatprep.subr.bf16.mxu0 %v10816_v11  ;;  %vm8143_vm10 = vmand %vm10469_vm12, %vm7637_vm5 }
 0x389   : > { %v8079_v51 = vpop.f32.mrb[72].mxu0  ;;  %vm4607_vm12 = vmpackc.low %vm8143_vm10, %vm8134_vm11 }
 0x38a   : > { %v8081_v49 = vpop.f32.mrb[72].mxu1  ;;  %v8087_v53 = vpop.f32.mrb[73].mxu0  ;;  %4600 = vmatmul.mubr.msk.bf16.gmra.mrb[136].mxu0 %vm4598_vm14, %v7908_v62  ;;  %vm8109_vm14 = vmand %vm10471_vm2, %vm10799_vm15 }
 0x38b   : > { %10817 = vst [vmem:[#allocation116_spill] sm:$0xff] %v8081_v49  ;;  %10818 = vst [vmem:[#allocation117_spill] sm:$0xff] %v8087_v53  ;;  %v2260_v63 = vpop.f32.mrb[73].mxu1  ;;  %v8096_v50 = vpop.f32.mrb[74].mxu0  ;;  %4603 = vmatprep.mubr.msk.bf16.mxu0 %vm4601_vm7, %v7696_v0  ;;  %5059 = vmatpush3.bf16.msra.mxu0 %v10820_v47  ;;  %vm10825_vm7 = vcmp.eq.s32.totalorder %v7263_v9, %v7085_v2 }
 0x38c   : > { %v8098_v57 = vpop.f32.mrb[74].mxu1  ;;  %v8117_v63 = vpop.f32.mrb[75].mxu0  ;;  %5060 = vmatprep.subr.bf16.mxu0 %v10824_v32  ;;  %vm2675_vm8 = vmand %vm10825_vm7, %vm10799_vm15  ;;  %vm10472_vm7 = vcmp.eq.s32.totalorder %v10835_v31, %v7599_v44 }
 0x38d   : > { %10819 = vst [vmem:[#allocation118_spill] sm:$0xff] %v8098_v57  ;;  %10823 = vst [vmem:[#allocation119_spill] sm:$0xff] %v8117_v63  ;;  %v2263_v25 = vpop.f32.mrb[75].mxu1 }
 0x38e   : > { %vm4604_vm6 = vmpackc.low %vm2675_vm8, %vm8109_vm14  ;;  %v10838_v25 = vld [vmem:[#allocation95_spill] sm:$0xff] }
 0x38f   : > { %5061 = vmatpush3.bf16.msra.mxu0 %v10830_v41  ;;  %v10839_v5 = vpack.c.bf16 %v10837_v34, %v10838_v25  ;;  %v10840_v41 = vld [vmem:[#allocation68_spill] sm:$0xff]  ;;  %vm8212_vm2 = vmand %vm10472_vm7, %vm7637_vm5  ;;  %v10848_v25 = vld [vmem:[#allocation103_spill] sm:$0xff]  ;;  %vm10476_vm7 = vcmp.eq.s32.totalorder %v10835_v31, %v7085_v2 }
 0x390   : > { %5062 = vmatprep.subr.bf16.mxu0 %v2412_v42  ;;  %vm10474_vm11 = vcmp.eq.s32.totalorder %v10840_v41, %v7599_v44  ;;  %vm10475_vm14 = vcmp.eq.s32.totalorder %v10840_v41, %v7085_v2 }
 0x391   : > { %v8157_v47 = vpop.f32.mrb[76].mxu0 }
 0x392   : > { %v8159_v32 = vpop.f32.mrb[76].mxu1  ;;  %v8167_v14 = vpop.f32.mrb[77].mxu0  ;;  %4606 = vmatmul.mubr.msk.bf16.gmra.mrb[140].mxu0 %vm4604_vm6, %v7908_v62  ;;  %vm2683_vm6 = vmand %vm10473_vm9, %vm10799_vm15 }
 0x393   : > { %10831 = vst [vmem:[#allocation120_spill] sm:$0xff] %v8159_v32  ;;  %10832 = vst [vmem:[#allocation121_spill] sm:$0xff] %v8167_v14  ;;  %v2268_v19 = vpop.f32.mrb[77].mxu1  ;;  %v8176_v46 = vpop.f32.mrb[78].mxu0  ;;  %4609 = vmatprep.mubr.msk.bf16.mxu0 %vm4607_vm12, %v7696_v0  ;;  %5063 = vmatpush3.bf16.msra.mxu0 %v10839_v5  ;;  %vm10842_vm12 = vcmp.eq.s32.totalorder %v7291_v24, %v7085_v2  ;;  %v10849_v5 = vld [vmem:[#allocation102_spill] sm:$0xff] }
 0x394   : > { %v8178_v42 = vpop.f32.mrb[78].mxu1  ;;  %v8190_v21 = vpop.f32.mrb[79].mxu0  ;;  %5064 = vmatprep.subr.bf16.mxu0 %v2415_v33  ;;  %vm2679_vm10 = vmand %vm10842_vm12, %vm10799_vm15  ;;  %v10846_v33 = vld [vmem:[#allocation99_spill] sm:$0xff]  ;;  %v10850_v11 = vpack.c.bf16 %v10848_v25, %v10849_v5  ;;  %v10855_v5 = vld [vmem:[#allocation70_spill] sm:$0xff] }
 0x395   : > { %10836 = vst [vmem:[#allocation69_spill] sm:$0xff] %v8178_v42  ;;  %10841 = vst [vmem:[#allocation97_spill] sm:$0xff] %v8190_v21  ;;  %v2271_v55 = vpop.f32.mrb[79].mxu1  ;;  %v10890_v21 = vld [vmem:[#allocation105_spill] sm:$0xff] }
 0x396   : > { %v10847_v55 = vpack.c.bf16 %v10845_v56, %v10846_v33  ;;  %vm2692_vm12 = vmand %vm10474_vm11, %vm7637_vm5 }
 0x397   : > { %vm4610_vm9 = vmpackc.low %vm2683_vm6, %vm2679_vm10  ;;  %vm10478_vm10 = vcmp.eq.s32.totalorder %v10855_v5, %v7599_v44 }
 0x398   : > { %5065 = vmatpush3.bf16.msra.mxu0 %v10847_v55  ;;  %vm4613_vm11 = vmpackc.low %vm2692_vm12, %vm8212_vm2 }
 0x399   : > { %5178 = vmatprep.subr.bf16.mxu0 %v10850_v11  ;;  %v8229_v34 = vpop.f32.mrb[80].mxu0  ;;  %v10853_v11 = vld [vmem:[#allocation71_spill] sm:$0xff]  ;;  %vm2691_vm2 = vmand %vm10475_vm14, %vm10799_vm15 }
 0x39a   : > { %v8231_v38 = vpop.f32.mrb[80].mxu1  ;;  %v8235_v56 = vpop.f32.mrb[81].mxu0  ;;  %4612 = vmatmul.mubr.msk.bf16.gmra.mrb[144].mxu0 %vm4610_vm9, %v7908_v62  ;;  %vm10477_vm8 = vcmp.eq.s32.totalorder %v10853_v11, %v7599_v44  ;;  %vm2687_vm9 = vmand %vm10476_vm7, %vm10799_vm15  ;;  %vm10516_vm12 = vcmp.eq.s32.totalorder %v10853_v11, %v7085_v2  ;;  %vm10485_vm7 = vcmp.eq.s32.totalorder %v10855_v5, %v7085_v2 }
 0x39b   : > { %10851 = vst [vmem:[#allocation95_spill] sm:$0xff] %v8231_v38  ;;  %10852 = vst [vmem:[#allocation68_spill] sm:$0xff] %v8235_v56  ;;  %v2276_v33 = vpop.f32.mrb[81].mxu1  ;;  %v8242_v55 = vpop.f32.mrb[82].mxu0  ;;  %4615 = vmatprep.mubr.msk.bf16.mxu0 %vm4613_vm11, %v7696_v0 }
 0x39c   : > { %v8244_v25 = vpop.f32.mrb[82].mxu1  ;;  %v8253_v1 = vpop.f32.mrb[83].mxu0  ;;  %vm2696_vm11 = vmand %vm10477_vm8, %vm7637_vm5 }
 0x39d   : > { %10854 = vst [vmem:[#allocation101_spill] sm:$0xff] %v8244_v25  ;;  %10856 = vst [vmem:[#allocation99_spill] sm:$0xff] %v8253_v1  ;;  %v2279_v19 = vpop.f32.mrb[83].mxu1 }
 0x39e   : > { %vm2700_vm6 = vmand %vm10478_vm10, %vm7637_vm5  ;;  %vm10486_vm10 = vcmp.eq.s32.totalorder %v10859_v4, %v7599_v44 }
 0x39f   : > { %vm4616_vm14 = vmpackc.low %vm2691_vm2, %vm2687_vm9  ;;  %vm10490_vm9 = vcmp.eq.s32.totalorder %v10861_v6, %v7599_v44 }
 0x3a0   : > { %vm4619_vm8 = vmpackc.low %vm2700_vm6, %vm2696_vm11  ;;  %vm10495_vm6 = vcmp.eq.s32.totalorder %v10859_v4, %v7085_v2 }
 0x3a1   : > { %v8279_v19 = vpop.f32.mrb[84].mxu0  ;;  %vm2704_vm2 = vmand %vm10486_vm10, %vm7637_vm5  ;;  %vm10517_vm10 = vcmp.eq.s32.totalorder %v10861_v6, %v7085_v2 }
 0x3a2   : > { %v8281_v37 = vpop.f32.mrb[84].mxu1  ;;  %v8285_v59 = vpop.f32.mrb[85].mxu0  ;;  %4618 = vmatmul.mubr.msk.bf16.gmra.mrb[148].mxu0 %vm4616_vm14, %v7908_v62  ;;  %vm2695_vm14 = vmand %vm10516_vm12, %vm10799_vm15 }
 0x3a3   : > { %10857 = vst [vmem:[#allocation103_spill] sm:$0xff] %v8281_v37  ;;  %10858 = vst [vmem:[#allocation102_spill] sm:$0xff] %v8285_v59  ;;  %v2284_v33 = vpop.f32.mrb[85].mxu1  ;;  %v8290_v61 = vpop.f32.mrb[86].mxu0  ;;  %4621 = vmatprep.mubr.msk.bf16.mxu0 %vm4619_vm8, %v7696_v0 }
 0x3a4   : > { %v8292_v13 = vpop.f32.mrb[86].mxu1  ;;  %v8301_v38 = vpop.f32.mrb[87].mxu0  ;;  %vm2699_vm8 = vmand %vm10485_vm7, %vm10799_vm15  ;;  %v10864_v33 = vld [vmem:[#allocation52_spill] sm:$0xff]  ;;  %v10989_v57 = vpack.c.bf16 %v8290_v61, %v8279_v19 }
 0x3a5   : > { %10860 = vst [vmem:[#allocation71_spill] sm:$0xff] %v8292_v13  ;;  %10862 = vst [vmem:[#allocation70_spill] sm:$0xff] %v8301_v38  ;;  %v2287_v25 = vpop.f32.mrb[87].mxu1 }
 0x3a6   : > { %vm2708_vm11 = vmand %vm10490_vm9, %vm7637_vm5  ;;  %v10863_v25 = vld [vmem:[#allocation50_spill] sm:$0xff] }
 0x3a7   : > { %v3047_v32 = vrot.slane %v10864_v33, %v10863_v25  ;;  %vm4622_vm7 = vmpackc.low %vm2699_vm8, %vm2695_vm14  ;;  %vm10872_vm8 = vcmp.eq.s32.totalorder %v10871_v16, %v7599_v44 }
 0x3a8   : > { %vm4625_vm5 = vmpackc.low %vm2708_vm11, %vm2704_vm2 }
 0x3a9   : > { %v8329_v20 = vpop.f32.mrb[88].mxu0  ;;  %vm8343_vm9 = vcmp.eq.s32.totalorder %v3047_v32, 1  ;;  %vm2707_vm14 = vmand %vm10517_vm10, %vm10799_vm15 }
 0x3aa   : > { %v8331_v37 = vpop.f32.mrb[88].mxu1  ;;  %v8335_v13 = vpop.f32.mrb[89].mxu0  ;;  %4624 = vmatmul.mubr.msk.bf16.gmra.mrb[152].mxu0 %vm4622_vm7, %v7908_v62  ;;  %vm2703_vm7 = vmand %vm10495_vm6, %vm10799_vm15 }
 0x3ab   : > { %10865 = vst [vmem:[#allocation73_spill] sm:$0xff] %v8331_v37  ;;  %10866 = vst [vmem:[#allocation72_spill] sm:$0xff] %v8335_v13  ;;  %v2292_v60 = vpop.f32.mrb[89].mxu1  ;;  %v8338_v42 = vpop.f32.mrb[90].mxu0  ;;  %4627 = vmatprep.mubr.msk.bf16.mxu0 %vm4625_vm5, %v7696_v0 }
 0x3ac   : > { %v8340_v49 = vpop.f32.mrb[90].mxu1  ;;  %v8351_v60 = vpop.f32.mrb[91].mxu0  ;;  %vm3061_vm2 = vmand %vm10872_vm8, %vm8343_vm9 }
 0x3ad   : > { %10867 = vst [vmem:[#allocation50_spill] sm:$0xff] %v8340_v49  ;;  %10870 = vst [vmem:[#allocation122_spill] sm:$0xff] %v8351_v60  ;;  %v2295_v12 = vpop.f32.mrb[91].mxu1 }
 0x3ae   : > { %v10873_v12 = vld [vmem:[#allocation57_spill] sm:$0xff]  ;;  %vm4628_vm6 = vmpackc.low %vm2707_vm14, %vm2703_vm7  ;;  %vm10880_vm14 = vcmp.eq.s32.totalorder %v7177_v17, %v7599_v44 }
 0x3af   : > { %vm10874_vm11 = vcmp.eq.s32.totalorder %v10873_v12, %v7599_v44  ;;  %vm3073_vm8 = vmand %vm10880_vm14, %vm8343_vm9 }
 0x3b0   : > { %vm3065_vm5 = vmand %vm10874_vm11, %vm8343_vm9 }
 0x3b1   : > { %v8375_v7 = vpop.f32.mrb[92].mxu0  ;;  %vm4679_vm15 = vmpackc.low %vm3065_vm5, %vm3061_vm2 }
 0x3b2   : > { %v8377_v32 = vpop.f32.mrb[92].mxu1  ;;  %v8379_v8 = vpop.f32.mrb[93].mxu0  ;;  %4630 = vmatmul.mubr.msk.bf16.gmra.mrb[156].mxu0 %vm4628_vm6, %v7908_v62  ;;  %vm10879_vm6 = vcmp.eq.s32.totalorder %v7179_v18, %v7599_v44 }
 0x3b3   : > { %10875 = vst [vmem:[#allocation58_spill] sm:$0xff] %v8377_v32  ;;  %10876 = vst [vmem:[#allocation57_spill] sm:$0xff] %v8379_v8  ;;  %v2300_v37 = vpop.f32.mrb[93].mxu1  ;;  %v8382_v49 = vpop.f32.mrb[94].mxu0  ;;  %4681 = vmatprep.mubr.msk.bf16.mxu0 %vm4679_vm15, %v7696_v0  ;;  %v10886_v8 = vld [vmem:[#allocation78_spill] sm:$0xff]  ;;  %vm10895_vm15 = vcmp.eq.s32.totalorder %v7179_v18, %v7085_v2 }
 0x3b4   : > { %v8384_v26 = vpop.f32.mrb[94].mxu1  ;;  %v8391_v60 = vpop.f32.mrb[95].mxu0  ;;  %vm3069_vm7 = vmand %vm10879_vm6, %vm8343_vm9  ;;  %v10891_v37 = vld [vmem:[#allocation104_spill] sm:$0xff] }
 0x3b5   : > { %10877 = vst [vmem:[#allocation123_spill] sm:$0xff] %v8384_v26  ;;  %10878 = vst [vmem:[#allocation124_spill] sm:$0xff] %v8391_v60  ;;  %v2303_v59 = vpop.f32.mrb[95].mxu1  ;;  %v10883_v26 = vld [vmem:[#allocation76_spill] sm:$0xff]  ;;  %v10887_v60 = vld [vmem:[#allocation77_spill] sm:$0xff]  ;;  %v10892_v53 = vpack.c.bf16 %v10890_v21, %v10891_v37 }
 0x3b6   : > { %vm10884_vm2 = vnez %v10883_v26  ;;  %vm4685_vm5 = vmpackc.low %vm3073_vm8, %vm3069_vm7  ;;  %v10888_v38 = vpack.c.bf16 %v10886_v8, %v10887_v60  ;;  %vm10896_vm7 = vcmp.eq.s32.totalorder %v7177_v17, %v7085_v2  ;;  %vm10897_vm8 = vcmp.eq.s32.totalorder %v7246_v3, %v7599_v44  ;;  %v10906_v60 = vld [vmem:[#allocation106_spill] sm:$0xff] }
 0x3b7   : > { %vm10885_vm11 = vmpackc.low %vm7414_vm13, %vm10884_vm2  ;;  %vm10894_vm13 = vnez %v10893_v27 }
 0x3b8   : > { %vm3068_vm6 = vmand %vm10895_vm15, %vm10894_vm13 }
 0x3b9   : > { %v2001_v33 = vpop.f32.mrb[96].mxu0  ;;  %vm3072_vm14 = vmand %vm10896_vm7, %vm10894_vm13 }
 0x3ba   : > { %v8405_v13 = vpop.f32.mrb[96].mxu1  ;;  %v8407_v32 = vpop.f32.mrb[97].mxu0  ;;  %4684 = vmatmul.mubr.msk.bf16.vlgmr.msra.gmra.mrb[160].mxu0 %vm10885_vm11, %v7908_v62  ;;  %vm8445_vm2 = vmand %vm10897_vm8, %vm8343_vm9  ;;  %vm10904_vm11 = vcmp.eq.s32.totalorder %v7220_v22, %v7599_v44  ;;  %vm10917_vm8 = vcmp.eq.s32.totalorder %v7220_v22, %v7085_v2 }
 0x3bb   : > { %10881 = vst [vmem:[#allocation125_spill] sm:$0xff] %v8405_v13  ;;  %v2308_v59 = vpop.f32.mrb[97].mxu1  ;;  %5179 = vmatpush3.bf16.msra.mxu0 %v10888_v38  ;;  %v2005_v56 = vpop.f32.mrb[98].mxu0  ;;  %4687 = vmatprep.mubr.msk.bf16.mxu0 %vm4685_vm5, %v7696_v0  ;;  %vm3081_vm5 = vmand %vm10904_vm11, %vm8343_vm9  ;;  %vm10918_vm11 = vcmp.eq.s32.totalorder %v7273_v10, %v7599_v44 }
 0x3bc   : > { %v8418_v1 = vpop.f32.mrb[98].mxu1  ;;  %v2441_v14 = vpack.c.bf16 %v2005_v56, %v2001_v33  ;;  %5180 = vmatprep.subr.bf16.mxu0 %v10892_v53  ;;  %v8426_v26 = vpop.f32.mrb[99].mxu0  ;;  %v10900_v53 = vld [vmem:[#allocation80_spill] sm:$0xff]  ;;  %v10903_v33 = vpack.c.bf16 %v7950_v54, %v7932_v29  ;;  %vm4688_vm15 = vmpackc.low %vm3072_vm14, %vm3068_vm6  ;;  %v10909_v29 = vld [vmem:[#allocation85_spill] sm:$0xff]  ;;  %vm10916_vm6 = vcmp.eq.s32.totalorder %v7246_v3, %v7085_v2 }
 0x3bd   : > { %10889 = vst [vmem:[#allocation75_spill] sm:$0xff] %v8418_v1  ;;  %v2311_v63 = vpop.f32.mrb[99].mxu1  ;;  %vm4691_vm7 = vmpackc.low %vm3081_vm5, %vm8445_vm2  ;;  %v10910_v54 = vld [vmem:[#allocation84_spill] sm:$0xff] }
 0x3be   : > { %4986 = vmatprep.subr.bf16.mxu1 %v2441_v14  ;;  %v10901_v63 = vld [vmem:[#allocation79_spill] sm:$0xff]  ;;  %vm3076_vm14 = vmand %vm10916_vm6, %vm10894_vm13 }
 0x3bf   : > { %v10902_v56 = vpack.c.bf16 %v10900_v53, %v10901_v63  ;;  %4987 = vmatpush3.bf16.msra.mxu1 %v10903_v33  ;;  %v10905_v14 = vld [vmem:[#allocation107_spill] sm:$0xff]  ;;  %vm3080_vm2 = vmand %vm10917_vm8, %vm10894_vm13 }
 0x3c0   : > { %v10907_v8 = vpack.c.bf16 %v10905_v14, %v10906_v60  ;;  %vm8500_vm5 = vmand %vm10918_vm11, %vm8343_vm9  ;;  %vm10935_vm11 = vcmp.eq.s32.totalorder %v7263_v9, %v7085_v2 }
 0x3c1   : > { %5181 = vmatpush3.bf16.msra.mxu0 %v10902_v56  ;;  %v2011_v37 = vpop.f32.mrb[100].mxu0  ;;  %v10911_v56 = vpack.c.bf16 %v10909_v29, %v10910_v54  ;;  %v10922_v54 = vld [vmem:[#allocation86_spill] sm:$0xff]  ;;  %vm4694_vm6 = vmpackc.low %vm3080_vm2, %vm3076_vm14  ;;  %vm10934_vm14 = vcmp.eq.s32.totalorder %v7273_v10, %v7085_v2 }
 0x3c2   : > { %5182 = vmatprep.subr.bf16.mxu0 %v10907_v8  ;;  %v8463_v59 = vpop.f32.mrb[100].mxu1  ;;  %v8465_v53 = vpop.f32.mrb[101].mxu0  ;;  %4690 = vmatmul.mubr.msk.bf16.gmra.mrb[164].mxu0 %vm4688_vm15, %v7908_v62  ;;  %v10913_v8 = vld [vmem:[#allocation109_spill] sm:$0xff]  ;;  %vm10925_vm15 = vcmp.eq.s32.totalorder %v7263_v9, %v7599_v44  ;;  %vm3084_vm2 = vmand %vm10934_vm14, %vm10894_vm13 }
 0x3c3   : > { %10908 = vst [vmem:[#allocation76_spill] sm:$0xff] %v8463_v59  ;;  %v2316_v63 = vpop.f32.mrb[101].mxu1  ;;  %v2015_v33 = vpop.f32.mrb[102].mxu0  ;;  %4693 = vmatprep.mubr.msk.bf16.mxu0 %vm4691_vm7, %v7696_v0  ;;  %vm3089_vm7 = vmand %vm10925_vm15, %vm8343_vm9  ;;  %vm10936_vm15 = vcmp.eq.s32.totalorder %v7291_v24, %v7599_v44  ;;  %v11033_v59 = vmov 0 }
 0x3c4   : > { %v8473_v38 = vpop.f32.mrb[102].mxu1  ;;  %v2444_v14 = vpack.c.bf16 %v2015_v33, %v2011_v37  ;;  %v10914_v63 = vld [vmem:[#allocation108_spill] sm:$0xff]  ;;  %v8481_v1 = vpop.f32.mrb[103].mxu0  ;;  %v10921_v37 = vld [vmem:[#allocation87_spill] sm:$0xff]  ;;  %v10924_v33 = vpack.c.bf16 %v8016_v30, %v8003_v15  ;;  %vm4697_vm8 = vmpackc.low %vm3089_vm7, %vm8500_vm5 }
 0x3c5   : > { %5183 = vmatpush3.bf16.msra.mxu0 %v10911_v56  ;;  %10912 = vst [vmem:[#allocation78_spill] sm:$0xff] %v8473_v38  ;;  %v10915_v13 = vpack.c.bf16 %v10913_v8, %v10914_v63  ;;  %v2319_v21 = vpop.f32.mrb[103].mxu1  ;;  %v10923_v56 = vpack.c.bf16 %v10921_v37, %v10922_v54  ;;  %v10929_v15 = vld [vmem:[#allocation91_spill] sm:$0xff]  ;;  %v10930_v30 = vld [vmem:[#allocation89_spill] sm:$0xff]  ;;  %vm3088_vm5 = vmand %vm10935_vm11, %vm10894_vm13 }
 0x3c6   : > { %4988 = vmatprep.subr.bf16.mxu1 %v2444_v14  ;;  %v10926_v14 = vld [vmem:[#allocation110_spill] sm:$0xff]  ;;  %vm8555_vm7 = vmand %vm10936_vm15, %vm8343_vm9  ;;  %vm10952_vm15 = vcmp.eq.s32.totalorder %v7283_v48, %v7085_v2 }
 0x3c7   : > { %5184 = vmatprep.subr.bf16.mxu0 %v10915_v13  ;;  %4989 = vmatpush3.bf16.msra.mxu1 %v10924_v33  ;;  %v10927_v8 = vpack.c.bf16 %v7845_v23, %v10926_v14  ;;  %vm4700_vm14 = vmpackc.low %vm3088_vm5, %vm3084_vm2  ;;  %vm10951_vm2 = vcmp.eq.s32.totalorder %v7291_v24, %v7085_v2 }
 0x3c8   : > { %vm3092_vm5 = vmand %vm10951_vm2, %vm10894_vm13 }
 0x3c9   : > { %5185 = vmatpush3.bf16.msra.mxu0 %v10923_v56  ;;  %v2021_v63 = vpop.f32.mrb[104].mxu0  ;;  %v10931_v56 = vpack.c.bf16 %v10929_v15, %v10930_v30 }
 0x3ca   : > { %5186 = vmatprep.subr.bf16.mxu0 %v10927_v8  ;;  %v8518_v21 = vpop.f32.mrb[104].mxu1  ;;  %v8520_v37 = vpop.f32.mrb[105].mxu0  ;;  %4696 = vmatmul.mubr.msk.bf16.gmra.mrb[168].mxu0 %vm4694_vm6, %v7908_v62  ;;  %v10933_v8 = vpack.c.bf16 %v7860_v39, %v7856_v40  ;;  %v10939_v40 = vld [vmem:[#allocation93_spill] sm:$0xff]  ;;  %vm10943_vm6 = vcmp.eq.s32.totalorder %v7283_v48, %v7599_v44 }
 0x3cb   : > { %10928 = vst [vmem:[#allocation77_spill] sm:$0xff] %v8518_v21  ;;  %v2324_v54 = vpop.f32.mrb[105].mxu1  ;;  %v2025_v33 = vpop.f32.mrb[106].mxu0  ;;  %4699 = vmatprep.mubr.msk.bf16.mxu0 %vm4697_vm8, %v7696_v0  ;;  %vm3097_vm8 = vmand %vm10943_vm6, %vm8343_vm9  ;;  %vm10953_vm6 = vcmp.eq.s32.totalorder %v10835_v31, %v7599_v44 }
 0x3cc   : > { %v8528_v60 = vpop.f32.mrb[106].mxu1  ;;  %v2447_v23 = vpack.c.bf16 %v2025_v33, %v2021_v63  ;;  %v8536_v54 = vpop.f32.mrb[107].mxu0  ;;  %v10940_v63 = vld [vmem:[#allocation92_spill] sm:$0xff]  ;;  %v10944_v33 = vpack.c.bf16 %v7879_v28, %v7875_v52  ;;  %vm4703_vm11 = vmpackc.low %vm3097_vm8, %vm8555_vm7 }
 0x3cd   : > { %5187 = vmatpush3.bf16.msra.mxu0 %v10931_v56  ;;  %10932 = vst [vmem:[#allocation105_spill] sm:$0xff] %v8528_v60  ;;  %v2327_v13 = vpop.f32.mrb[107].mxu1  ;;  %v10941_v30 = vpack.c.bf16 %v10939_v40, %v10940_v63  ;;  %v10942_v56 = vpack.c.bf16 %v8096_v50, %v8079_v51  ;;  %v10946_v51 = vld [vmem:[#allocation96_spill] sm:$0xff]  ;;  %v10947_v50 = vld [vmem:[#allocation94_spill] sm:$0xff]  ;;  %vm3096_vm7 = vmand %vm10952_vm15, %vm10894_vm13 }
 0x3ce   : > { %5188 = vmatprep.subr.bf16.mxu0 %v10933_v8  ;;  %4990 = vmatprep.subr.bf16.mxu1 %v2447_v23  ;;  %v10948_v63 = vpack.c.bf16 %v10946_v51, %v10947_v50  ;;  %vm3101_vm8 = vmand %vm10953_vm6, %vm8343_vm9  ;;  %v10957_v50 = vpack.c.bf16 %v8176_v46, %v8157_v47  ;;  %vm10961_vm6 = vcmp.eq.s32.totalorder %v10835_v31, %v7085_v2 }
 0x3cf   : > { %4991 = vmatpush3.bf16.msra.mxu1 %v10942_v56  ;;  %vm4706_vm2 = vmpackc.low %vm3096_vm7, %vm3092_vm5  ;;  %vm10964_vm5 = vcmp.eq.s32.totalorder %v10840_v41, %v7085_v2 }
 0x3d0   : > { %vm3104_vm7 = vmand %vm10964_vm5, %vm10894_vm13  ;;  %vm10972_vm5 = vcmp.eq.s32.totalorder %v10855_v5, %v7085_v2 }
 0x3d1   : > { %5189 = vmatpush3.bf16.msra.mxu0 %v10941_v30  ;;  %v2031_v23 = vpop.f32.mrb[108].mxu0 }
 0x3d2   : > { %5190 = vmatprep.subr.bf16.mxu0 %v10944_v33  ;;  %v8573_v8 = vpop.f32.mrb[108].mxu1  ;;  %v8575_v13 = vpop.f32.mrb[109].mxu0  ;;  %4702 = vmatmul.mubr.msk.bf16.gmra.mrb[172].mxu0 %vm4700_vm14, %v7908_v62  ;;  %v10950_v33 = vpack.c.bf16 %v7898_v35, %v7890_v36  ;;  %v10954_v35 = vld [vmem:[#allocation100_spill] sm:$0xff]  ;;  %v10955_v36 = vld [vmem:[#allocation98_spill] sm:$0xff]  ;;  %vm10958_vm14 = vcmp.eq.s32.totalorder %v10840_v41, %v7599_v44 }
 0x3d3   : > { %10945 = vst [vmem:[#allocation104_spill] sm:$0xff] %v8573_v8  ;;  %v2332_v40 = vpop.f32.mrb[109].mxu1  ;;  %v2035_v30 = vpop.f32.mrb[110].mxu0  ;;  %4705 = vmatprep.mubr.msk.bf16.mxu0 %vm4703_vm11, %v7696_v0  ;;  %vm3105_vm11 = vmand %vm10958_vm14, %vm8343_vm9 }
 0x3d4   : > { %v8583_v56 = vpop.f32.mrb[110].mxu1  ;;  %v2450_v28 = vpack.c.bf16 %v2035_v30, %v2031_v23  ;;  %v8591_v40 = vpop.f32.mrb[111].mxu0  ;;  %v10956_v23 = vpack.c.bf16 %v10954_v35, %v10955_v36  ;;  %vm4709_vm15 = vmpackc.low %vm3105_vm11, %vm3101_vm8  ;;  %vm10965_vm8 = vcmp.eq.s32.totalorder %v10853_v11, %v7599_v44 }
 0x3d5   : > { %5191 = vmatpush3.bf16.msra.mxu0 %v10948_v63  ;;  %10949 = vst [vmem:[#allocation74_spill] sm:$0xff] %v8583_v56  ;;  %v2335_v39 = vpop.f32.mrb[111].mxu1  ;;  %vm8634_vm14 = vmand %vm10961_vm6, %vm10894_vm13 }
 0x3d6   : > { %5192 = vmatprep.subr.bf16.mxu0 %v10950_v33  ;;  %4992 = vmatprep.subr.bf16.mxu1 %v2450_v28  ;;  %vm8654_vm11 = vmand %vm10965_vm8, %vm8343_vm9 }
 0x3d7   : > { %4993 = vmatpush3.bf16.msra.mxu1 %v10957_v50  ;;  %vm8671_vm6 = vmand %vm10516_vm12, %vm10894_vm13 }
 0x3d8   : > { %vm8680_vm8 = vmand %vm10972_vm5, %vm10894_vm13 }
 0x3d9   : > { %5193 = vmatpush3.bf16.msra.mxu0 %v10956_v23  ;;  %v2041_v63 = vpop.f32.mrb[112].mxu0 }
 0x3da   : > { %v8621_v30 = vpop.f32.mrb[112].mxu1  ;;  %v8623_v28 = vpop.f32.mrb[113].mxu0  ;;  %4708 = vmatmul.mubr.msk.bf16.gmra.mrb[176].mxu0 %vm4706_vm2, %v7908_v62  ;;  %vm10968_vm2 = vcmp.eq.s32.totalorder %v10855_v5, %v7599_v44 }
 0x3db   : > { %10959 = vst [vmem:[#allocation80_spill] sm:$0xff] %v8621_v30  ;;  %v2340_v33 = vpop.f32.mrb[113].mxu1  ;;  %v2045_v39 = vpop.f32.mrb[114].mxu0  ;;  %4711 = vmatprep.mubr.msk.bf16.mxu0 %vm4709_vm15, %v7696_v0  ;;  %vm3113_vm15 = vmand %vm10968_vm2, %vm8343_vm9  ;;  %v11021_v30 = vld [vmem:[#allocation51_spill] sm:$0xff] }
 0x3dc   : > { %v8626_v35 = vpop.f32.mrb[114].mxu1  ;;  %v2453_v46 = vpack.c.bf16 %v2045_v39, %v2041_v63  ;;  %v8640_v23 = vpop.f32.mrb[115].mxu0  ;;  %v10969_v39 = vpack.c.bf16 %v8242_v55, %v8229_v34  ;;  %vm4712_vm2 = vmpackc.low %vm3104_vm7, %vm8634_vm14  ;;  %vm10978_vm7 = vcmp.eq.s32.totalorder %v10859_v4, %v7599_v44 }
 0x3dd   : > { %10960 = vst [vmem:[#allocation79_spill] sm:$0xff] %v8626_v35  ;;  %v2343_v50 = vpop.f32.mrb[115].mxu1  ;;  %vm4715_vm5 = vmpackc.low %vm3113_vm15, %vm8654_vm11  ;;  %vm10981_vm15 = vcmp.eq.s32.totalorder %v10861_v6, %v7599_v44 }
 0x3de   : > { %4994 = vmatprep.subr.bf16.mxu1 %v2453_v46  ;;  %vm4718_vm14 = vmpackc.low %vm8680_vm8, %vm8671_vm6  ;;  %v11013_v50 = vmov 0 }
 0x3df   : > { %4995 = vmatpush3.bf16.msra.mxu1 %v10969_v39  ;;  %v10976_v39 = vld [vmem:[#allocation54_spill] sm:$0xff]  ;;  %vm8711_vm11 = vmand %vm10978_vm7, %vm8343_vm9  ;;  %vm10986_vm7 = vcmp.eq.s32.totalorder %v10859_v4, %v7085_v2 }
 0x3e0   : > { %v3439_v36 = vrot.slane %v10976_v39, %v10863_v25  ;;  %vm8735_vm12 = vmand %vm10986_vm7, %vm10894_vm13 }
 0x3e1   : > { %v2051_v34 = vpop.f32.mrb[116].mxu0 }
 0x3e2   : > { %v8684_v55 = vpop.f32.mrb[116].mxu1  ;;  %v8690_v52 = vpop.f32.mrb[117].mxu0  ;;  %4714 = vmatmul.mubr.msk.bf16.gmra.mrb[180].mxu0 %vm4712_vm2, %v7908_v62  ;;  %vm8722_vm2 = vmand %vm10981_vm15, %vm8343_vm9  ;;  %vm10992_vm15 = vcmp.eq.s32.totalorder %v10871_v16, %v7599_v44 }
 0x3e3   : > { %10975 = vst [vmem:[#allocation107_spill] sm:$0xff] %v8684_v55  ;;  %v2348_v14 = vpop.f32.mrb[117].mxu1  ;;  %v2055_v33 = vpop.f32.mrb[118].mxu0  ;;  %4717 = vmatprep.mubr.msk.bf16.mxu0 %vm4715_vm5, %v7696_v0  ;;  %vm8726_vm5 = vcmp.eq.s32.totalorder %v3439_v36, 1  ;;  %vm8747_vm9 = vmand %vm10517_vm10, %vm10894_vm13  ;;  %vm10996_vm13 = vcmp.eq.s32.totalorder %v10873_v12, %v7599_v44  ;;  %v11000_v55 = vld [vmem:[#allocation88_spill] sm:$0xff]  ;;  %v11030_v36 = vmov 0 }
 0x3e4   : > { %v8695_v51 = vpop.f32.mrb[118].mxu1  ;;  %v2456_v47 = vpack.c.bf16 %v2055_v33, %v2051_v34  ;;  %v8704_v14 = vpop.f32.mrb[119].mxu0  ;;  %vm8756_vm7 = vmand %vm10992_vm15, %vm8726_vm5  ;;  %v11017_v33 = vld [vmem:[#allocation53_spill] sm:$0xff] }
 0x3e5   : > { %10977 = vst [vmem:[#allocation106_spill] sm:$0xff] %v8695_v51  ;;  %v2351_v15 = vpop.f32.mrb[119].mxu1  ;;  %vm8767_vm10 = vmand %vm10996_vm13, %vm8726_vm5  ;;  %v11001_v51 = vld [vmem:[#allocation60_spill] sm:$0xff]  ;;  %vm11023_vm3 = vcmp.eq.s32.totalorder %v7177_v17, %v11017_v33  ;;  %v11027_v34 = vld [vmem:[#allocation81_spill] sm:$0xff] }
 0x3e6   : > { %v10984_v15 = vmov 0  ;;  %4996 = vmatprep.subr.bf16.mxu1 %v2456_v47  ;;  %vm4721_vm15 = vmpackc.low %vm8722_vm2, %vm8711_vm11  ;;  %vm11002_vm8 = vcmp.eq.s32.totalorder %v7179_v18, %v11001_v51  ;;  %vm11005_vm11 = vcmp.eq.s32.totalorder %v7177_v17, %v11001_v51  ;;  %v11041_v47 = vpack.c.bf16 %v8382_v49, %v8375_v7 }
 0x3e7   : > { %v10985_v15 = vsel %vm8726_vm5, 4294967295, %v10984_v15  ;;  %4997 = vmatpush3.bf16.msra.mxu1 %v10989_v57  ;;  %vm8814_vm2 = vmand %vm11005_vm11, %vm7653_vm1  ;;  %vm11012_vm11 = vcmp.eq.s32.totalorder %v7177_v17, %v7599_v44  ;;  %v11047_v7 = vmov 0  ;;  %v11050_v49 = vmov 0 }
 0x3e8   : > { %vm8835_vm6 = vmand %vm11012_vm11, %vm8726_vm5 }
 0x3e9   : > { %v2061_v61 = vpop.f32.mrb[120].mxu0  ;;  %v11014_v50 = vsel %vm8835_vm6, 4294967295, %v11013_v50  ;;  %vm11022_vm11 = vmpackc.low %vm8747_vm9, %vm8735_vm12 }
 0x3ea   : > { %v8760_v19 = vpop.f32.mrb[120].mxu1  ;;  %v8771_v57 = vpop.f32.mrb[121].mxu0  ;;  %4720 = vmatmul.mubr.msk.bf16.gmra.mrb[184].mxu0 %vm4718_vm14, %v7908_v62  ;;  %vm8805_vm14 = vmand %vm11002_vm8, %vm7653_vm1 }
 0x3eb   : > { %10995 = vst [vmem:[#allocation85_spill] sm:$0xff] %v8760_v19  ;;  %v2356_v25 = vpop.f32.mrb[121].mxu1  ;;  %v2065_v29 = vpop.f32.mrb[122].mxu0  ;;  %4723 = vmatprep.mubr.msk.bf16.mxu0 %vm4721_vm15, %v7696_v0  ;;  %vm11009_vm15 = vcmp.eq.s32.totalorder %v7179_v18, %v7599_v44  ;;  %v11019_v19 = vmov 0  ;;  %vm11026_vm12 = vmpackc.low %vm8767_vm10, %vm8756_vm7  ;;  %vm11032_vm10 = vcmp.eq.s32.totalorder %v7177_v17, %v7085_v2 }
 0x3ec   : > { %v8783_v39 = vpop.f32.mrb[122].mxu1  ;;  %v2459_v46 = vpack.c.bf16 %v2065_v29, %v2061_v61  ;;  %v8792_v25 = vpop.f32.mrb[123].mxu0  ;;  %vm8826_vm8 = vmand %vm11009_vm15, %vm8726_vm5  ;;  %vm11018_vm15 = vcmp.eq.s32.totalorder %v7179_v18, %v11017_v33  ;;  %v11071_v61 = vmov 0 }
 0x3ed   : > { %10999 = vst [vmem:[#allocation84_spill] sm:$0xff] %v8783_v39  ;;  %v2359_v63 = vpop.f32.mrb[123].mxu1  ;;  %v5567_v39 = vld [vmem:[%s501_s16] sm:$0xf] }
 0x3ee   : > { %4998 = vmatprep.subr.bf16.mxu1 %v2459_v46  ;;  %v11008_v63 = vpack.c.bf16 %v8338_v42, %v8329_v20  ;;  %v11010_v46 = vmov 0  ;;  %v2723_v35 = vrot.slane %v5567_v39, %v11021_v30  ;;  %v11024_v30 = vmov 0 }
 0x3ef   : > { %v11011_v46 = vsel %vm8826_vm8, 4294967295, %v11010_v46 }
 0x3f0   : > { %4999 = vmatpush3.bf16.msra.mxu1 %v11008_v63  ;;  %v11015_v63 = vld [vmem:[#allocation56_spill] sm:$0xff] }
 0x3f1   : > { %v2071_v20 = vpop.f32.mrb[124].mxu0  ;;  %vm11016_vm13 = vnez %v11015_v63 }
 0x3f2   : > { %v8839_v42 = vpop.f32.mrb[124].mxu1  ;;  %vm8846_vm4 = vmand %vm11018_vm15, %vm11016_vm13  ;;  %v8853_v8 = vpop.f32.mrb[125].mxu0  ;;  %4726 = vmatmul.mubr.msk.bf16.gmra.mrb[188].mxu0 %vm11022_vm11, %v7908_v62  ;;  %vm11029_vm11 = vcmp.eq.s32.totalorder %v7179_v18, %v7085_v2 }
 0x3f3   : > { %v11020_v19 = vsel %vm8846_vm4, 4294967295, %v11019_v19  ;;  %v2364_v56 = vpop.f32.mrb[125].mxu1  ;;  %vm8870_vm0 = vmand %vm11023_vm3, %vm11016_vm13  ;;  %4777 = vmatprep.mubr.msk.bf16.mxu0 %vm11026_vm12, %v7696_v0  ;;  %vm11028_vm3 = vnez %v11027_v34  ;;  %vm11035_vm12 = vcmp.eq.s32.totalorder %v7246_v3, %v11001_v51 }
 0x3f4   : > { %v11025_v30 = vsel %vm8870_vm0, 4294967295, %v11024_v30  ;;  %v2075_v56 = vpop.f32.mrb[126].mxu0  ;;  %v8874_v39 = vpop.f32.mrb[126].mxu1  ;;  %vm8891_vm15 = vmand %vm11029_vm11, %vm11028_vm3 }
 0x3f5   : > { %v11031_v36 = vsel %vm8891_vm15, 4294967295, %v11030_v36  ;;  %v2462_v21 = vpack.c.bf16 %v2075_v56, %v2071_v20  ;;  %v8897_v27 = vpop.f32.mrb[127].mxu0  ;;  %v2367_v60 = vpop.f32.mrb[127].mxu1  ;;  %vm8904_vm7 = vmand %vm11032_vm10, %vm11028_vm3  ;;  %vm11038_vm10 = vcmp.eq.s32.totalorder %v7220_v22, %v11001_v51  ;;  %vm11049_vm3 = vcmp.eq.s32.totalorder %v7246_v3, %v11017_v33 }
 0x3f6   : > { %v11034_v59 = vsel %vm8904_vm7, 4294967295, %v11033_v59  ;;  %v2463_v38 = vpack.c.bf16 %v8897_v27, %v8853_v8  ;;  %vm8915_vm11 = vmand %vm11035_vm12, %vm7653_vm1  ;;  %v8919_v60 = vpack.c.bf16 %v2723_v35, %v2723_v35  ;;  %vm11042_vm12 = vcmp.eq.s32.totalorder %v7246_v3, %v7599_v44  ;;  %v11216_v8 = vld [vmem:[#allocation124_spill] sm:$0xff]  ;;  %v11217_v27 = vld [vmem:[#allocation57_spill] sm:$0xff] }
 0x3f7   : > { %5000 = vmatprep.subr.bf16.mxu1 %v2462_v21  ;;  %vm8926_vm9 = vmand %vm11038_vm10, %vm7653_vm1  ;;  %v11043_v21 = vmov 0  ;;  %v11045_v35 = vpack.c.bf16 %v8426_v26, %v8407_v32  ;;  %vm11046_vm10 = vcmp.eq.s32.totalorder %v7220_v22, %v7599_v44  ;;  %v11052_v32 = vld [vmem:[#allocation61_spill] sm:$0xff]  ;;  %vm11062_vm7 = vcmp.eq.s32.totalorder %v7220_v22, %v11017_v33 }
 0x3f8   : > { %5001 = vmatpush3.bf16.msra.mxu1 %v11041_v47  ;;  %vm8938_vm8 = vmand %vm11042_vm12, %vm8726_vm5  ;;  %v11054_v26 = vld [vmem:[#allocation65_spill] sm:$0xff]  ;;  %v11057_v47 = vld [vmem:[#allocation82_spill] sm:$0xff]  ;;  %v11121_v20 = vpack.c.bf16 %v8591_v40, %v8575_v13  ;;  %v11130_v13 = vmov 0  ;;  %v11218_v56 = vpack.c.bf16 %v11216_v8, %v11217_v27 }
 0x3f9   : > { %v11044_v21 = vsel %vm8938_vm8, 4294967295, %v11043_v21  ;;  %5114 = vmatprep.subr.bf16.mxu1 %v11045_v35  ;;  %vm8950_vm1 = vmand %vm11046_vm10, %vm8726_vm5  ;;  %vm11053_vm10 = vnez %v11052_v32  ;;  %vm11055_vm5 = vnez %v11054_v26  ;;  %vm11058_vm4 = vnez %v11057_v47  ;;  %v11059_v35 = vld [vmem:[#allocation83_spill] sm:$0xff]  ;;  %v11065_v26 = vld [vmem:[#allocation90_spill] sm:$0xff] }
 0x3fa   : > { %v11048_v7 = vsel %vm8950_vm1, 4294967295, %v11047_v7  ;;  %vm8967_vm8 = vmand %vm11049_vm3, %vm11016_vm13  ;;  %vm11060_vm6 = vnez %v11059_v35  ;;  %v11063_v32 = vmov 0  ;;  %v11067_v47 = vpack.c.bf16 %v7964_v58, %v7938_v43  ;;  %v11132_v40 = vld [vmem:[#allocation97_spill] sm:$0xff]  ;;  %v11309_v8 = vld [vmem:[#allocation95_spill] sm:$0xff] }
 0x3fb   : > { %v11051_v49 = vsel %vm8967_vm8, 4294967295, %v11050_v49  ;;  %vm11056_vm12 = vmpackc.low %vm11053_vm10, %vm11055_vm5  ;;  %v11076_v43 = vpack.c.bf16 %v8481_v1, %v8465_v53  ;;  %v11078_v58 = vmov 0  ;;  %vm11081_vm3 = vcmp.eq.s32.totalorder %v7273_v10, %v11001_v51  ;;  %v11087_v53 = vld [vmem:[#allocation114_spill] sm:$0xff] }
 0x3fc   : > { %4636 = vmatmul.mubr.msk.bf16.vlgmr.msra.gmra.mrb[128].mxu1 %vm11056_vm12, %v8919_v60  ;;  %vm11061_vm15 = vmpackc.low %vm11058_vm4, %vm11060_vm6  ;;  %vm11080_vm6 = vnez %v11000_v55  ;;  %v11088_v29 = vpack.c.bf16 %v8030_v45, %v11087_v53  ;;  %v11093_v35 = vpack.c.bf16 %v8536_v54, %v8520_v37  ;;  %v11095_v45 = vmov 0  ;;  %v11174_v1 = vld [vmem:[#allocation102_spill] sm:$0xff]  ;;  %v11197_v54 = vld [vmem:[#allocation72_spill] sm:$0xff] }
 0x3fd   : > { %4780 = vmatmul.mubr.msk.bf16.vlgmr.msra.gmra.mrb[192].mxu0 %vm11061_vm15, %v7908_v62  ;;  %vm8992_vm0 = vmand %vm11062_vm7, %vm11016_vm13  ;;  %5115 = vmatpush3.bf16.msra.mxu1 %v11067_v47  ;;  %vm11069_vm15 = vnez %v11027_v34  ;;  %vm11070_vm7 = vcmp.eq.s32.totalorder %v7246_v3, %v7085_v2  ;;  %vm11103_vm8 = vnez %v11034_v59  ;;  %vm11104_vm1 = vnez %v11031_v36  ;;  %v11110_v59 = vld [vmem:[#allocation119_spill] sm:$0xff]  ;;  %v11196_v37 = vld [vmem:[#allocation122_spill] sm:$0xff] }
 0x3fe   : > { %v11064_v32 = vsel %vm8992_vm0, 4294967295, %v11063_v32  ;;  %vm11066_vm4 = vmpackc.low %vm8814_vm2, %vm8805_vm14  ;;  %vm11073_vm14 = vnez %v11014_v50  ;;  %vm11074_vm2 = vnez %v11011_v46  ;;  %5116 = vmatprep.subr.bf16.mxu1 %v11076_v43  ;;  %v11091_v46 = vmov 0  ;;  %v11306_v36 = vld [vmem:[#allocation80_spill] sm:$0xff] }
 0x3ff   : > { %4639 = vmatprep.mubr.msk.bf16.mxu1 %vm11066_vm4, %v11065_v26  ;;  %vm9014_vm12 = vmand %vm11070_vm7, %vm11069_vm15  ;;  %vm11077_vm4 = vcmp.eq.s32.totalorder %v7220_v22, %v7085_v2  ;;  %v11137_v43 = vmov 0  ;;  %v11139_v53 = vpack.c.bf16 %v8640_v23, %v8623_v28  ;;  %v11150_v28 = vld [vmem:[#allocation99_spill] sm:$0xff]  ;;  %v11151_v23 = vld [vmem:[#allocation68_spill] sm:$0xff]  ;;  %v11168_v50 = vmov 0 }
 0x400   : > { %v11072_v61 = vsel %vm9014_vm12, 4294967295, %v11071_v61  ;;  %vm11075_vm10 = vmpackc.low %vm11073_vm14, %vm11074_vm2  ;;  %vm11084_vm2 = vcmp.eq.s32.totalorder %v7263_v9, %v11001_v51 }
 0x401   : > { %4783 = vmatprep.mubr.msk.bf16.mxu0 %vm11075_vm10, %v7696_v0  ;;  %vm9032_vm7 = vmand %vm11077_vm4, %vm11069_vm15  ;;  %5117 = vmatpush3.bf16.msra.mxu1 %v11088_v29  ;;  %vm11089_vm4 = vnez %v10985_v15  ;;  %vm11097_vm15 = vcmp.eq.s32.totalorder %v7273_v10, %v11017_v33  ;;  %v11141_v29 = vmov 0 }
 0x402   : > { %v11079_v58 = vsel %vm9032_vm7, 4294967295, %v11078_v58  ;;  %vm9041_vm14 = vmand %vm11081_vm3, %vm11080_vm6  ;;  %vm11090_vm3 = vcmp.eq.s32.totalorder %v7273_v10, %v7599_v44  ;;  %5118 = vmatprep.subr.bf16.mxu1 %v11093_v35  ;;  %vm11106_vm7 = vcmp.eq.s32.totalorder %v7263_v9, %v11017_v33  ;;  %v11178_v35 = vmov 0 }
 0x403   : > { %vm9050_vm10 = vmand %vm11084_vm2, %vm11080_vm6  ;;  %vm11094_vm2 = vcmp.eq.s32.totalorder %v7263_v9, %v7599_v44 }
 0x404   : > { %vm9062_vm5 = vmand %vm11090_vm3, %vm11089_vm4 }
 0x405   : > { %v11092_v46 = vsel %vm9062_vm5, 4294967295, %v11091_v46  ;;  %vm9074_vm6 = vmand %vm11094_vm2, %vm11089_vm4  ;;  %vm11100_vm2 = vnez %v11025_v30  ;;  %vm11101_vm4 = vnez %v11020_v19  ;;  %v11111_v19 = vld [vmem:[#allocation117_spill] sm:$0xff] }
 0x406   : > { %v11096_v45 = vsel %vm9074_vm6, 4294967295, %v11095_v45  ;;  %vm9091_vm5 = vmand %vm11097_vm15, %vm11016_vm13  ;;  %v11112_v30 = vpack.c.bf16 %v11110_v59, %v11111_v19  ;;  %vm11126_vm15 = vcmp.eq.s32.totalorder %v7291_v24, %v11001_v51  ;;  %vm11143_vm6 = vnez %v11064_v32  ;;  %v11280_v32 = vld [vmem:[#allocation59_spill] sm:$0xff]  ;;  %v11295_v59 = vld [vmem:[#allocation74_spill] sm:$0xff] }
 0x407   : > { %vm11102_vm3 = vmpackc.low %vm11100_vm2, %vm11101_vm4  ;;  %vm11115_vm4 = vcmp.eq.s32.totalorder %v7273_v10, %v7085_v2  ;;  %v11198_v19 = vpack.c.bf16 %v11196_v37, %v11197_v54  ;;  %v11301_v37 = vld [vmem:[#allocation69_spill] sm:$0xff]  ;;  %v11302_v54 = vld [vmem:[#allocation120_spill] sm:$0xff] }
 0x408   : > { %4642 = vmatmul.mubr.msk.bf16.gmra.mrb[132].mxu1 %vm11102_vm3, %v8919_v60  ;;  %vm11105_vm12 = vmpackc.low %vm11103_vm8, %vm11104_vm1 }
 0x409   : > { %4786 = vmatmul.mubr.msk.bf16.gmra.mrb[196].mxu0 %vm11105_vm12, %v7908_v62  ;;  %vm9116_vm0 = vmand %vm11106_vm7, %vm11016_vm13  ;;  %5119 = vmatpush3.bf16.msra.mxu1 %v11112_v30  ;;  %vm11114_vm7 = vnez %v11027_v34  ;;  %vm11125_vm12 = vnez %v11000_v55  ;;  %vm11144_vm13 = vnez %v11051_v49  ;;  %v11152_v49 = vpack.c.bf16 %v11150_v28, %v11151_v23  ;;  %v11278_v23 = vld [vmem:[#allocation76_spill] sm:$0xff]  ;;  %v11305_v30 = vld [vmem:[#allocation79_spill] sm:$0xff] }
 0x40a   : > { %vm11109_vm1 = vmpackc.low %vm8926_vm9, %vm8915_vm11  ;;  %vm11118_vm9 = vnez %v11048_v7  ;;  %vm11119_vm11 = vnez %v11044_v21  ;;  %5120 = vmatprep.subr.bf16.mxu1 %v11121_v20  ;;  %v11127_v21 = vmov 0  ;;  %v11133_v7 = vld [vmem:[#allocation121_spill] sm:$0xff]  ;;  %v11211_v20 = vmov 0 }
 0x40b   : > { %4645 = vmatprep.mubr.msk.bf16.mxu1 %vm11109_vm1, %v11065_v26  ;;  %vm9138_vm3 = vmand %vm11115_vm4, %vm11114_vm7  ;;  %vm11122_vm1 = vcmp.eq.s32.totalorder %v7263_v9, %v7085_v2  ;;  %v11134_v47 = vpack.c.bf16 %v11132_v40, %v11133_v7 }
 0x40c   : > { %vm11120_vm2 = vmpackc.low %vm11118_vm9, %vm11119_vm11  ;;  %vm11129_vm11 = vcmp.eq.s32.totalorder %v7283_v48, %v11001_v51 }
 0x40d   : > { %4789 = vmatprep.mubr.msk.bf16.mxu0 %vm11120_vm2, %v7696_v0  ;;  %vm9156_vm4 = vmand %vm11122_vm1, %vm11114_vm7  ;;  %5121 = vmatpush3.bf16.msra.mxu1 %v11134_v47  ;;  %vm11135_vm1 = vnez %v10985_v15 }
 0x40e   : > { %vm9165_vm9 = vmand %vm11126_vm15, %vm11125_vm12  ;;  %vm11136_vm15 = vcmp.eq.s32.totalorder %v7291_v24, %v7599_v44  ;;  %5122 = vmatprep.subr.bf16.mxu1 %v11139_v53  ;;  %v11318_v53 = vld [vmem:[#allocation103_spill] sm:$0xff] }
 0x40f   : > { %v11128_v21 = vsel %vm9165_vm9, 4294967295, %v11127_v21  ;;  %vm9174_vm2 = vmand %vm11129_vm11, %vm11125_vm12  ;;  %vm11140_vm11 = vcmp.eq.s32.totalorder %v7283_v48, %v7599_v44  ;;  %vm11185_vm9 = vcmp.eq.s32.totalorder %v10835_v31, %v7599_v44 }
 0x410   : > { %v11131_v13 = vsel %vm9174_vm2, 4294967295, %v11130_v13  ;;  %vm9186_vm7 = vmand %vm11136_vm15, %vm11135_vm1  ;;  %vm11166_vm15 = vnez %v11027_v34 }
 0x411   : > { %v11138_v43 = vsel %vm9186_vm7, 4294967295, %v11137_v43  ;;  %vm9198_vm12 = vmand %vm11140_vm11, %vm11135_vm1  ;;  %vm11146_vm11 = vnez %v11079_v58  ;;  %vm11147_vm1 = vnez %v11072_v61  ;;  %5123 = vmatpush3.bf16.msra.mxu1 %v11152_v49  ;;  %v11162_v61 = vpack.c.bf16 %v8704_v14, %v8690_v52  ;;  %v11173_v14 = vld [vmem:[#allocation70_spill] sm:$0xff]  ;;  %v11286_v58 = vld [vmem:[#allocation113_spill] sm:$0xff] }
 0x412   : > { %v11142_v29 = vsel %vm9198_vm12, 4294967295, %v11141_v29  ;;  %vm11145_vm7 = vmpackc.low %vm11143_vm6, %vm11144_vm13  ;;  %vm11167_vm13 = vcmp.eq.s32.totalorder %v7291_v24, %v7085_v2  ;;  %v11289_v52 = vld [vmem:[#allocation105_spill] sm:$0xff] }
 0x413   : > { %4648 = vmatmul.mubr.msk.bf16.gmra.mrb[136].mxu1 %vm11145_vm7, %v8919_v60  ;;  %vm11148_vm12 = vmpackc.low %vm11146_vm11, %vm11147_vm1  ;;  %vm11155_vm7 = vnez %v11015_v63  ;;  %vm11156_vm1 = vcmp.eq.s32.totalorder %v7291_v24, %v11017_v33  ;;  %5124 = vmatprep.subr.bf16.mxu1 %v11162_v61  ;;  %v11285_v61 = vld [vmem:[#allocation115_spill] sm:$0xff] }
 0x414   : > { %4792 = vmatmul.mubr.msk.bf16.gmra.mrb[200].mxu0 %vm11148_vm12, %v7908_v62  ;;  %vm11149_vm8 = vmpackc.low %vm9050_vm10, %vm9041_vm14  ;;  %vm11159_vm14 = vnez %v11096_v45  ;;  %vm11160_vm10 = vnez %v11092_v46  ;;  %vm11163_vm12 = vcmp.eq.s32.totalorder %v7283_v48, %v11017_v33  ;;  %v11175_v46 = vpack.c.bf16 %v11173_v14, %v11174_v1  ;;  %v11290_v14 = vld [vmem:[#allocation77_spill] sm:$0xff] }
 0x415   : > { %4651 = vmatprep.mubr.msk.bf16.mxu1 %vm11149_vm8, %v11065_v26  ;;  %vm9244_vm11 = vmand %vm11156_vm1, %vm11155_vm7  ;;  %v11180_v45 = vpack.c.bf16 %v8792_v25, %v8771_v57  ;;  %v11291_v1 = vpack.c.bf16 %v11289_v52, %v11290_v14  ;;  %v11296_v57 = vld [vmem:[#allocation104_spill] sm:$0xff]  ;;  %v11332_v52 = vld [vmem:[#allocation58_spill] sm:$0xff] }
 0x416   : > { %vm11161_vm8 = vmpackc.low %vm11159_vm14, %vm11160_vm10  ;;  %vm11170_vm10 = vcmp.eq.s32.totalorder %v7283_v48, %v7085_v2  ;;  %5125 = vmatpush3.bf16.msra.mxu1 %v11175_v46  ;;  %v11292_v46 = vld [vmem:[#allocation118_spill] sm:$0xff]  ;;  %v11297_v25 = vpack.c.bf16 %v11295_v59, %v11296_v57 }
 0x417   : > { %4795 = vmatprep.mubr.msk.bf16.mxu0 %vm11161_vm8, %v7696_v0  ;;  %vm9262_vm1 = vmand %vm11163_vm12, %vm11155_vm7  ;;  %vm11176_vm12 = vnez %v11000_v55  ;;  %5126 = vmatprep.subr.bf16.mxu1 %v11180_v45  ;;  %vm11184_vm7 = vnez %v10985_v15 }
 0x418   : > { %vm9271_vm14 = vmand %vm11167_vm13, %vm11166_vm15  ;;  %vm11177_vm13 = vcmp.eq.s32.totalorder %v10835_v31, %v11001_v51 }
 0x419   : > { %v11169_v50 = vsel %vm9271_vm14, 4294967295, %v11168_v50  ;;  %vm9280_vm8 = vmand %vm11170_vm10, %vm11166_vm15  ;;  %vm11181_vm10 = vcmp.eq.s32.totalorder %v10840_v41, %v11001_v51  ;;  %vm11210_vm14 = vcmp.eq.s32.totalorder %v10835_v31, %v7085_v2 }
 0x41a   : > { %vm9292_vm6 = vmand %vm11177_vm13, %vm11176_vm12  ;;  %5127 = vmatpush3.bf16.msra.mxu1 %v11198_v19  ;;  %v11303_v19 = vpack.c.bf16 %v11301_v37, %v11302_v54 }
 0x41b   : > { %v11179_v35 = vsel %vm9292_vm6, 4294967295, %v11178_v35  ;;  %vm9304_vm15 = vmand %vm11181_vm10, %vm11176_vm12  ;;  %5128 = vmatprep.subr.bf16.mxu1 %v2463_v38  ;;  %v11214_v38 = vmov 0 }
 0x41c   : > { %vm9321_vm2 = vmand %vm11185_vm9, %vm11184_vm7  ;;  %vm11190_vm9 = vcmp.eq.s32.totalorder %v10840_v41, %v7599_v44 }
 0x41d   : > { %vm11188_vm10 = vmpackc.low %vm9116_vm0, %vm9091_vm5  ;;  %vm11193_vm0 = vnez %v11131_v13  ;;  %vm11194_vm5 = vnez %v11128_v21  ;;  %v11220_v21 = vld [vmem:[#allocation75_spill] sm:$0xff]  ;;  %v11221_v13 = vld [vmem:[#allocation125_spill] sm:$0xff] }
 0x41e   : > { %4654 = vmatmul.mubr.msk.bf16.gmra.mrb[140].mxu1 %vm11188_vm10, %v8919_v60  ;;  %vm11189_vm6 = vmpackc.low %vm9156_vm4, %vm9138_vm3  ;;  %vm11199_vm3 = vnez %v11015_v63  ;;  %vm11200_vm4 = vcmp.eq.s32.totalorder %v10835_v31, %v11017_v33  ;;  %v11222_v40 = vpack.c.bf16 %v11220_v21, %v11221_v13  ;;  %v11312_v21 = vld [vmem:[#allocation107_spill] sm:$0xff] }
 0x41f   : > { %4798 = vmatmul.mubr.msk.bf16.gmra.mrb[204].mxu0 %vm11189_vm6, %v7908_v62  ;;  %vm9342_vm13 = vmand %vm11190_vm9, %vm11184_vm7  ;;  %vm11203_vm9 = vnez %v11142_v29  ;;  %vm11204_vm7 = vnez %v11138_v43  ;;  %5129 = vmatpush3.bf16.msra.mxu1 %v11218_v56  ;;  %v11256_v29 = vld [vmem:[#allocation52_spill] sm:$0xff]  ;;  %v11311_v56 = vld [vmem:[#allocation106_spill] sm:$0xff] }
 0x420   : > { %vm11195_vm10 = vmpackc.low %vm11193_vm0, %vm11194_vm5  ;;  %vm11206_vm5 = vcmp.eq.s32.totalorder %v10840_v41, %v11017_v33  ;;  %5242 = vmatprep.subr.bf16.mxu1 %v11222_v40  ;;  %v11313_v13 = vpack.c.bf16 %v11311_v56, %v11312_v21  ;;  %v11317_v43 = vld [vmem:[#allocation71_spill] sm:$0xff] }
 0x421   : > { %4657 = vmatprep.mubr.msk.bf16.mxu1 %vm11195_vm10, %v11065_v26  ;;  %vm9360_vm6 = vmand %vm11200_vm4, %vm11199_vm3  ;;  %vm11209_vm4 = vnez %v11027_v34 }
 0x422   : > { %vm11205_vm0 = vmpackc.low %vm11203_vm9, %vm11204_vm7  ;;  %vm11213_vm9 = vcmp.eq.s32.totalorder %v10840_v41, %v7085_v2 }
 0x423   : > { %4801 = vmatprep.mubr.msk.bf16.mxu0 %vm11205_vm0, %v7696_v0  ;;  %vm9378_vm10 = vmand %vm11206_vm5, %vm11199_vm3  ;;  %vm11219_vm5 = vnez %v11179_v35  ;;  %v11293_v35 = vld [vmem:[#allocation116_spill] sm:$0xff] }
 0x424   : > { %vm9387_vm7 = vmand %vm11210_vm14, %vm11209_vm4  ;;  %v11294_v45 = vpack.c.bf16 %v11292_v46, %v11293_v35 }
 0x425   : > { %v11212_v20 = vsel %vm9387_vm7, 4294967295, %v11211_v20  ;;  %vm9396_vm0 = vmand %vm11213_vm9, %vm11209_vm4  ;;  %vm11241_vm7 = vcmp.eq.s32.totalorder %v10853_v11, %v7085_v2 }
 0x426   : > { %v11215_v38 = vsel %vm9396_vm0, 4294967295, %v11214_v38  ;;  %vm4661_vm14 = vmpackc.low %vm9304_vm15, %vm11219_vm5  ;;  %vm11223_vm15 = vcmp.eq.s32.totalorder %v10853_v11, %v11001_v51 }
 0x427   : > { %vm4805_vm9 = vmpackc.low %vm9342_vm13, %vm9321_vm2  ;;  %vm11227_vm13 = vnez %v11169_v50  ;;  %v11287_v50 = vpack.c.bf16 %v11285_v61, %v11286_v58  ;;  %v11327_v61 = vpack.c.bf16 %v8874_v39, %v8839_v42  ;;  %v11331_v39 = vld [vmem:[#allocation123_spill] sm:$0xff] }
 0x428   : > { %vm9427_vm5 = vmand %vm11223_vm15, %vm11176_vm12  ;;  %vm11229_vm15 = vcmp.eq.s32.totalorder %v10855_v5, %v11001_v51  ;;  %v11333_v14 = vpack.c.bf16 %v11331_v39, %v11332_v52 }
 0x429   : > { %vm11226_vm2 = vmpackc.low %vm9262_vm1, %vm9244_vm11  ;;  %vm11230_vm11 = vnez %v10985_v15  ;;  %vm11231_vm1 = vcmp.eq.s32.totalorder %v10853_v11, %v7599_v44 }
 0x42a   : > { %4660 = vmatmul.mubr.msk.bf16.gmra.mrb[144].mxu1 %vm11226_vm2, %v8919_v60  ;;  %vm11228_vm3 = vmpackc.low %vm9280_vm8, %vm11227_vm13  ;;  %vm11232_vm8 = vcmp.eq.s32.totalorder %v10855_v5, %v7599_v44  ;;  %vm11233_vm13 = vnez %v11015_v63 }
 0x42b   : > { %4804 = vmatmul.mubr.msk.bf16.gmra.mrb[208].mxu0 %vm11228_vm3, %v7908_v62  ;;  %vm2702_vm4 = vmand %vm11229_vm15, %vm11176_vm12  ;;  %4663 = vmatprep.mubr.msk.bf16.mxu1 %vm4661_vm14, %v11065_v26  ;;  %vm11234_vm15 = vcmp.eq.s32.totalorder %v10853_v11, %v11017_v33  ;;  %vm11240_vm12 = vnez %v11027_v34 }
 0x42c   : > { %4807 = vmatprep.mubr.msk.bf16.mxu0 %vm4805_vm9, %v7696_v0  ;;  %vm3501_vm2 = vmand %vm11231_vm1, %vm11230_vm11  ;;  %vm11237_vm9 = vcmp.eq.s32.totalorder %v10855_v5, %v11017_v33 }
 0x42d   : > { %vm3505_vm3 = vmand %vm11232_vm8, %vm11230_vm11 }
 0x42e   : > { %vm9465_vm14 = vmand %vm11234_vm15, %vm11233_vm13 }
 0x42f   : > { %vm9474_vm1 = vmand %vm11237_vm9, %vm11233_vm13 }
 0x430   : > { %vm4667_vm8 = vmpackc.low %vm2702_vm4, %vm9427_vm5  ;;  %vm11245_vm5 = vnez %v11215_v38  ;;  %v11308_v38 = vld [vmem:[#allocation101_spill] sm:$0xff] }
 0x431   : > { %vm4811_vm11 = vmpackc.low %vm3505_vm3, %vm3501_vm2  ;;  %vm11246_vm2 = vnez %v11212_v20  ;;  %v11307_v20 = vpack.c.bf16 %v11305_v30, %v11306_v36  ;;  %v11310_v27 = vpack.c.bf16 %v11308_v38, %v11309_v8  ;;  %v11343_v38 = vld [vmem:[#allocation54_spill] sm:$0xff] }
 0x432   : > { %vm9489_vm0 = vmand %vm11241_vm7, %vm11240_vm12  ;;  %vm11248_vm7 = vcmp.eq.s32.totalorder %v10855_v5, %v7085_v2 }
 0x433   : > { %vm11244_vm4 = vmpackc.low %vm9378_vm10, %vm9360_vm6  ;;  %vm11249_vm6 = vnez %v11000_v55  ;;  %vm11250_vm10 = vcmp.eq.s32.totalorder %v10859_v4, %v11001_v51  ;;  %v11255_v55 = vld [vmem:[#allocation55_spill] sm:$0xff] }
 0x434   : > { %4666 = vmatmul.mubr.msk.bf16.gmra.mrb[148].mxu1 %vm11244_vm4, %v8919_v60  ;;  %vm11247_vm3 = vmpackc.low %vm11245_vm5, %vm11246_vm2  ;;  %vm11251_vm5 = vcmp.eq.s32.totalorder %v10861_v6, %v11001_v51  ;;  %v3055_v28 = vrot.slane %v11256_v29, %v11255_v55  ;;  %v11319_v29 = vpack.c.bf16 %v11317_v43, %v11318_v53  ;;  %v3447_v8 = vrot.slane %v11343_v38, %v11255_v55 }
 0x435   : > { %4810 = vmatmul.mubr.msk.bf16.gmra.mrb[212].mxu0 %vm11247_vm3, %v7908_v62  ;;  %vm3504_vm9 = vmand %vm11248_vm7, %vm11240_vm12  ;;  %4669 = vmatprep.mubr.msk.bf16.mxu1 %vm4667_vm8, %v11065_v26  ;;  %vm11252_vm3 = vnez %v10985_v15  ;;  %vm11253_vm7 = vcmp.eq.s32.totalorder %v10859_v4, %v7599_v44  ;;  %v11275_v15 = vld [vmem:[#allocation111_spill] sm:$0xff] }
 0x436   : > { %4813 = vmatprep.mubr.msk.bf16.mxu0 %vm4811_vm11, %v7696_v0  ;;  %vm2706_vm4 = vmand %vm11250_vm10, %vm11249_vm6  ;;  %vm11254_vm11 = vcmp.eq.s32.totalorder %v10861_v6, %v7599_v44 }
 0x437   : > { %vm2710_vm2 = vmand %vm11251_vm5, %vm11249_vm6 }
 0x438   : > { %vm3509_vm8 = vmand %vm11253_vm7, %vm11252_vm3 }
 0x439   : > { %vm3513_vm15 = vmand %vm11254_vm11, %vm11252_vm3  ;;  %vm11258_vm3 = vcmp.eq.s32.totalorder %v10859_v4, %v11017_v33  ;;  %vm11266_vm11 = vcmp.eq.s32.totalorder %v10873_v12, %v11001_v51 }
 0x43a   : > { %vm4814_vm10 = vmpackc.low %vm3504_vm9, %vm9489_vm0 }
 0x43b   : > { %vm4673_vm12 = vmpackc.low %vm2710_vm2, %vm2706_vm4  ;;  %vm11263_vm4 = vcmp.eq.s32.totalorder %v10859_v4, %v7085_v2 }
 0x43c   : > { %vm4817_vm6 = vmpackc.low %vm3513_vm15, %vm3509_vm8  ;;  %vm11259_vm15 = vcmp.eq.s32.totalorder %v10861_v6, %v11017_v33 }
 0x43d   : > { %vm11257_vm5 = vmpackc.low %vm9474_vm1, %vm9465_vm14  ;;  %4816 = vmatmul.mubr.msk.bf16.gmra.mrb[216].mxu0 %vm4814_vm10, %v7908_v62  ;;  %vm9555_vm14 = vcmp.eq.s32.totalorder %v3055_v28, 1  ;;  %vm11262_vm1 = vnez %v11027_v34  ;;  %v11277_v34 = vld [vmem:[#allocation78_spill] sm:$0xff] }
 0x43e   : > { %4672 = vmatmul.mubr.msk.bf16.gmra.mrb[152].mxu1 %vm11257_vm5, %v8919_v60  ;;  %vm2705_vm0 = vmand %vm11258_vm3, %vm11233_vm13  ;;  %4819 = vmatprep.mubr.msk.bf16.mxu0 %vm4817_vm6, %v7696_v0  ;;  %v11271_v0 = vld [vmem:[#allocation66_spill] sm:$0xff]  ;;  %v11279_v49 = vpack.c.bf16 %v11277_v34, %v11278_v23  ;;  %v11325_v23 = vld [vmem:[#allocation73_spill] sm:$0xff] }
 0x43f   : > { %4675 = vmatprep.mubr.msk.bf16.mxu1 %vm4673_vm12, %v11065_v26  ;;  %vm2709_vm9 = vmand %vm11259_vm15, %vm11233_vm13  ;;  %vm11264_vm12 = vcmp.eq.s32.totalorder %v10861_v6, %v7085_v2  ;;  %vm11265_vm13 = vcmp.eq.s32.totalorder %v10871_v16, %v11001_v51  ;;  %vm11267_vm15 = vcmp.eq.s32.totalorder %v7179_v18, %v11001_v51  ;;  %v11269_v2 = vld [vmem:[#allocation63_spill] sm:$0xff]  ;;  %v11324_v34 = vld [vmem:[#allocation50_spill] sm:$0xff] }
 0x440   : > { %vm3508_vm2 = vmand %vm11263_vm4, %vm11262_vm1  ;;  %vm11268_vm4 = vcmp.eq.s32.totalorder %v7177_v17, %v11001_v51 }
 0x441   : > { %vm3512_vm7 = vmand %vm11264_vm12, %vm11262_vm1 }
 0x442   : > { %vm3063_vm8 = vmand %vm11265_vm13, %vm9555_vm14  ;;  %vm11281_vm13 = vnez %v11280_v32 }
 0x443   : > { %vm3067_vm10 = vmand %vm11266_vm11, %vm9555_vm14 }
 0x444   : > { %vm4676_vm6 = vmpackc.low %vm2709_vm9, %vm2705_vm0  ;;  %vm11270_vm9 = vnez %v11269_v2  ;;  %v11321_v2 = vld [vmem:[#allocation84_spill] sm:$0xff] }
 0x445   : > { %vm4820_vm5 = vmpackc.low %vm3512_vm7, %vm3508_vm2  ;;  %vm11272_vm2 = vnez %v11271_v0  ;;  %v11322_v0 = vld [vmem:[#allocation85_spill] sm:$0xff] }
 0x446   : > { %4678 = vmatmul.mubr.msk.bf16.gmra.mrb[156].mxu1 %vm4676_vm6, %v8919_v60  ;;  %4822 = vmatmul.mubr.msk.bf16.gmra.mrb[220].mxu0 %vm4820_vm5, %v7908_v62  ;;  %vm4727_vm3 = vmpackc.low %vm3067_vm10, %vm3063_vm8  ;;  %v11274_v62 = vld [vmem:[#allocation112_spill] sm:$0xff]  ;;  %vm11282_vm8 = vcmp.eq.s32.totalorder %v7179_v18, %v11017_v33  ;;  %vm11283_vm10 = vcmp.eq.s32.totalorder %v7177_v17, %v11017_v33  ;;  %vm11284_vm5 = vcmp.eq.s32.totalorder %v7246_v3, %v11001_v51 }
 0x447   : > { %4729 = vmatprep.mubr.msk.bf16.mxu1 %vm4727_vm3, %v11065_v26  ;;  %vm3071_vm1 = vmand %vm11267_vm15, %vm9555_vm14  ;;  %v11276_v63 = vpack.c.bf16 %v11274_v62, %v11275_v15  ;;  %vm11288_vm15 = vcmp.eq.s32.totalorder %v7220_v22, %v11001_v51  ;;  %v11323_v62 = vpack.c.bf16 %v11321_v2, %v11322_v0  ;;  %v11352_v2 = vld [vmem:[#allocation64_spill] sm:$0xff]  ;;  %v11354_v0 = vld [vmem:[#allocation67_spill] sm:$0xff] }
 0x448   : > { %vm3075_vm0 = vmand %vm11268_vm4, %vm9555_vm14 }
 0x449   : > { %vm11273_vm12 = vmpackc.low %vm11270_vm9, %vm11272_vm2  ;;  %vm11298_vm9 = vcmp.eq.s32.totalorder %v7246_v3, %v11017_v33 }
 0x44a   : > { %vm4733_vm7 = vmpackc.low %vm3075_vm0, %vm3071_vm1 }
 0x44b   : > { %vm3070_vm11 = vmand %vm11282_vm8, %vm11281_vm13  ;;  %vm11300_vm8 = vcmp.eq.s32.totalorder %v7273_v10, %v11001_v51 }
 0x44c   : > { %vm3074_vm6 = vmand %vm11283_vm10, %vm11281_vm13  ;;  %vm11304_vm10 = vcmp.eq.s32.totalorder %v7263_v9, %v11001_v51 }
 0x44d   : > { %vm3079_vm3 = vmand %vm11284_vm5, %vm9555_vm14  ;;  %v4938_v40 = vpop.f32.mrb[128].mxu0 }
 0x44e   : > { %4732 = vmatmul.mubr.msk.bf16.vlgmr.msra.gmra.mrb[160].mxu1 %vm11273_vm12, %v8919_v60  ;;  %vm3083_vm1 = vmand %vm11288_vm15, %vm9555_vm14  ;;  %vm11299_vm12 = vcmp.eq.s32.totalorder %v7220_v22, %v11017_v33  ;;  %vm11314_vm15 = vcmp.eq.s32.totalorder %v7273_v10, %v11017_v33  ;;  %v4939_v7 = vpop.f32.mrb[129].mxu0 }
 0x44f   : > { %5243 = vmatpush3.bf16.msra.mxu1 %v11276_v63  ;;  %4735 = vmatprep.mubr.msk.bf16.mxu1 %vm4733_vm7, %v11065_v26  ;;  %vm4736_vm4 = vmpackc.low %vm3074_vm6, %vm3070_vm11  ;;  %v9688_v47 = vadd.f32 %v4939_v7, %v4938_v40  ;;  %v4941_v28 = vpop.f32.mrb[130].mxu0 }
 0x450   : > { %5244 = vmatprep.subr.bf16.mxu1 %v11279_v49  ;;  %vm4739_vm0 = vmpackc.low %vm3083_vm1, %vm3079_vm3  ;;  %v4942_v15 = vpop.f32.mrb[131].mxu0  ;;  %v11326_v49 = vpack.c.bf16 %v11324_v34, %v11325_v23 }
 0x451   : > { %vm3078_vm2 = vmand %vm11298_vm9, %vm11281_vm13  ;;  %vm11316_vm9 = vcmp.eq.s32.totalorder %v7291_v24, %v11001_v51  ;;  %v9701_v63 = vadd.f32 %v4942_v15, %v4941_v28 }
 0x452   : > { %vm3082_vm7 = vmand %vm11299_vm12, %vm11281_vm13  ;;  %vm11320_vm12 = vcmp.eq.s32.totalorder %v7283_v48, %v11001_v51 }
 0x453   : > { %5245 = vmatpush3.bf16.msra.mxu1 %v11287_v50  ;;  %vm3087_vm11 = vmand %vm11300_vm8, %vm9555_vm14 }
 0x454   : > { %5246 = vmatprep.subr.bf16.mxu1 %v11291_v1  ;;  %vm3091_vm6 = vmand %vm11304_vm10, %vm9555_vm14  ;;  %vm11328_vm10 = vcmp.eq.s32.totalorder %v7291_v24, %v11017_v33 }
 0x455   : > { %vm4742_vm5 = vmpackc.low %vm3082_vm7, %vm3078_vm2  ;;  %v4944_v58 = vpop.f32.mrb[132].mxu0 }
 0x456   : > { %4738 = vmatmul.mubr.msk.bf16.gmra.mrb[164].mxu1 %vm4736_vm4, %v8919_v60  ;;  %vm4745_vm3 = vmpackc.low %vm3091_vm6, %vm3087_vm11  ;;  %vm11315_vm4 = vcmp.eq.s32.totalorder %v7263_v9, %v11017_v33  ;;  %v4945_v50 = vpop.f32.mrb[133].mxu0 }
 0x457   : > { %5247 = vmatpush3.bf16.msra.mxu1 %v11294_v45  ;;  %4741 = vmatprep.mubr.msk.bf16.mxu1 %vm4739_vm0, %v11065_v26  ;;  %vm3086_vm1 = vmand %vm11314_vm15, %vm11281_vm13  ;;  %vm11330_vm15 = vcmp.eq.s32.totalorder %v10835_v31, %v11001_v51  ;;  %v9726_v42 = vadd.f32 %v4945_v50, %v4944_v58  ;;  %v4947_v1 = vpop.f32.mrb[134].mxu0 }
 0x458   : > { %5248 = vmatprep.subr.bf16.mxu1 %v11297_v25  ;;  %vm3090_vm0 = vmand %vm11315_vm4, %vm11281_vm13  ;;  %vm11334_vm4 = vcmp.eq.s32.totalorder %v10840_v41, %v11001_v51  ;;  %v4948_v46 = vpop.f32.mrb[135].mxu0 }
 0x459   : > { %vm3095_vm2 = vmand %vm11316_vm9, %vm9555_vm14  ;;  %v9736_v35 = vadd.f32 %v4948_v46, %v4947_v1 }
 0x45a   : > { %vm3099_vm7 = vmand %vm11320_vm12, %vm9555_vm14  ;;  %vm11335_vm12 = vcmp.eq.s32.totalorder %v10835_v31, %v11017_v33 }
 0x45b   : > { %5249 = vmatpush3.bf16.msra.mxu1 %v11303_v19  ;;  %vm4748_vm8 = vmpackc.low %vm3090_vm0, %vm3086_vm1 }
 0x45c   : > { %5250 = vmatprep.subr.bf16.mxu1 %v11307_v20  ;;  %vm4751_vm11 = vmpackc.low %vm3099_vm7, %vm3095_vm2 }
 0x45d   : > { %vm3094_vm6 = vmand %vm11328_vm10, %vm11281_vm13  ;;  %v4950_v45 = vpop.f32.mrb[136].mxu0  ;;  %vm11337_vm10 = vcmp.eq.s32.totalorder %v10853_v11, %v11001_v51 }
 0x45e   : > { %4744 = vmatmul.mubr.msk.bf16.gmra.mrb[168].mxu1 %vm4742_vm5, %v8919_v60  ;;  %vm11329_vm5 = vcmp.eq.s32.totalorder %v7283_v48, %v11017_v33  ;;  %vm3103_vm1 = vmand %vm11330_vm15, %vm9555_vm14  ;;  %v4951_v59 = vpop.f32.mrb[137].mxu0 }
 0x45f   : > { %5251 = vmatpush3.bf16.msra.mxu1 %v11310_v27  ;;  %4747 = vmatprep.mubr.msk.bf16.mxu1 %vm4745_vm3, %v11065_v26  ;;  %vm3098_vm3 = vmand %vm11329_vm5, %vm11281_vm13  ;;  %v9755_v57 = vadd.f32 %v4951_v59, %v4950_v45  ;;  %v4953_v25 = vpop.f32.mrb[138].mxu0  ;;  %vm11338_vm5 = vcmp.eq.s32.totalorder %v10855_v5, %v11001_v51 }
 0x460   : > { %5252 = vmatprep.subr.bf16.mxu1 %v11313_v13  ;;  %vm3107_vm0 = vmand %vm11334_vm4, %vm9555_vm14  ;;  %v4954_v37 = vpop.f32.mrb[139].mxu0  ;;  %vm11339_vm4 = vcmp.eq.s32.totalorder %v10853_v11, %v11017_v33 }
 0x461   : > { %vm4754_vm9 = vmpackc.low %vm3098_vm3, %vm3094_vm6  ;;  %v9762_v54 = vadd.f32 %v4954_v37, %v4953_v25 }
 0x462   : > { %vm4757_vm2 = vmpackc.low %vm3107_vm0, %vm3103_vm1 }
 0x463   : > { %5253 = vmatpush3.bf16.msra.mxu1 %v11319_v29  ;;  %vm3102_vm7 = vmand %vm11335_vm12, %vm11281_vm13  ;;  %vm11341_vm12 = vcmp.eq.s32.totalorder %v10859_v4, %v11001_v51 }
 0x464   : > { %5254 = vmatprep.subr.bf16.mxu1 %v11323_v62  ;;  %vm3111_vm6 = vmand %vm11337_vm10, %vm9555_vm14  ;;  %v11357_v62 = vld [vmem:[#allocation62_spill] sm:$0xff] }
 0x465   : > { %vm3115_vm3 = vmand %vm11338_vm5, %vm9555_vm14  ;;  %v4956_v19 = vpop.f32.mrb[140].mxu0  ;;  %vm9794_vm5 = vcmp.eq.s32.totalorder %v3447_v8, 1 }
 0x466   : > { %4750 = vmatmul.mubr.msk.bf16.gmra.mrb[172].mxu1 %vm4748_vm8, %v8919_v60  ;;  %vm11336_vm8 = vcmp.eq.s32.totalorder %v10840_v41, %v11017_v33  ;;  %vm4763_vm1 = vmpackc.low %vm3115_vm3, %vm3111_vm6  ;;  %v4957_v30 = vpop.f32.mrb[141].mxu0 }
 0x467   : > { %5255 = vmatpush3.bf16.msra.mxu1 %v11326_v49  ;;  %4753 = vmatprep.mubr.msk.bf16.mxu1 %vm4751_vm11, %v11065_v26  ;;  %vm3106_vm11 = vmand %vm11336_vm8, %vm11281_vm13  ;;  %v9781_v36 = vadd.f32 %v4957_v30, %v4956_v19  ;;  %v4959_v20 = vpop.f32.mrb[142].mxu0  ;;  %vm11342_vm8 = vcmp.eq.s32.totalorder %v10861_v6, %v11001_v51 }
 0x468   : > { %5256 = vmatprep.subr.bf16.mxu1 %v11327_v61  ;;  %vm4760_vm15 = vmpackc.low %vm3106_vm11, %vm3102_vm7  ;;  %v4960_v27 = vpop.f32.mrb[143].mxu0 }
 0x469   : > { %vm3110_vm0 = vmand %vm11339_vm4, %vm11281_vm13  ;;  %v9790_v56 = vadd.f32 %v4960_v27, %v4959_v20  ;;  %vm11348_vm4 = vcmp.eq.s32.totalorder %v10871_v16, %v11001_v51 }
 0x46a   : > { %vm3119_vm7 = vmand %vm11341_vm12, %vm9555_vm14 }
 0x46b   : > { %5257 = vmatpush3.bf16.msra.mxu1 %v11333_v14  ;;  %vm3123_vm11 = vmand %vm11342_vm8, %vm9555_vm14  ;;  %vm11346_vm14 = vcmp.eq.s32.totalorder %v10859_v4, %v11017_v33 }
 0x46c   : > { %vm4769_vm6 = vmpackc.low %vm3123_vm11, %vm3119_vm7  ;;  %vm11350_vm7 = vcmp.eq.s32.totalorder %v7179_v18, %v11001_v51  ;;  %vm11351_vm11 = vcmp.eq.s32.totalorder %v7177_v17, %v11001_v51 }
 0x46d   : > { %vm3118_vm3 = vmand %vm11346_vm14, %vm11281_vm13  ;;  %v4962_v55 = vpop.f32.mrb[144].mxu0  ;;  %vm11355_vm14 = vnez %v11354_v0 }
 0x46e   : > { %4756 = vmatmul.mubr.msk.bf16.gmra.mrb[176].mxu1 %vm4754_vm9, %v8919_v60  ;;  %vm11340_vm9 = vcmp.eq.s32.totalorder %v10855_v5, %v11017_v33  ;;  %v4963_v44 = vpop.f32.mrb[145].mxu0  ;;  %vm3463_vm8 = vmand %vm11350_vm7, %vm9794_vm5  ;;  %vm11362_vm7 = vcmp.eq.s32.totalorder %v7220_v22, %v11001_v51 }
 0x46f   : > { %4759 = vmatprep.mubr.msk.bf16.mxu1 %vm4757_vm2, %v11065_v26  ;;  %vm3114_vm2 = vmand %vm11340_vm9, %vm11281_vm13  ;;  %v9813_v13 = vadd.f32 %v4963_v44, %v4962_v55  ;;  %v4965_v40 = vpop.f32.mrb[146].mxu0  ;;  %vm11349_vm9 = vcmp.eq.s32.totalorder %v10873_v12, %v11001_v51 }
 0x470   : > { %vm4766_vm10 = vmpackc.low %vm3114_vm2, %vm3110_vm0  ;;  %v4966_v32 = vpop.f32.mrb[147].mxu0 }
 0x471   : > { %vm3455_vm0 = vmand %vm11348_vm4, %vm9794_vm5  ;;  %v9820_v7 = vadd.f32 %v4966_v32, %v4965_v40  ;;  %vm11359_vm4 = vcmp.eq.s32.totalorder %v7179_v18, %v11017_v33 }
 0x472   : > { %vm3459_vm2 = vmand %vm11349_vm9, %vm9794_vm5  ;;  %vm11360_vm9 = vcmp.eq.s32.totalorder %v7177_v17, %v11017_v33 }
 0x473   : > { %vm4823_vm12 = vmpackc.low %vm3459_vm2, %vm3455_vm0 }
 0x475   : > { %v4968_v16 = vpop.f32.mrb[148].mxu0 }
 0x476   : > { %4762 = vmatmul.mubr.msk.bf16.gmra.mrb[180].mxu1 %vm4760_vm15, %v8919_v60  ;;  %vm11347_vm15 = vcmp.eq.s32.totalorder %v10861_v6, %v11017_v33  ;;  %v4969_v43 = vpop.f32.mrb[149].mxu0 }
 0x477   : > { %4765 = vmatprep.mubr.msk.bf16.mxu1 %vm4763_vm1, %v11065_v26  ;;  %vm3122_vm1 = vmand %vm11347_vm15, %vm11281_vm13  ;;  %v9829_v53 = vadd.f32 %v4969_v43, %v4968_v16  ;;  %v4971_v12 = vpop.f32.mrb[150].mxu0 }
 0x478   : > { %vm4772_vm13 = vmpackc.low %vm3122_vm1, %vm3118_vm3  ;;  %v4972_v29 = vpop.f32.mrb[151].mxu0  ;;  %vm11358_vm1 = vnez %v11357_v62 }
 0x479   : > { %v9836_v28 = vadd.f32 %v4972_v29, %v4971_v12  ;;  %vm3462_vm0 = vmand %vm11359_vm4, %vm11358_vm1  ;;  %vm11365_vm4 = vcmp.eq.s32.totalorder %v7273_v10, %v11001_v51 }
 0x47a   : > { %vm3466_vm2 = vmand %vm11360_vm9, %vm11358_vm1  ;;  %vm11366_vm9 = vcmp.eq.s32.totalorder %v7263_v9, %v11001_v51 }
 0x47d   : > { %v4974_v15 = vpop.f32.mrb[152].mxu0 }
 0x47e   : > { %4768 = vmatmul.mubr.msk.bf16.gmra.mrb[184].mxu1 %vm4766_vm10, %v8919_v60  ;;  %vm3467_vm10 = vmand %vm11351_vm11, %vm9794_vm5  ;;  %v4975_v34 = vpop.f32.mrb[153].mxu0 }
 0x47f   : > { %4771 = vmatprep.mubr.msk.bf16.mxu1 %vm4769_vm6, %v11065_v26  ;;  %vm11353_vm6 = vnez %v11352_v2  ;;  %vm4829_vm15 = vmpackc.low %vm3467_vm10, %vm3463_vm8  ;;  %v9860_v23 = vadd.f32 %v4975_v34, %v4974_v15  ;;  %v4977_v49 = vpop.f32.mrb[154].mxu0 }
 0x480   : > { %vm11356_vm3 = vmpackc.low %vm11353_vm6, %vm11355_vm14  ;;  %v4978_v18 = vpop.f32.mrb[155].mxu0  ;;  %vm11363_vm6 = vcmp.eq.s32.totalorder %v7246_v3, %v11017_v33 }
 0x481   : > { %vm3475_vm8 = vmand %vm11362_vm7, %vm9794_vm5  ;;  %v9867_v61 = vadd.f32 %v4978_v18, %v4977_v49  ;;  %vm11367_vm7 = vcmp.eq.s32.totalorder %v7273_v10, %v11017_v33 }
 0x482   : > { %vm4832_vm11 = vmpackc.low %vm3466_vm2, %vm3462_vm0 }
 0x483   : > { %vm3470_vm14 = vmand %vm11363_vm6, %vm11358_vm1  ;;  %vm11369_vm6 = vcmp.eq.s32.totalorder %v7291_v24, %v11001_v51 }
 0x484   : > { %vm3479_vm0 = vmand %vm11365_vm4, %vm9794_vm5 }
 0x485   : > { %v4980_v17 = vpop.f32.mrb[156].mxu0  ;;  %vm3483_vm2 = vmand %vm11366_vm9, %vm9794_vm5  ;;  %vm11371_vm9 = vcmp.eq.s32.totalorder %v7291_v24, %v11017_v33 }
 0x486   : > { %4774 = vmatmul.mubr.msk.bf16.gmra.mrb[188].mxu1 %vm4772_vm13, %v8919_v60  ;;  %vm11361_vm13 = vcmp.eq.s32.totalorder %v7246_v3, %v11001_v51  ;;  %v4981_v58 = vpop.f32.mrb[157].mxu0 }
 0x487   : > { %4825 = vmatprep.mubr.msk.bf16.mxu1 %vm4823_vm12, %v11065_v26  ;;  %vm3471_vm12 = vmand %vm11361_vm13, %vm9794_vm5  ;;  %v9886_v50 = vadd.f32 %v4981_v58, %v4980_v17  ;;  %v4983_v39 = vpop.f32.mrb[158].mxu0 }
 0x488   : > { %vm4835_vm10 = vmpackc.low %vm3475_vm8, %vm3471_vm12  ;;  %v4984_v3 = vpop.f32.mrb[159].mxu0 }
 0x489   : > { %v9893_v52 = vadd.f32 %v4984_v3, %v4983_v39  ;;  %vm4841_vm12 = vmpackc.low %vm3483_vm2, %vm3479_vm0 }
 0x48a   : > { %vm3478_vm8 = vmand %vm11367_vm7, %vm11358_vm1  ;;  %vm11373_vm7 = vcmp.eq.s32.totalorder %v10835_v31, %v11001_v51 }
 0x48b   : > { %vm3486_vm2 = vmand %vm11371_vm9, %vm11358_vm1  ;;  %vm11377_vm9 = vcmp.eq.s32.totalorder %v10853_v11, %v11001_v51 }
 0x48e   : > { %4828 = vmatmul.mubr.msk.bf16.vlgmr.msra.gmra.mrb[192].mxu1 %vm11356_vm3, %v8919_v60  ;;  %vm11364_vm3 = vcmp.eq.s32.totalorder %v7220_v22, %v11017_v33  ;;  %v5066_v22 = vpop.f32.mrb[160].mxu0 }
 0x48f   : > { %4831 = vmatprep.mubr.msk.bf16.mxu1 %vm4829_vm15, %v11065_v26  ;;  %vm3474_vm15 = vmand %vm11364_vm3, %vm11358_vm1  ;;  %v5067_v14 = vpop.f32.mrb[161].mxu0  ;;  %vm11370_vm3 = vcmp.eq.s32.totalorder %v7283_v48, %v11001_v51 }
 0x490   : > { %vm4838_vm13 = vmpackc.low %vm3474_vm15, %vm3470_vm14  ;;  %v9912_v1 = vadd.f32 %v5067_v14, %v5066_v22  ;;  %v5069_v46 = vpop.f32.mrb[162].mxu0 }
 0x491   : > { %vm3487_vm14 = vmand %vm11369_vm6, %vm9794_vm5  ;;  %v5070_v10 = vpop.f32.mrb[163].mxu0 }
 0x492   : > { %vm3491_vm15 = vmand %vm11370_vm3, %vm9794_vm5  ;;  %v9919_v45 = vadd.f32 %v5070_v10, %v5069_v46  ;;  %vm11375_vm3 = vcmp.eq.s32.totalorder %v10835_v31, %v11017_v33 }
 0x493   : > { %vm4847_vm0 = vmpackc.low %vm3491_vm15, %vm3487_vm14 }
 0x494   : > { %vm3494_vm15 = vmand %vm11375_vm3, %vm11358_vm1  ;;  %vm11381_vm3 = vcmp.eq.s32.totalorder %v10859_v4, %v11001_v51 }
 0x496   : > { %4834 = vmatmul.mubr.msk.bf16.gmra.mrb[196].mxu1 %vm4832_vm11, %v8919_v60  ;;  %vm11368_vm11 = vcmp.eq.s32.totalorder %v7263_v9, %v11017_v33  ;;  %v5072_v9 = vpop.f32.mrb[164].mxu0 }
 0x497   : > { %4837 = vmatprep.mubr.msk.bf16.mxu1 %vm4835_vm10, %v11065_v26  ;;  %vm3482_vm10 = vmand %vm11368_vm11, %vm11358_vm1  ;;  %v5073_v59 = vpop.f32.mrb[165].mxu0  ;;  %vm11374_vm11 = vcmp.eq.s32.totalorder %v10840_v41, %v11001_v51 }
 0x498   : > { %vm4844_vm4 = vmpackc.low %vm3482_vm10, %vm3478_vm8  ;;  %v9938_v25 = vadd.f32 %v5073_v59, %v5072_v9  ;;  %v5075_v37 = vpop.f32.mrb[166].mxu0 }
 0x499   : > { %vm3495_vm8 = vmand %vm11373_vm7, %vm9794_vm5  ;;  %v5076_v24 = vpop.f32.mrb[167].mxu0 }
 0x49a   : > { %vm3499_vm10 = vmand %vm11374_vm11, %vm9794_vm5  ;;  %v9945_v19 = vadd.f32 %v5076_v24, %v5075_v37  ;;  %vm11379_vm11 = vcmp.eq.s32.totalorder %v10853_v11, %v11017_v33 }
 0x49b   : > { %vm4853_vm14 = vmpackc.low %vm3499_vm10, %vm3495_vm8 }
 0x49c   : > { %vm3502_vm10 = vmand %vm11379_vm11, %vm11358_vm1 }
 0x49e   : > { %4840 = vmatmul.mubr.msk.bf16.gmra.mrb[200].mxu1 %vm4838_vm13, %v8919_v60  ;;  %vm11372_vm13 = vcmp.eq.s32.totalorder %v7283_v48, %v11017_v33  ;;  %v5078_v48 = vpop.f32.mrb[168].mxu0 }
 0x49f   : > { %4843 = vmatprep.mubr.msk.bf16.mxu1 %vm4841_vm12, %v11065_v26  ;;  %vm3490_vm12 = vmand %vm11372_vm13, %vm11358_vm1  ;;  %v5079_v30 = vpop.f32.mrb[169].mxu0  ;;  %vm11378_vm13 = vcmp.eq.s32.totalorder %v10855_v5, %v11001_v51 }
 0x4a0   : > { %vm4850_vm6 = vmpackc.low %vm3490_vm12, %vm3486_vm2  ;;  %v9964_v20 = vadd.f32 %v5079_v30, %v5078_v48  ;;  %v5081_v38 = vpop.f32.mrb[170].mxu0 }
 0x4a1   : > { %vm3503_vm2 = vmand %vm11377_vm9, %vm9794_vm5  ;;  %v5082_v31 = vpop.f32.mrb[171].mxu0 }
 0x4a2   : > { %vm3507_vm12 = vmand %vm11378_vm13, %vm9794_vm5  ;;  %v9971_v8 = vadd.f32 %v5082_v31, %v5081_v38  ;;  %vm11383_vm13 = vcmp.eq.s32.totalorder %v10859_v4, %v11017_v33 }
 0x4a3   : > { %vm4859_vm8 = vmpackc.low %vm3507_vm12, %vm3503_vm2 }
 0x4a4   : > { %vm3510_vm12 = vmand %vm11383_vm13, %vm11358_vm1 }
 0x4a6   : > { %4846 = vmatmul.mubr.msk.bf16.gmra.mrb[204].mxu1 %vm4844_vm4, %v8919_v60  ;;  %vm11376_vm4 = vcmp.eq.s32.totalorder %v10840_v41, %v11017_v33  ;;  %v5084_v41 = vpop.f32.mrb[172].mxu0 }
 0x4a7   : > { %4849 = vmatprep.mubr.msk.bf16.mxu1 %vm4847_vm0, %v11065_v26  ;;  %vm3498_vm0 = vmand %vm11376_vm4, %vm11358_vm1  ;;  %v5085_v27 = vpop.f32.mrb[173].mxu0  ;;  %vm11382_vm4 = vcmp.eq.s32.totalorder %v10861_v6, %v11001_v51 }
 0x4a8   : > { %vm4856_vm7 = vmpackc.low %vm3498_vm0, %vm3494_vm15  ;;  %v9990_v55 = vadd.f32 %v5085_v27, %v5084_v41  ;;  %v5087_v44 = vpop.f32.mrb[174].mxu0 }
 0x4a9   : > { %vm3511_vm15 = vmand %vm11381_vm3, %vm9794_vm5  ;;  %v5088_v11 = vpop.f32.mrb[175].mxu0 }
 0x4aa   : > { %vm3515_vm0 = vmand %vm11382_vm4, %vm9794_vm5  ;;  %v9997_v40 = vadd.f32 %v5088_v11, %v5087_v44  ;;  %vm11384_vm5 = vcmp.eq.s32.totalorder %v10861_v6, %v11017_v33 }
 0x4ab   : > { %vm4865_vm2 = vmpackc.low %vm3515_vm0, %vm3511_vm15 }
 0x4ae   : > { %4852 = vmatmul.mubr.msk.bf16.gmra.mrb[208].mxu1 %vm4850_vm6, %v8919_v60  ;;  %vm11380_vm6 = vcmp.eq.s32.totalorder %v10855_v5, %v11017_v33  ;;  %v5090_v5 = vpop.f32.mrb[176].mxu0 }
 0x4af   : > { %4855 = vmatprep.mubr.msk.bf16.mxu1 %vm4853_vm14, %v11065_v26  ;;  %vm3506_vm14 = vmand %vm11380_vm6, %vm11358_vm1  ;;  %v5091_v21 = vpop.f32.mrb[177].mxu0 }
 0x4b0   : > { %vm4862_vm9 = vmpackc.low %vm3506_vm14, %vm3502_vm10  ;;  %v10011_v51 = vadd.f32 %v5091_v21, %v5090_v5  ;;  %v5093_v32 = vpop.f32.mrb[178].mxu0 }
 0x4b1   : > { %v5094_v16 = vpop.f32.mrb[179].mxu0 }
 0x4b2   : > { %v10013_v43 = vadd.f32 %v5094_v16, %v5093_v32 }
 0x4b6   : > { %4858 = vmatmul.mubr.msk.bf16.gmra.mrb[212].mxu1 %vm4856_vm7, %v8919_v60  ;;  %vm3514_vm7 = vmand %vm11384_vm5, %vm11358_vm1 }
 0x4b7   : > { %4861 = vmatprep.mubr.msk.bf16.mxu1 %vm4859_vm8, %v11065_v26  ;;  %vm4868_vm8 = vmpackc.low %vm3514_vm7, %vm3510_vm12 }
 0x4be   : > { %4864 = vmatmul.mubr.msk.bf16.gmra.mrb[216].mxu1 %vm4862_vm9, %v8919_v60 }
 0x4bf   : > { %4867 = vmatprep.mubr.msk.bf16.mxu1 %vm4865_vm2, %v11065_v26  ;;  %v5096_v26 = vpop.f32.mrb[180].mxu0 }
 0x4c0   : > { %v5097_v12 = vpop.f32.mrb[181].mxu0 }
 0x4c1   : > { %v10016_v4 = vadd.f32 %v5097_v12, %v5096_v26  ;;  %v5099_v29 = vpop.f32.mrb[182].mxu0 }
 0x4c2   : > { %v5100_v2 = vpop.f32.mrb[183].mxu0 }
 0x4c3   : > { %v10018_v0 = vadd.f32 %v5100_v2, %v5099_v29  ;;  %v5102_v62 = vpop.f32.mrb[184].mxu0 }
 0x4c4   : > { %v5103_v6 = vpop.f32.mrb[185].mxu0 }
 0x4c5   : > { %v10020_v33 = vadd.f32 %v5103_v6, %v5102_v62  ;;  %v5105_v15 = vpop.f32.mrb[186].mxu0 }
 0x4c6   : > { %4870 = vmatmul.mubr.msk.bf16.gmra.mrb[220].mxu1 %vm4868_vm8, %v8919_v60  ;;  %v5106_v34 = vpop.f32.mrb[187].mxu0 }
 0x4c7   : > { %v10022_v49 = vadd.f32 %v5106_v34, %v5105_v15  ;;  %v5108_v18 = vpop.f32.mrb[188].mxu0 }
 0x4c8   : > { %v5109_v17 = vpop.f32.mrb[189].mxu0 }
 0x4c9   : > { %v10024_v58 = vadd.f32 %v5109_v17, %v5108_v18  ;;  %v5111_v60 = vpop.f32.mrb[190].mxu0 }
 0x4ca   : > { %v5112_v39 = vpop.f32.mrb[191].mxu0 }
 0x4cb   : > { %v10026_v3 = vadd.f32 %v5112_v39, %v5111_v60 }
 0x4cf   : > { %v5002_v22 = vpop.f32.mrb[128].mxu1 }
 0x4d0   : > { %v5194_v14 = vpop.f32.mrb[192].mxu0  ;;  %v5003_v46 = vpop.f32.mrb[129].mxu1 }
 0x4d1   : > { %v5195_v10 = vpop.f32.mrb[193].mxu0  ;;  %v5004_v9 = vadd.f32 %v5003_v46, %v5002_v22  ;;  %v5005_v37 = vpop.f32.mrb[130].mxu1 }
 0x4d2   : > { %v10028_v59 = vadd.f32 %v5195_v10, %v5194_v14  ;;  %v5197_v24 = vpop.f32.mrb[194].mxu0  ;;  %v5006_v48 = vpop.f32.mrb[131].mxu1 }
 0x4d3   : > { %v5198_v30 = vpop.f32.mrb[195].mxu0  ;;  %v10031_v38 = vadd.f32 %v5004_v9, %v9688_v47  ;;  %v5007_v31 = vadd.f32 %v5006_v48, %v5005_v37 }
 0x4d4   : > { %v10033_v41 = vadd.f32 %v5198_v30, %v5197_v24 }
 0x4d5   : > { %v10036_v27 = vadd.f32 %v5007_v31, %v9701_v63 }
 0x4db   : > { %v5008_v44 = vpop.f32.mrb[132].mxu1 }
 0x4dc   : > { %v5200_v11 = vpop.f32.mrb[196].mxu0  ;;  %v5009_v5 = vpop.f32.mrb[133].mxu1 }
 0x4dd   : > { %v5201_v21 = vpop.f32.mrb[197].mxu0  ;;  %v5010_v32 = vadd.f32 %v5009_v5, %v5008_v44  ;;  %v5011_v26 = vpop.f32.mrb[134].mxu1 }
 0x4de   : > { %v10038_v16 = vadd.f32 %v5201_v21, %v5200_v11  ;;  %v5203_v12 = vpop.f32.mrb[198].mxu0  ;;  %v5012_v29 = vpop.f32.mrb[135].mxu1 }
 0x4df   : > { %v5204_v2 = vpop.f32.mrb[199].mxu0  ;;  %v10041_v47 = vadd.f32 %v5010_v32, %v9726_v42  ;;  %v5013_v62 = vadd.f32 %v5012_v29, %v5011_v26 }
 0x4e0   : > { %v10043_v6 = vadd.f32 %v5204_v2, %v5203_v12 }
 0x4e1   : > { %v10046_v63 = vadd.f32 %v5013_v62, %v9736_v35 }
 0x4e6   : > { %v5014_v15 = vpop.f32.mrb[136].mxu1 }
 0x4e7   : > { %v5206_v34 = vpop.f32.mrb[200].mxu0  ;;  %v5015_v18 = vpop.f32.mrb[137].mxu1 }
 0x4e8   : > { %v5207_v17 = vpop.f32.mrb[201].mxu0  ;;  %v5016_v60 = vadd.f32 %v5015_v18, %v5014_v15  ;;  %v5017_v22 = vpop.f32.mrb[138].mxu1 }
 0x4e9   : > { %v10048_v39 = vadd.f32 %v5207_v17, %v5206_v34  ;;  %v5209_v14 = vpop.f32.mrb[202].mxu0  ;;  %v5018_v46 = vpop.f32.mrb[139].mxu1 }
 0x4ea   : > { %v5210_v10 = vpop.f32.mrb[203].mxu0  ;;  %v10051_v42 = vadd.f32 %v5016_v60, %v9755_v57  ;;  %v5019_v9 = vadd.f32 %v5018_v46, %v5017_v22 }
 0x4eb   : > { %v10053_v37 = vadd.f32 %v5210_v10, %v5209_v14 }
 0x4ec   : > { %v10056_v35 = vadd.f32 %v5019_v9, %v9762_v54 }
 0x4f1   : > { %v5020_v24 = vpop.f32.mrb[140].mxu1 }
 0x4f2   : > { %v5212_v48 = vpop.f32.mrb[204].mxu0  ;;  %v5021_v30 = vpop.f32.mrb[141].mxu1 }
 0x4f3   : > { %v5213_v31 = vpop.f32.mrb[205].mxu0  ;;  %v5022_v44 = vadd.f32 %v5021_v30, %v5020_v24  ;;  %v5023_v5 = vpop.f32.mrb[142].mxu1 }
 0x4f4   : > { %v10058_v11 = vadd.f32 %v5213_v31, %v5212_v48  ;;  %v5215_v21 = vpop.f32.mrb[206].mxu0  ;;  %v5024_v32 = vpop.f32.mrb[143].mxu1 }
 0x4f5   : > { %v5216_v26 = vpop.f32.mrb[207].mxu0  ;;  %v10061_v57 = vadd.f32 %v5022_v44, %v9781_v36  ;;  %v5025_v12 = vadd.f32 %v5024_v32, %v5023_v5 }
 0x4f6   : > { %v10063_v29 = vadd.f32 %v5216_v26, %v5215_v21 }
 0x4f7   : > { %v10066_v54 = vadd.f32 %v5025_v12, %v9790_v56 }
 0x4fd   : > { %v5026_v2 = vpop.f32.mrb[144].mxu1 }
 0x4fe   : > { %v5218_v62 = vpop.f32.mrb[208].mxu0  ;;  %v5027_v15 = vpop.f32.mrb[145].mxu1 }
 0x4ff   : > { %v5219_v34 = vpop.f32.mrb[209].mxu0  ;;  %v5028_v18 = vadd.f32 %v5027_v15, %v5026_v2  ;;  %v5029_v60 = vpop.f32.mrb[146].mxu1 }
 0x500   : > { %v10068_v17 = vadd.f32 %v5219_v34, %v5218_v62  ;;  %v5221_v22 = vpop.f32.mrb[210].mxu0  ;;  %v5030_v14 = vpop.f32.mrb[147].mxu1 }
 0x501   : > { %v5222_v46 = vpop.f32.mrb[211].mxu0  ;;  %v10071_v36 = vadd.f32 %v5028_v18, %v9813_v13  ;;  %v5031_v10 = vadd.f32 %v5030_v14, %v5029_v60 }
 0x502   : > { %v10073_v9 = vadd.f32 %v5222_v46, %v5221_v22 }
 0x503   : > { %v10076_v56 = vadd.f32 %v5031_v10, %v9820_v7 }
 0x507   : > { %v5032_v24 = vpop.f32.mrb[148].mxu1 }
 0x508   : > { %v5224_v48 = vpop.f32.mrb[212].mxu0  ;;  %v5033_v30 = vpop.f32.mrb[149].mxu1 }
 0x509   : > { %v5225_v31 = vpop.f32.mrb[213].mxu0  ;;  %v5034_v44 = vadd.f32 %v5033_v30, %v5032_v24  ;;  %v5035_v21 = vpop.f32.mrb[150].mxu1 }
 0x50a   : > { %v10078_v5 = vadd.f32 %v5225_v31, %v5224_v48  ;;  %v5227_v32 = vpop.f32.mrb[214].mxu0  ;;  %v5036_v26 = vpop.f32.mrb[151].mxu1 }
 0x50b   : > { %v5228_v12 = vpop.f32.mrb[215].mxu0  ;;  %v10081_v13 = vadd.f32 %v5034_v44, %v9829_v53  ;;  %v5037_v2 = vadd.f32 %v5036_v26, %v5035_v21 }
 0x50c   : > { %v10083_v62 = vadd.f32 %v5228_v12, %v5227_v32 }
 0x50d   : > { %v10086_v7 = vadd.f32 %v5037_v2, %v9836_v28 }
 0x510   : > { %v5230_v34 = vpop.f32.mrb[216].mxu0 }
 0x511   : > { %v5038_v15 = vpop.f32.mrb[152].mxu1  ;;  %v5231_v60 = vpop.f32.mrb[217].mxu0 }
 0x512   : > { %v5039_v18 = vpop.f32.mrb[153].mxu1  ;;  %v10088_v14 = vadd.f32 %v5231_v60, %v5230_v34  ;;  %v5233_v10 = vpop.f32.mrb[218].mxu0 }
 0x513   : > { %v5040_v22 = vadd.f32 %v5039_v18, %v5038_v15  ;;  %v5041_v46 = vpop.f32.mrb[154].mxu1  ;;  %v5234_v48 = vpop.f32.mrb[219].mxu0 }
 0x514   : > { %v5042_v24 = vpop.f32.mrb[155].mxu1  ;;  %v10093_v31 = vadd.f32 %v5234_v48, %v5233_v10 }
 0x515   : > { %v10091_v53 = vadd.f32 %v5040_v22, %v9860_v23  ;;  %v5043_v30 = vadd.f32 %v5042_v24, %v5041_v46  ;;  %v2609_v24 = vld [vmem:[#allocation2] sm:$0xff] }
 0x516   : > { %11385 = vst [vmem:[#allocation109_spill] sm:$0xff] %v10093_v31 }
 0x517   : > { %v10096_v28 = vadd.f32 %v5043_v30, %v9867_v61 }
 0x519   : > { %v5044_v44 = vpop.f32.mrb[156].mxu1  ;;  %v5236_v21 = vpop.f32.mrb[220].mxu0 }
 0x51a   : > { %v5045_v32 = vpop.f32.mrb[157].mxu1  ;;  %v5237_v26 = vpop.f32.mrb[221].mxu0 }
 0x51b   : > { %v5046_v12 = vadd.f32 %v5045_v32, %v5044_v44  ;;  %v10098_v2 = vadd.f32 %v5237_v26, %v5236_v21  ;;  %v5047_v15 = vpop.f32.mrb[158].mxu1  ;;  %v5239_v34 = vpop.f32.mrb[222].mxu0  ;;  %v2610_v21 = vld [vmem:[#allocation2 + $0x8] sm:$0xff]  ;;  %v3022_v26 = vadd.f32 %v10031_v38, %v2609_v24 }
 0x51c   : > { %v5048_v18 = vpop.f32.mrb[159].mxu1  ;;  %v5240_v60 = vpop.f32.mrb[223].mxu0 }
 0x51d   : > { %11386 = vst [vmem:[#allocation108_spill] sm:$0xff] %v10098_v2  ;;  %v10101_v23 = vadd.f32 %v5046_v12, %v9886_v50  ;;  %v5049_v22 = vadd.f32 %v5048_v18, %v5047_v15  ;;  %v10103_v46 = vadd.f32 %v5240_v60, %v5239_v34  ;;  %v3023_v50 = vadd.f32 %v10036_v27, %v2610_v21  ;;  %v2611_v18 = vld [vmem:[#allocation2 + $0x10] sm:$0xff] }
 0x51e   : > { %v3024_v38 = vadd.f32 %v10041_v47, %v2611_v18 }
 0x51f   : > { %11387 = vst [vmem:[#allocation87_spill] sm:$0xff] %v10103_v46  ;;  %v10106_v61 = vadd.f32 %v5049_v22, %v9893_v52 }
 0x521   : > { %v5130_v10 = vpop.f32.mrb[160].mxu1 }
 0x522   : > { %v5131_v48 = vpop.f32.mrb[161].mxu1 }
 0x523   : > { %v5132_v30 = vadd.f32 %v5131_v48, %v5130_v10  ;;  %v5133_v44 = vpop.f32.mrb[162].mxu1  ;;  %v2612_v48 = vld [vmem:[#allocation2 + $0x18] sm:$0xff] }
 0x524   : > { %v5134_v32 = vpop.f32.mrb[163].mxu1  ;;  %v3025_v27 = vadd.f32 %v10046_v63, %v2612_v48 }
 0x525   : > { %v3352_v2 = vadd.f32 %v5132_v30, %v9912_v1  ;;  %v5135_v31 = vadd.f32 %v5134_v32, %v5133_v44  ;;  %v2613_v44 = vld [vmem:[#allocation2 + $0x20] sm:$0xff] }
 0x526   : > { %v3026_v47 = vadd.f32 %v10051_v42, %v2613_v44 }
 0x527   : > { %v10111_v12 = vadd.f32 %v3352_v2, %v3022_v26  ;;  %v3355_v15 = vadd.f32 %v5135_v31, %v9919_v45 }
 0x529   : > { %v10114_v52 = vadd.f32 %v3355_v15, %v3023_v50  ;;  %v5136_v34 = vpop.f32.mrb[164].mxu1  ;;  %v2614_v50 = vld [vmem:[#allocation2 + $0x28] sm:$0xff] }
 0x52a   : > { %v5137_v60 = vpop.f32.mrb[165].mxu1  ;;  %v3027_v63 = vadd.f32 %v10056_v35, %v2614_v50 }
 0x52b   : > { %v5138_v22 = vadd.f32 %v5137_v60, %v5136_v34  ;;  %v5139_v10 = vpop.f32.mrb[166].mxu1 }
 0x52c   : > { %v5140_v46 = vpop.f32.mrb[167].mxu1 }
 0x52d   : > { %v3360_v1 = vadd.f32 %v5138_v22, %v9938_v25  ;;  %v5141_v24 = vadd.f32 %v5140_v46, %v5139_v10  ;;  %v2615_v22 = vld [vmem:[#allocation2 + $0x30] sm:$0xff] }
 0x52e   : > { %v3028_v42 = vadd.f32 %v10061_v57, %v2615_v22 }
 0x52f   : > { %v10119_v2 = vadd.f32 %v3360_v1, %v3024_v38  ;;  %v3363_v45 = vadd.f32 %v5141_v24, %v9945_v19  ;;  %v2616_v1 = vld [vmem:[#allocation2 + $0x38] sm:$0xff] }
 0x530   : > { %v3029_v35 = vadd.f32 %v10066_v54, %v2616_v1 }
 0x531   : > { %v10122_v31 = vadd.f32 %v3363_v45, %v3025_v27  ;;  %v5142_v30 = vpop.f32.mrb[168].mxu1 }
 0x532   : > { %v5143_v21 = vpop.f32.mrb[169].mxu1 }
 0x533   : > { %v5144_v32 = vadd.f32 %v5143_v21, %v5142_v30  ;;  %v5145_v26 = vpop.f32.mrb[170].mxu1  ;;  %v2617_v21 = vld [vmem:[#allocation2 + $0x40] sm:$0xff] }
 0x534   : > { %v5146_v15 = vpop.f32.mrb[171].mxu1  ;;  %v3030_v57 = vadd.f32 %v10071_v36, %v2617_v21 }
 0x535   : > { %v3368_v25 = vadd.f32 %v5144_v32, %v9964_v20  ;;  %v5147_v46 = vadd.f32 %v5146_v15, %v5145_v26  ;;  %v2618_v15 = vld [vmem:[#allocation2 + $0x48] sm:$0xff] }
 0x536   : > { %v3031_v54 = vadd.f32 %v10076_v56, %v2618_v15 }
 0x537   : > { %v10127_v34 = vadd.f32 %v3368_v25, %v3026_v47  ;;  %v3371_v19 = vadd.f32 %v5147_v46, %v9971_v8 }
 0x539   : > { %v10130_v18 = vadd.f32 %v3371_v19, %v3027_v63  ;;  %v5148_v60 = vpop.f32.mrb[172].mxu1 }
 0x53a   : > { %v5149_v10 = vpop.f32.mrb[173].mxu1 }
 0x53b   : > { %v5150_v48 = vadd.f32 %v5149_v10, %v5148_v60  ;;  %v5151_v38 = vpop.f32.mrb[174].mxu1  ;;  %v2619_v60 = vld [vmem:[#allocation2 + $0x50] sm:$0xff] }
 0x53c   : > { %v5152_v24 = vpop.f32.mrb[175].mxu1  ;;  %v3032_v36 = vadd.f32 %v10081_v13, %v2619_v60 }
 0x53d   : > { %v3376_v20 = vadd.f32 %v5150_v48, %v9990_v55  ;;  %v5153_v27 = vadd.f32 %v5152_v24, %v5151_v38  ;;  %v2620_v38 = vld [vmem:[#allocation2 + $0x58] sm:$0xff] }
 0x53e   : > { %v3033_v56 = vadd.f32 %v10086_v7, %v2620_v38 }
 0x53f   : > { %v10135_v45 = vadd.f32 %v3376_v20, %v3028_v42  ;;  %v3379_v8 = vadd.f32 %v5153_v27, %v9997_v40 }
 0x541   : > { %v10138_v30 = vadd.f32 %v3379_v8, %v3029_v35  ;;  %v5154_v44 = vpop.f32.mrb[176].mxu1  ;;  %v2621_v35 = vld [vmem:[#allocation2 + $0x60] sm:$0xff] }
 0x542   : > { %v5155_v32 = vpop.f32.mrb[177].mxu1  ;;  %v3034_v13 = vadd.f32 %v10091_v53, %v2621_v35 }
 0x543   : > { %v5156_v26 = vadd.f32 %v5155_v32, %v5154_v44  ;;  %v5157_v50 = vpop.f32.mrb[178].mxu1  ;;  %v2622_v32 = vld [vmem:[#allocation2 + $0x68] sm:$0xff] }
 0x544   : > { %v5158_v47 = vpop.f32.mrb[179].mxu1  ;;  %v3035_v7 = vadd.f32 %v10096_v28, %v2622_v32 }
 0x545   : > { %v3384_v55 = vadd.f32 %v5156_v26, %v10011_v51  ;;  %v5159_v25 = vadd.f32 %v5158_v47, %v5157_v50 }
 0x547   : > { %v10143_v46 = vadd.f32 %v3384_v55, %v3030_v57  ;;  %v3387_v40 = vadd.f32 %v5159_v25, %v10013_v43  ;;  %v2623_v55 = vld [vmem:[#allocation2 + $0x70] sm:$0xff] }
 0x548   : > { %v3036_v53 = vadd.f32 %v10101_v23, %v2623_v55 }
 0x549   : > { %v10146_v63 = vadd.f32 %v3387_v40, %v3031_v54  ;;  %v5160_v19 = vpop.f32.mrb[180].mxu1 }
 0x54a   : > { %v5161_v22 = vpop.f32.mrb[181].mxu1 }
 0x54b   : > { %v5162_v10 = vadd.f32 %v5161_v22, %v5160_v19  ;;  %v5163_v48 = vpop.f32.mrb[182].mxu1  ;;  %v2624_v19 = vld [vmem:[#allocation2 + $0x78] sm:$0xff] }
 0x54c   : > { %v5164_v1 = vpop.f32.mrb[183].mxu1  ;;  %v3037_v28 = vadd.f32 %v10106_v61, %v2624_v19 }
 0x54d   : > { %v3392_v51 = vadd.f32 %v5162_v10, %v10016_v4  ;;  %v5165_v24 = vadd.f32 %v5164_v1, %v5163_v48 }
 0x54f   : > { %v10151_v42 = vadd.f32 %v3392_v51, %v3032_v36  ;;  %v3395_v43 = vadd.f32 %v5165_v24, %v10018_v0 }
 0x551   : > { %v10154_v20 = vadd.f32 %v3395_v43, %v3033_v56  ;;  %v5166_v27 = vpop.f32.mrb[184].mxu1 }
 0x552   : > { %v5167_v8 = vpop.f32.mrb[185].mxu1 }
 0x553   : > { %v5168_v44 = vadd.f32 %v5167_v8, %v5166_v27  ;;  %v5169_v21 = vpop.f32.mrb[186].mxu1 }
 0x554   : > { %v5170_v26 = vpop.f32.mrb[187].mxu1 }
 0x555   : > { %v3400_v4 = vadd.f32 %v5168_v44, %v10020_v33  ;;  %v5171_v50 = vadd.f32 %v5170_v26, %v5169_v21 }
 0x557   : > { %v10159_v15 = vadd.f32 %v3400_v4, %v3034_v13  ;;  %v3403_v0 = vadd.f32 %v5171_v50, %v10022_v49 }
 0x559   : > { %v10162_v47 = vadd.f32 %v3403_v0, %v3035_v7  ;;  %v5172_v57 = vpop.f32.mrb[188].mxu1 }
 0x55a   : > { %v5173_v25 = vpop.f32.mrb[189].mxu1 }
 0x55b   : > { %v5174_v54 = vadd.f32 %v5173_v25, %v5172_v57  ;;  %v5175_v40 = vpop.f32.mrb[190].mxu1 }
 0x55c   : > { %v5176_v60 = vpop.f32.mrb[191].mxu1 }
 0x55d   : > { %v3408_v33 = vadd.f32 %v5174_v54, %v10024_v58  ;;  %v5177_v22 = vadd.f32 %v5176_v60, %v5175_v40 }
 0x55f   : > { %v10167_v10 = vadd.f32 %v3408_v33, %v3036_v53  ;;  %v3411_v49 = vadd.f32 %v5177_v22, %v10026_v3 }
 0x561   : > { %v10170_v48 = vadd.f32 %v3411_v49, %v3037_v28  ;;  %v5258_v38 = vpop.f32.mrb[192].mxu1 }
 0x562   : > { %v5259_v1 = vpop.f32.mrb[193].mxu1 }
 0x563   : > { %v5260_v36 = vadd.f32 %v5259_v1, %v5258_v38  ;;  %v5261_v51 = vpop.f32.mrb[194].mxu1 }
 0x564   : > { %v5262_v24 = vpop.f32.mrb[195].mxu1 }
 0x565   : > { %v3744_v56 = vadd.f32 %v5260_v36, %v10028_v59  ;;  %v5263_v43 = vadd.f32 %v5262_v24, %v5261_v51 }
 0x567   : > { %v3806_v23 = vadd.f32 %v3744_v56, %v10111_v12  ;;  %v3747_v58 = vadd.f32 %v5263_v43, %v10033_v41 }
 0x569   : > { %3822 = vst [vmem:[#allocation2] sm:$0xff] %v3806_v23  ;;  %v3807_v61 = vadd.f32 %v3747_v58, %v10114_v52  ;;  %v5264_v27 = vpop.f32.mrb[196].mxu1 }
 0x56a   : > { %v5265_v35 = vpop.f32.mrb[197].mxu1 }
 0x56b   : > { %3823 = vst [vmem:[#allocation2 + $0x8] sm:$0xff] %v3807_v61  ;;  %v5266_v3 = vadd.f32 %v5265_v35, %v5264_v27  ;;  %v5267_v8 = vpop.f32.mrb[198].mxu1 }
 0x56c   : > { %v5268_v44 = vpop.f32.mrb[199].mxu1 }
 0x56d   : > { %v3752_v21 = vadd.f32 %v5266_v3, %v10038_v16  ;;  %v5269_v32 = vadd.f32 %v5268_v44, %v5267_v8 }
 0x56f   : > { %v3808_v26 = vadd.f32 %v3752_v21, %v10119_v2  ;;  %v3755_v59 = vadd.f32 %v5269_v32, %v10043_v6 }
 0x571   : > { %3824 = vst [vmem:[#allocation2 + $0x10] sm:$0xff] %v3808_v26  ;;  %v3809_v12 = vadd.f32 %v3755_v59, %v10122_v31  ;;  %v5270_v41 = vpop.f32.mrb[200].mxu1  ;;  %v11389_v26 = vld [vmem:[#allocation108_spill] sm:$0xff] }
 0x572   : > { %v5271_v13 = vpop.f32.mrb[201].mxu1 }
 0x573   : > { %3825 = vst [vmem:[#allocation2 + $0x18] sm:$0xff] %v3809_v12  ;;  %v5272_v52 = vadd.f32 %v5271_v13, %v5270_v41  ;;  %v5273_v4 = vpop.f32.mrb[202].mxu1 }
 0x574   : > { %v5274_v50 = vpop.f32.mrb[203].mxu1 }
 0x575   : > { %v3760_v7 = vadd.f32 %v5272_v52, %v10048_v39  ;;  %v5275_v0 = vadd.f32 %v5274_v50, %v5273_v4  ;;  %v3842_v52 = vld [vmem:[#allocation2 + $0x8] sm:$0xff] (%p6666_p4) }
 0x577   : > { %v3810_v57 = vadd.f32 %v3760_v7, %v10127_v34  ;;  %v3763_v16 = vadd.f32 %v5275_v0, %v10053_v37  ;;  %v3858_v7 = vmax.f32 (%p6666_p4), %v3842_v52, 0.0 }
 0x578   : > { %v3843_v4 = vld [vmem:[#allocation2 + $0x10] sm:$0xff] (%p6666_p4) }
 0x579   : > { %3826 = vst [vmem:[#allocation2 + $0x20] sm:$0xff] %v3810_v57  ;;  %v3811_v2 = vadd.f32 %v3763_v16, %v10130_v18  ;;  %v5276_v6 = vpop.f32.mrb[204].mxu1  ;;  %v3859_v0 = vmax.f32 (%p6666_p4), %v3843_v4, 0.0  ;;  %3874 = vst [vmem:[%s6670_s22 + $0x8] sm:$0xff] (%p6666_p4), %v3858_v7 }
 0x57a   : > { %v5277_v55 = vpop.f32.mrb[205].mxu1  ;;  %v3844_v57 = vld [vmem:[#allocation2 + $0x18] sm:$0xff] (%p6666_p4) }
 0x57b   : > { %3827 = vst [vmem:[#allocation2 + $0x28] sm:$0xff] %v3811_v2  ;;  %v5278_v31 = vadd.f32 %v5277_v55, %v5276_v6  ;;  %v5279_v25 = vpop.f32.mrb[206].mxu1  ;;  %v3860_v2 = vmax.f32 (%p6666_p4), %v3844_v57, 0.0  ;;  %3875 = vst [vmem:[%s6670_s22 + $0x10] sm:$0xff] (%p6666_p4), %v3859_v0 }
 0x57c   : > { %v5280_v54 = vpop.f32.mrb[207].mxu1 }
 0x57d   : > { %v3768_v40 = vadd.f32 %v5278_v31, %v10058_v11  ;;  %v5281_v19 = vadd.f32 %v5280_v54, %v5279_v25  ;;  %3876 = vst [vmem:[%s6670_s22 + $0x18] sm:$0xff] (%p6666_p4), %v3860_v2 }
 0x57f   : > { %v3812_v60 = vadd.f32 %v3768_v40, %v10135_v45  ;;  %v3771_v39 = vadd.f32 %v5281_v19, %v10063_v29 }
 0x581   : > { %3828 = vst [vmem:[#allocation2 + $0x30] sm:$0xff] %v3812_v60  ;;  %v3813_v34 = vadd.f32 %v3771_v39, %v10138_v30  ;;  %v5282_v37 = vpop.f32.mrb[208].mxu1 }
 0x582   : > { %v5283_v53 = vpop.f32.mrb[209].mxu1  ;;  %v3846_v16 = vld [vmem:[#allocation2 + $0x28] sm:$0xff] (%p6666_p4) }
 0x583   : > { %3829 = vst [vmem:[#allocation2 + $0x38] sm:$0xff] %v3813_v34  ;;  %v5284_v18 = vadd.f32 %v5283_v53, %v5282_v37  ;;  %v5285_v33 = vpop.f32.mrb[210].mxu1  ;;  %v3862_v6 = vmax.f32 (%p6666_p4), %v3846_v16, 0.0 }
 0x584   : > { %v5286_v22 = vpop.f32.mrb[211].mxu1 }
 0x585   : > { %v3776_v28 = vadd.f32 %v5284_v18, %v10068_v17  ;;  %v5287_v49 = vadd.f32 %v5286_v22, %v5285_v33  ;;  %3878 = vst [vmem:[%s6670_s22 + $0x28] sm:$0xff] (%p6666_p4), %v3862_v6 }
 0x587   : > { %v3814_v38 = vadd.f32 %v3776_v28, %v10143_v46  ;;  %v3779_v11 = vadd.f32 %v5287_v49, %v10073_v9 }
 0x588   : > { %v3847_v55 = vld [vmem:[#allocation2 + $0x30] sm:$0xff] (%p6666_p4) }
 0x589   : > { %3830 = vst [vmem:[#allocation2 + $0x40] sm:$0xff] %v3814_v38  ;;  %v3815_v45 = vadd.f32 %v3779_v11, %v10146_v63  ;;  %v5288_v29 = vpop.f32.mrb[212].mxu1  ;;  %v3863_v54 = vmax.f32 (%p6666_p4), %v3847_v55, 0.0 }
 0x58a   : > { %v5289_v1 = vpop.f32.mrb[213].mxu1  ;;  %v3848_v31 = vld [vmem:[#allocation2 + $0x38] sm:$0xff] (%p6666_p4) }
 0x58b   : > { %3831 = vst [vmem:[#allocation2 + $0x48] sm:$0xff] %v3815_v45  ;;  %v5290_v30 = vadd.f32 %v5289_v1, %v5288_v29  ;;  %v5291_v36 = vpop.f32.mrb[214].mxu1  ;;  %v3864_v40 = vmax.f32 (%p6666_p4), %v3848_v31, 0.0  ;;  %3879 = vst [vmem:[%s6670_s22 + $0x30] sm:$0xff] (%p6666_p4), %v3863_v54 }
 0x58c   : > { %v5292_v51 = vpop.f32.mrb[215].mxu1 }
 0x58d   : > { %v3784_v24 = vadd.f32 %v5290_v30, %v10078_v5  ;;  %v5293_v56 = vadd.f32 %v5292_v51, %v5291_v36  ;;  %v11388_v5 = vld [vmem:[#allocation109_spill] sm:$0xff]  ;;  %3880 = vst [vmem:[%s6670_s22 + $0x38] sm:$0xff] (%p6666_p4), %v3864_v40 }
 0x58f   : > { %v3816_v43 = vadd.f32 %v3784_v24, %v10151_v42  ;;  %v3787_v17 = vadd.f32 %v5293_v56, %v10083_v62 }
 0x590   : > { %v3849_v25 = vld [vmem:[#allocation2 + $0x40] sm:$0xff] (%p6666_p4) }
 0x591   : > { %3832 = vst [vmem:[#allocation2 + $0x50] sm:$0xff] %v3816_v43  ;;  %v3817_v46 = vadd.f32 %v3787_v17, %v10154_v20  ;;  %v5294_v9 = vpop.f32.mrb[216].mxu1  ;;  %v3865_v19 = vmax.f32 (%p6666_p4), %v3849_v25, 0.0 }
 0x592   : > { %v5295_v23 = vpop.f32.mrb[217].mxu1  ;;  %v3850_v60 = vld [vmem:[#allocation2 + $0x48] sm:$0xff] (%p6666_p4) }
 0x593   : > { %3833 = vst [vmem:[#allocation2 + $0x58] sm:$0xff] %v3817_v46  ;;  %v5296_v63 = vadd.f32 %v5295_v23, %v5294_v9  ;;  %v5297_v58 = vpop.f32.mrb[218].mxu1  ;;  %v3866_v37 = vmax.f32 (%p6666_p4), %v3850_v60, 0.0  ;;  %3881 = vst [vmem:[%s6670_s22 + $0x40] sm:$0xff] (%p6666_p4), %v3865_v19 }
 0x594   : > { %v5298_v61 = vpop.f32.mrb[219].mxu1 }
 0x595   : > { %v3792_v27 = vadd.f32 %v5296_v63, %v10088_v14  ;;  %v5299_v35 = vadd.f32 %v5298_v61, %v5297_v58  ;;  %v11390_v14 = vld [vmem:[#allocation87_spill] sm:$0xff]  ;;  %3882 = vst [vmem:[%s6670_s22 + $0x48] sm:$0xff] (%p6666_p4), %v3866_v37 }
 0x597   : > { %v3818_v3 = vadd.f32 %v3792_v27, %v10159_v15  ;;  %v3795_v8 = vadd.f32 %v5299_v35, %v11388_v5 }
 0x598   : > { %v3851_v39 = vld [vmem:[#allocation2 + $0x50] sm:$0xff] (%p6666_p4) }
 0x599   : > { %3834 = vst [vmem:[#allocation2 + $0x60] sm:$0xff] %v3818_v3  ;;  %v3819_v42 = vadd.f32 %v3795_v8, %v10162_v47  ;;  %v5300_v62 = vpop.f32.mrb[220].mxu1  ;;  %v3841_v47 = vld [vmem:[#allocation2] sm:$0xff] (%p6666_p4)  ;;  %v3867_v53 = vmax.f32 (%p6666_p4), %v3851_v39, 0.0 }
 0x59a   : > { %v5301_v44 = vpop.f32.mrb[221].mxu1  ;;  %v3857_v50 = vmax.f32 (%p6666_p4), %v3841_v47, 0.0  ;;  %v3852_v34 = vld [vmem:[#allocation2 + $0x58] sm:$0xff] (%p6666_p4) }
 0x59b   : > { %3835 = vst [vmem:[#allocation2 + $0x68] sm:$0xff] %v3819_v42  ;;  %v5302_v20 = vadd.f32 %v5301_v44, %v5300_v62  ;;  %v5303_v21 = vpop.f32.mrb[222].mxu1  ;;  %v3868_v18 = vmax.f32 (%p6666_p4), %v3852_v34, 0.0  ;;  %3883 = vst [vmem:[%s6670_s22 + $0x50] sm:$0xff] (%p6666_p4), %v3867_v53 }
 0x59c   : > { %v5304_v32 = vpop.f32.mrb[223].mxu1  ;;  %3873 = vst [vmem:[%s6670_s22] sm:$0xff] (%p6666_p4), %v3857_v50 }
 0x59d   : > { %v3800_v59 = vadd.f32 %v5302_v20, %v11389_v26  ;;  %v5305_v12 = vadd.f32 %v5304_v32, %v5303_v21  ;;  %3840 = sbr.rel (!%p6666_p4) target bundleno = 1454 (0x5ae), region = 100  ;;  %3884 = vst [vmem:[%s6670_s22 + $0x58] sm:$0xff] (%p6666_p4), %v3868_v18 }
 0x59f   : > { %v3820_v41 = vadd.f32 %v3800_v59, %v10167_v10  ;;  %v3803_v13 = vadd.f32 %v5305_v12, %v11390_v14  ;;  %v3845_v10 = vld [vmem:[#allocation2 + $0x20] sm:$0xff] (%p6666_p4) }
 0x5a0   : > { %v3853_v33 = vld [vmem:[#allocation2 + $0x60] sm:$0xff] (%p6666_p4) }
 0x5a1   : > { %3836 = vst [vmem:[#allocation2 + $0x70] sm:$0xff] %v3820_v41  ;;  %v3821_v15 = vadd.f32 %v3803_v13, %v10170_v48  ;;  %v3861_v48 = vmax.f32 (%p6666_p4), %v3845_v10, 0.0  ;;  %v3869_v49 = vmax.f32 (%p6666_p4), %v3853_v33, 0.0 }
 0x5a2   : > { %v3854_v22 = vld [vmem:[#allocation2 + $0x68] sm:$0xff] (%p6666_p4) }
 0x5a3   : > { %3837 = vst [vmem:[#allocation2 + $0x78] sm:$0xff] %v3821_v15  ;;  %3877 = vst [vmem:[%s6670_s22 + $0x20] sm:$0xff] (%p6666_p4), %v3861_v48  ;;  %v3870_v38 = vmax.f32 (%p6666_p4), %v3854_v22, 0.0 }
 0x5a4   : > { %3885 = vst [vmem:[%s6670_s22 + $0x60] sm:$0xff] %v3869_v49 }
 0x5a5   : > { %3886 = vst [vmem:[%s6670_s22 + $0x68] sm:$0xff] %v3870_v38 }
 0x5a8   : > { %v3855_v28 = vld [vmem:[#allocation2 + $0x70] sm:$0xff] }
 0x5a9   : > { %v3871_v11 = vmax.f32 %v3855_v28, 0.0 }
 0x5aa   : > { %v3856_v45 = vld [vmem:[#allocation2 + $0x78] sm:$0xff] }
 0x5ab   : > { %v3872_v29 = vmax.f32 %v3856_v45, 0.0  ;;  %3887 = vst [vmem:[%s6670_s22 + $0x70] sm:$0xff] %v3871_v11 }
 0x5ad   : > { %3888 = vst [vmem:[%s6670_s22 + $0x78] sm:$0xff] %v3872_v29 }
 0x5ae PF: > { %s11391_s10 = sld [smem:[#allocation42_spill]]  ;;  %s3904_s16 = sshll.u32 %s6670_s22, 4  ;;  %s10228_s16 = int_to_ptr.vmem [resolvable:$true] %s3904_s16 }
 0x5af   : > { %s11394_s24 = sld [smem:[#allocation131_spill]]  ;;  %s10237_s23 = scalar_lea.sflag [#allocation7], %s588_s5 }
 0x5b0   : > { %s5842_s6 = scalar_lea.vmem %s10228_s16, 2048 }
 0x5b1   : > { %p5843_p7 = scmp.ne.s32.totalorder %s10228_s16, %s5842_s6 }
 0x5b4   : > { %p11392_p3 = scmp.ne.s32.totalorder %s11391_s10, 0 }
 0x5b5   : > { %s11395_s2 = smov %s11394_s24 }
 0x5b6   : > { %s5334_s11 = scalar_select %p11392_p3, [#allocation4], [#allocation23] }
 0x5b7   : > { %s11428_s15 = smov (!%p11392_p3, %s6162_s15), 0  ;;  %p5844_p10 = pnand %p5843_p7, %p11392_p3 }
 0x5b8   : > { %s3897_s12 = sld [smem:[%s5334_s11 + %s11428_s15]]  ;;  %s6026_s15 = smov [#allocation20]  }
 0x5b9   : > { %p5845_p1 = pneg %p5844_p10  ;;  %s5846_s17 = sshll.u32 %s6026_s15, 4  ;;  %s5847_s17 = int_to_ptr.vmem [resolvable:$false] %s5846_s17 }
 0x5ba   : > { %s5848_s18 = scalar_lea.vmem %s5847_s17, 4096  ;;  %p5849_p6 = scmp.lt.s32.totalorder %s10228_s16, %s5847_s17 }
 0x5bb   : > { %p5850_p5 = scmp.lt.s32.totalorder %s5848_s18, %s5842_s6 }
 0x5bd   : > { %p5851_p2 = por %p5850_p5, %p5849_p6 }
 0x5be   : > { %s4882_s28 = sshll.u32 %s3897_s12, 11 }
 0x5bf   : > { %s10233_s26 = scalar_lea.hbm %s11394_s24, %s4882_s28  ;;  %p5852_p9 = pnand %p5851_p2, %p5845_p1 }
 0x5c1   : > { %5855 = shalt.err (!%p5852_p9)
}
 0x5c2   : > { %s5856_s5 = scalar_lea.hbm %s10233_s26, 2048  ;;  %s5860_s11 = scalar_lea.hbm %s11395_s2, 4096 }
 0x5c3   : > { %p5857_p11 = scmp.ne.s32.totalorder %s10233_s26, %s5856_s5  ;;  %p5861_p12 = scmp.lt.u32.totalorder %s10233_s26, %s11395_s2 }
 0x5c4   : > { %p5862_p13 = scmp.lt.u32.totalorder %s5860_s11, %s5856_s5  ;;  %p5864_p7 = scmp.lt.u32.totalorder %s5856_s5, %s10233_s26 }
 0x5c5   : > { %p5858_p8 = pnand %p5857_p11, %p11392_p3 }
 0x5c6   : > { %p5863_p4 = por %p5862_p13, %p5861_p12 }
 0x5c7   : > { %p5859_p0 = pneg %p5858_p8 }
 0x5c8   : > { %p5865_p10 = por %p5864_p7, %p5863_p4 }
 0x5ca   : > { %p5866_p1 = pnand %p5865_p10, %p5859_p0 }
 0x5cc   : > { %5869 = shalt.err (!%p5866_p1)
}
 0x5cd   : > { %s6027_s13 = smov 128   ;;  %s6028_s0 = smov 8  }
 0x5ce   : > { %5336 = dma.vmem_to_hbm [thread:$0]  (%p11392_p3), %s10228_s16, 2048, %s10233_s26, %s10237_s23, %s6027_s13, %s6027_s13, %s6028_s0  }
 0x5cf PF: > { %s11396_s24 = sld [smem:[#allocation35_spill]]  ;;  %s11397_s6 = sld [smem:[#allocation43_spill]] }
 0x5d0   : > { %p5382_p6 = scmp.ge.s32.totalorder %s6006_s14, 2 }
 0x5d5   : > { %s3919_s15 = sand.u32 1, %s11396_s24   ;;  %p11398_p5 = scmp.ne.s32.totalorder %s11397_s6, 0 }
 0x5d6   : > { %s3920_s17 = scalar_lea.sflag [#allocation7], %s3919_s15 }
 0x5d7   : > { %p5372_p2 = pnand %p5382_p6, %p11398_p5 }
 0x5d9   : > { %5953 = dma.done.wait (!%p5372_p2), %s3920_s17, 2048  }
 0x5da   : > { %5955 = vsyncadd (!%p5372_p2), %s3920_s17, 4294965248  ;;  %s11399_s14 = sld [smem:[#allocation45_spill]]  ;;  %s11400_s23 = sld [smem:[#allocation36_spill]] }
 0x5db   : > { %s11401_s0 = sld [smem:[#allocation38_spill]]  ;;  %s11402_s26 = sld [smem:[#allocation39_spill]] }
 0x5dc   : > { %s11403_s11 = sld [smem:[#allocation40_spill]]  ;;  %s11404_s12 = sld [smem:[#allocation41_spill]] }
 0x5dd   : > { %s11405_s13 = sld [smem:[#allocation46_spill]]  ;;  %s11407_s24 = smov %s5966_s25 }
 0x5de   : > { %s11408_s25 = smov %s6343_s27  ;;  %s11409_s27 = smov %s11418_s21 }
 0x5df   : > { %s11410_s28 = smov %s5986_s29  ;;  %s11411_s29 = smov %s5990_s30 }
 0x5e0   : > { %p37_p3 = scmp.ge.s32.totalorder %s11399_s14, 7   ;;  %s11412_s30 = smov %s6480_s19 }
 0x5e2   :  { %39 = sbr.rel (!%p37_p3) target bundleno = 30 (0x1e), region = 182 }
 0x5e9   :  { %3925 = vsyncpa [#allocation6], 1 }
 0x5ea   :  { %3927 = vsyncpa [#allocation6 + $0x1], 1 }
 0x5eb   :  { %3928 = vsyncpa [#allocation9], 1 }
 0x5ec   :  { %3930 = vsyncpa [#allocation9 + $0x1], 1 }
 0x5ed   :  { %3931 = vsyncpa [#allocation12], 1 }
 0x5ee   :  { %3933 = vsyncpa [#allocation12 + $0x1], 1 }
 0x5ef   :  { %3934 = vsyncpa [#allocation15], 1 }
 0x5f0   :  { %3935 = vsyncpa [#allocation18], 1 }
 0x5f1   :  { %3937 = vsyncpa [#allocation18 + $0x1], 1 }
 0x5f2   :  { %3938 = vsyncpa [#allocation7], 1 }
 0x5f3   :  { %3940 = vsyncpa [#allocation7 + $0x1], 1 }

</bundles_post_ra>
